<compile_context>
chip_gen: v7x
topology: tpu7x:2x2x1
jax: 0.10.0
libtpu: 0.0.40
codegen_flags: <defaults>
</compile_context>

<pallas_src>
import math

import numpy as np
import jax
import jax.numpy as jnp
from jax.experimental import pallas as pl
from jax.experimental.pallas import tpu as pltpu

# ----------------------------- configuration --------------------------------
N_BATCH = 2
C_IN = 16                      # in_channels (shrunk from 1024)
K_PTS = 133                    # out_channels, fixed by flip_indices
FEAT_W, FEAT_H = 4, 6          # in_featuremap_size = (w, h)
FLATTEN = FEAT_W * FEAT_H      # 24  (flatten_dims)
KSIZE = 3                      # final_layer kernel size (shrunk from 7)
CKK = C_IN * KSIZE * KSIZE     # 144 (im2col row length)
HIDDEN = 32                    # gau hidden_dims (shrunk from 256)
GAU_S = 16                     # gau s          (shrunk from 128)
EXPANSION = 2
GAU_E = HIDDEN * EXPANSION     # 64
INPUT_W, INPUT_H = 16, 24      # input_size (shrunk from 288, 384)
SPLIT_RATIO = 2.0
SIMCC_W = int(INPUT_W * SPLIT_RATIO)   # 32
SIMCC_H = int(INPUT_H * SPLIT_RATIO)   # 48
SIMCC_WH = SIMCC_W + SIMCC_H           # 80  (merged cls output width)
EPS = 1e-5
SQRT_S = math.sqrt(GAU_S)

MXU_DTYPE = jnp.bfloat16   # MXU operand dtype (f32 accumulation everywhere)

FLIP_INDICES = [0, 2, 1, 4, 3, 6, 5, 8, 7, 10, 9, 12, 11, 14, 13, 16, 15, 20,
                21, 22, 17, 18, 19, 39, 38, 37, 36, 35, 34, 33, 32, 31, 30, 29,
                28, 27, 26, 25, 24, 23, 49, 48, 47, 46, 45, 44, 43, 42, 41, 40,
                50, 51, 52, 53, 58, 57, 56, 55, 54, 68, 67, 66, 65, 70, 69, 62,
                61, 60, 59, 64, 63, 77, 76, 75, 74, 73, 72, 71, 82, 81, 80, 79,
                78, 87, 86, 85, 84, 83, 90, 89, 88, 112, 113, 114, 115, 116,
                117, 118, 119, 120, 121, 122, 123, 124, 125, 126, 127, 128,
                129, 130, 131, 132, 91, 92, 93, 94, 95, 96, 97, 98, 99, 100,
                101, 102, 103, 104, 105, 106, 107, 108, 109, 110, 111]
assert len(FLIP_INDICES) == K_PTS


def _bcast_spec(shape):
    """BlockSpec that always selects block (0, 0, ...): weight shared over grid."""
    nd = len(shape)
    return pl.BlockSpec(shape, lambda i, nd=nd: (0,) * nd)


# ----------------------- single fused head kernel ---------------------------
def _mxu_dot(a, b):
    """MXU matmul with bf16 operands and f32 accumulation."""
    return jnp.dot(a.astype(MXU_DTYPE), b.astype(MXU_DTYPE),
                   preferred_element_type=jnp.float32)


def _inv_clamped_scalenorm(x, dim):
    """ScaleNorm denominator: 1 / clamp(||x|| * dim**-0.5, min=eps).

    Sum-of-squares + EUP reciprocal (approx) instead of a serial divide chain;
    the eps clamp is applied to the norm BEFORE the reciprocal, matching the
    PyTorch ScaleNorm exactly (the scalar g is folded into the next Linear).
    """
    ssq = jnp.sum(x * x, axis=-1, keepdims=True)
    nrm = jnp.sqrt(ssq) * (dim ** -0.5)
    return pl.reciprocal(jnp.maximum(nrm, EPS), approx=True)


def _fused_head_kernel(p_ref, wconv_ref, bconv_ref, wmlp_ref, wuv_ref,
                       gamma_ref, beta_ref, wo_ref, res_ref, wcls_ref,
                       cls_ref):
    # final_layer conv, lowered to one matmul that yields (K_PTS, FLATTEN)
    # directly (w is stored as (K, C*kh*kw), patches as (C*kh*kw, H*W)).
    x = _mxu_dot(wconv_ref[...], p_ref[...]) + bconv_ref[...]        # (K, FLAT)

    # mlp = ScaleNorm(FLATTEN) (g folded into w_mlp) + Linear(bias=False)
    xn = x * _inv_clamped_scalenorm(x, FLATTEN)
    h = _mxu_dot(xn, wmlp_ref[...])                                  # (K, D)

    # GAU (RTMCCBlock._forward): ScaleNorm (g folded into w_uv) -> uv -> SiLU
    hn = h * _inv_clamped_scalenorm(h, HIDDEN)
    uv = _mxu_dot(hn, wuv_ref[...])                                  # (K, 2E+S)
    uv = uv * jax.nn.sigmoid(uv)                                     # SiLU (f32)

    u = uv[:, :GAU_E]
    v = uv[:, GAU_E:2 * GAU_E]
    base = uv[:, 2 * GAU_E:]
    q = base * gamma_ref[0:1, :] + beta_ref[0:1, :]
    k = base * gamma_ref[1:2, :] + beta_ref[1:2, :]

    qk = jax.lax.dot_general(q.astype(MXU_DTYPE), k.astype(MXU_DTYPE),
                             (((1,), (1,)), ((), ())),
                             preferred_element_type=jnp.float32)     # (K, K)
    kern = jnp.square(jnp.maximum(qk * (1.0 / SQRT_S), 0.0))
    gau = u * _mxu_dot(kern, v)                                      # (K, E)
    out = _mxu_dot(gau, wo_ref[...])                                 # (K, D)

    feats = h * res_ref[...] + out          # res_scale(shortcut) + main branch

    # merged cls_x | cls_y head: single MXU pass, 80-lane-dense output store.
    cls_ref[...] = _mxu_dot(feats, wcls_ref[...])                    # (K, W+H)


def fused_forward(patches, p):
    """patches: (N, CKK, FLATTEN) -> concatenated simcc logits (N, K, W+H)."""
    n = patches.shape[0]
    return pl.pallas_call(
        _fused_head_kernel,
        out_shape=jax.ShapeDtypeStruct((n, K_PTS, SIMCC_WH), jnp.float32),
        grid=(n,),
        in_specs=[
            pl.BlockSpec((None, CKK, FLATTEN), lambda i: (i, 0, 0)),
            _bcast_spec((K_PTS, CKK)),
            _bcast_spec((K_PTS, 1)),
            _bcast_spec((FLATTEN, HIDDEN)),
            _bcast_spec((HIDDEN, 2 * GAU_E + GAU_S)),
            _bcast_spec((2, GAU_S)),
            _bcast_spec((2, GAU_S)),
            _bcast_spec((GAU_E, HIDDEN)),
            _bcast_spec((1, HIDDEN)),
            _bcast_spec((HIDDEN, SIMCC_WH)),
        ],
        out_specs=pl.BlockSpec((None, K_PTS, SIMCC_WH), lambda i: (i, 0, 0)),
        compiler_params=pltpu.CompilerParams(
            dimension_semantics=("parallel",)),   # 2nd TC on v7x; no-op v5e/v6e
    )(patches, p['w_conv_kc'], p['b_conv_col'], p['w_mlp_eff'], p['w_uv_eff'],
      p['gamma'], p['beta'], p['w_o'], p['res_scale'], p['w_cls'])


# --------------------------------- glue --------------------------------------
def im2col_nchw(x_nchw, ksize):
    """k x k patches (SAME, stride 1) directly from NCHW -> (N, C*k*k, H*W).

    Row ordering is (c, ky, kx), matching a (O, I, kh, kw) weight reshaped to
    (O, I*kh*kw).
    """
    pad = ksize // 2
    n, c, h, w = x_nchw.shape
    xp = jnp.pad(x_nchw, ((0, 0), (0, 0), (pad, pad), (pad, pad)))
    cols = [xp[:, :, ky:ky + h, kx:kx + w]
            for ky in range(ksize) for kx in range(ksize)]
    patches = jnp.stack(cols, axis=2)                 # (N, C, k*k, H, W)
    return patches.reshape(n, c * ksize * ksize, h * w)


def decode_xla(bx, by):
    """SimCC decode (max / first-occurrence argmax / invalid mask) in plain XLA.

    Work is tiny (argmax over 32/48 lanes) and was launch-overhead dominated
    as a Pallas kernel. NaN rows resolve to index 0 here (torch would give NaN
    scores) -- benign for this workload.
    """
    x_max = jnp.max(bx, axis=-1)
    y_max = jnp.max(by, axis=-1)
    x_loc = jnp.argmax(bx, axis=-1).astype(jnp.float32)   # first occurrence
    y_loc = jnp.argmax(by, axis=-1).astype(jnp.float32)
    vals = jnp.minimum(x_max, y_max)                       # x_vals[mask]=y_vals
    invalid = vals <= 0.0                                  # locs[vals <= 0] = -1
    x_loc = jnp.where(invalid, -1.0, x_loc)
    y_loc = jnp.where(invalid, -1.0, y_loc)
    keypoints = jnp.stack([x_loc, y_loc], axis=-1) * (1.0 / SPLIT_RATIO)
    return keypoints, vals


def rtmcc_head_forward(f1, f2, params):
    """RTMCCHead.forward: both feature maps stacked into one Pallas launch."""
    feats = jnp.concatenate([f1, f2], axis=0)          # (2N, C, H, W)
    patches = im2col_nchw(feats, KSIZE)                # (2N, CKK, H*W)
    cls = fused_forward(patches, params)               # (2N, K, W+H)

    n = f1.shape[0]
    px, pxf = cls[:n, :, :SIMCC_W], cls[n:, :, :SIMCC_W]
    py, pyf = cls[:n, :, SIMCC_W:], cls[n:, :, SIMCC_W:]

    # flip_vectors: keypoint gather + x-axis reverse (pure indexing -> XLA glue)
    idx = jnp.asarray(FLIP_INDICES, dtype=jnp.int32)
    pxf = pxf[:, idx, :][:, :, ::-1]
    pyf = pyf[:, idx, :]
    bx = (px + pxf) * 0.5
    by = (py + pyf) * 0.5

    keypoints, scores = decode_xla(bx, by)
    return keypoints, scores, bx, by


# ------------------------------ parameters -----------------------------------
def init_params(key):
    ks = jax.random.split(key, 11)
    rnd = lambda k, shape, scale: jax.random.normal(k, shape, jnp.float32) * scale
    p = {}
    # final_layer conv: torch-style OIHW weight (K, C, kh, kw), bias (K,)
    p['w_conv'] = rnd(ks[0], (K_PTS, C_IN, KSIZE, KSIZE),
                      1.0 / math.sqrt(KSIZE * KSIZE * C_IN))
    p['b_conv'] = rnd(ks[1], (K_PTS,), 0.01)
    p['w_conv_kc'] = p['w_conv'].reshape(K_PTS, CKK)      # (c, ky, kx) order
    p['b_conv_col'] = p['b_conv'][:, None]                # (K, 1) column bias
    # mlp = ScaleNorm(FLATTEN) + Linear(FLATTEN, HIDDEN, bias=False);
    # the ScaleNorm scalar g only feeds the linear, so fold it into the weight.
    g_mlp = 1.0 + 0.1 * jax.random.normal(ks[2], (), jnp.float32)
    p['w_mlp_eff'] = rnd(ks[3], (FLATTEN, HIDDEN), 1.0 / math.sqrt(FLATTEN)) * g_mlp
    # GAU (its ScaleNorm g folded into the uv weight)
    g_gau = 1.0 + 0.1 * jax.random.normal(ks[4], (), jnp.float32)
    p['w_uv_eff'] = rnd(ks[5], (HIDDEN, 2 * GAU_E + GAU_S),
                        1.0 / math.sqrt(HIDDEN)) * g_gau
    p['gamma'] = jax.random.uniform(ks[6], (2, GAU_S), jnp.float32)
    p['beta'] = jax.random.uniform(ks[7], (2, GAU_S), jnp.float32)
    p['w_o'] = rnd(ks[8], (GAU_E, HIDDEN), 1.0 / math.sqrt(GAU_E))
    p['res_scale'] = jnp.ones((1, HIDDEN), jnp.float32)   # Scale init_value=1.0
    # cls heads (Linear, no bias), stored (in, out) and merged for the kernel
    p['w_cls_x'] = rnd(ks[9], (HIDDEN, SIMCC_W), 1.0 / math.sqrt(HIDDEN))
    p['w_cls_y'] = rnd(ks[10], (HIDDEN, SIMCC_H), 1.0 / math.sqrt(HIDDEN))
    p['w_cls'] = jnp.concatenate([p['w_cls_x'], p['w_cls_y']], axis=1)
    return p


# --------------------------- pure-JAX f32 reference ---------------------------
def _ref_forward_x(feat_nchw, p):
    y = jax.lax.conv_general_dilated(
        feat_nchw, p['w_conv'], (1, 1), 'SAME',
        dimension_numbers=('NCHW', 'OIHW', 'NCHW'))
    y = y + p['b_conv'][None, :, None, None]
    feats = y.reshape(y.shape[0], K_PTS, -1)
    nrm = jnp.linalg.norm(feats, axis=-1, keepdims=True) * (FLATTEN ** -0.5)
    h = (feats / jnp.maximum(nrm, EPS)) @ p['w_mlp_eff']
    nrm2 = jnp.linalg.norm(h, axis=-1, keepdims=True) * (HIDDEN ** -0.5)
    uv = (h / jnp.maximum(nrm2, EPS)) @ p['w_uv_eff']
    uv = uv * jax.nn.sigmoid(uv)
    u, v, base = uv[..., :GAU_E], uv[..., GAU_E:2 * GAU_E], uv[..., 2 * GAU_E:]
    q = base * p['gamma'][0] + p['beta'][0]
    k = base * p['gamma'][1] + p['beta'][1]
    qk = jnp.einsum('nkd,njd->nkj', q, k)
    kern = jnp.square(jnp.maximum(qk / SQRT_S, 0.0))
    out = (u * jnp.einsum('nkj,njd->nkd', kern, v)) @ p['w_o']
    feats2 = h * p['res_scale'][0] + out
    return feats2 @ p['w_cls_x'], feats2 @ p['w_cls_y']


def _rel_err(a, b):
    a = np.asarray(a); b = np.asarray(b)
    return float(np.max(np.abs(a - b)) / (np.max(np.abs(b)) + 1e-6))


# ----------------------------------- main -------------------------------------
if __name__ == "__main__":
    key = jax.random.PRNGKey(0)
    k1, k2, kp = jax.random.split(key, 3)
    f1 = jax.random.normal(k1, (N_BATCH, C_IN, FEAT_H, FEAT_W), jnp.float32)
    f2 = jax.random.normal(k2, (N_BATCH, C_IN, FEAT_H, FEAT_W), jnp.float32)
    params = init_params(kp)

    fwd = jax.jit(lambda a, b: rtmcc_head_forward(a, b, params))
    keypoints, scores, bx, by = fwd(f1, f2)
    jax.block_until_ready((keypoints, scores, bx, by))

    assert keypoints.shape == (N_BATCH, K_PTS, 2)
    assert scores.shape == (N_BATCH, K_PTS)
    assert bx.shape == (N_BATCH, K_PTS, SIMCC_W)
    assert by.shape == (N_BATCH, K_PTS, SIMCC_H)

    # numerical check of the hot path against a pure-JAX f32 reference
    # (kernel uses bf16 MXU operands + approx reciprocal, hence the tolerance)
    rx1, ry1 = _ref_forward_x(f1, params)
    rx2, ry2 = _ref_forward_x(f2, params)
    idx = np.array(FLIP_INDICES)
    rx2 = rx2[:, idx, :][:, :, ::-1]
    ry2 = ry2[:, idx, :]
    rbx = (rx1 + rx2) * 0.5
    rby = (ry1 + ry2) * 0.5
    assert _rel_err(bx, rbx) < 5e-2, _rel_err(bx, rbx)
    assert _rel_err(by, rby) < 5e-2, _rel_err(by, rby)

    # TODO(synk): optional further lane-density win — run the whole pipeline in
    # transposed (feature-on-sublane, K=133-on-lane) layout; skipped to keep the
    # standard-layout kernel simple and proven.

    print("KERNEL_OK")
</pallas_src>

<mosaic_0001>
module attributes {stable_mosaic.version = 11 : i64} {
  func.func @_fused_head_kernel(%arg0: i32, %arg1: memref<1x144x24xf32, #tpu.memory_space<vmem>>, %arg2: memref<133x144xf32, #tpu.memory_space<vmem>>, %arg3: memref<133x1xf32, #tpu.memory_space<vmem>>, %arg4: memref<24x32xf32, #tpu.memory_space<vmem>>, %arg5: memref<32x144xf32, #tpu.memory_space<vmem>>, %arg6: memref<2x16xf32, #tpu.memory_space<vmem>>, %arg7: memref<2x16xf32, #tpu.memory_space<vmem>>, %arg8: memref<64x32xf32, #tpu.memory_space<vmem>>, %arg9: memref<1x32xf32, #tpu.memory_space<vmem>>, %arg10: memref<32x80xf32, #tpu.memory_space<vmem>>, %arg11: memref<1x133x80xf32, #tpu.memory_space<vmem>>) attributes {dimension_semantics = [#tpu.dimension_semantics<parallel>], iteration_bounds = array<i64: 4>, scalar_prefetch = 0 : i64, scratch_operands = 0 : i64, tpu.core_type = #tpu.core_type<tc>, window_params = [{transform_indices = @transform_0, window_bounds = array<i64: 1, 144, 24>}, {pipeline_mode = #tpu.pipeline_mode<synchronous>, transform_indices = @transform_1, window_bounds = array<i64: 133, 144>}, {pipeline_mode = #tpu.pipeline_mode<synchronous>, transform_indices = @transform_2, window_bounds = array<i64: 133, 1>}, {pipeline_mode = #tpu.pipeline_mode<synchronous>, transform_indices = @transform_3, window_bounds = array<i64: 24, 32>}, {pipeline_mode = #tpu.pipeline_mode<synchronous>, transform_indices = @transform_4, window_bounds = array<i64: 32, 144>}, {pipeline_mode = #tpu.pipeline_mode<synchronous>, transform_indices = @transform_5, window_bounds = array<i64: 2, 16>}, {pipeline_mode = #tpu.pipeline_mode<synchronous>, transform_indices = @transform_6, window_bounds = array<i64: 2, 16>}, {pipeline_mode = #tpu.pipeline_mode<synchronous>, transform_indices = @transform_7, window_bounds = array<i64: 64, 32>}, {pipeline_mode = #tpu.pipeline_mode<synchronous>, transform_indices = @transform_8, window_bounds = array<i64: 1, 32>}, {pipeline_mode = #tpu.pipeline_mode<synchronous>, transform_indices = @transform_9, window_bounds = array<i64: 32, 80>}, {transform_indices = @transform_10, window_bounds = array<i64: 1, 133, 80>}]} {
    %c0 = arith.constant 0 : index
    %c0_0 = arith.constant 0 : index
    %0 = vector.load %arg2[%c0, %c0_0] : memref<133x144xf32, #tpu.memory_space<vmem>>, vector<133x144xf32>
    %c0_1 = arith.constant 0 : index
    %c0_2 = arith.constant 0 : index
    %c0_3 = arith.constant 0 : index
    %1 = vector.load %arg1[%c0_1, %c0_2, %c0_3] : memref<1x144x24xf32, #tpu.memory_space<vmem>>, vector<1x144x24xf32>
    %2 = vector.shape_cast %1 : vector<1x144x24xf32> to vector<144x24xf32>
    %3 = arith.truncf %0 : vector<133x144xf32> to vector<133x144xbf16>
    %4 = arith.truncf %2 : vector<144x24xf32> to vector<144x24xbf16>
    %cst = arith.constant dense<0.000000e+00> : vector<133x24xf32>
    %5 = tpu.matmul %3, %4, %cst {dimension_numbers = #tpu.dot_dimension_numbers<[1], [0], [0], [1], [0, 0, 1, 1], [], []>} : vector<133x144xbf16>, vector<144x24xbf16>, vector<133x24xf32> -> vector<133x24xf32>
    %c0_4 = arith.constant 0 : index
    %c0_5 = arith.constant 0 : index
    %6 = vector.load %arg3[%c0_4, %c0_5] : memref<133x1xf32, #tpu.memory_space<vmem>>, vector<133x1xf32>
    %7 = vector.broadcast %6 : vector<133x1xf32> to vector<133x24xf32>
    %8 = arith.addf %5, %7 : vector<133x24xf32>
    %9 = arith.mulf %8, %8 : vector<133x24xf32>
    %cst_6 = arith.constant dense<0.000000e+00> : vector<133xf32>
    %10 = vector.multi_reduction <add>, %9, %cst_6 [1] : vector<133x24xf32> to vector<133xf32>
    %11 = vector.shape_cast %10 : vector<133xf32> to vector<133x1xf32>
    %12 = math.sqrt %11 : vector<133x1xf32>
    %cst_7 = arith.constant 0.204124153 : f32
    %13 = vector.broadcast %cst_7 : f32 to vector<133x1xf32>
    %14 = arith.mulf %12, %13 : vector<133x1xf32>
    %cst_8 = arith.constant 9.99999974E-6 : f32
    %15 = vector.broadcast %cst_8 : f32 to vector<133x1xf32>
    %16 = arith.maximumf %14, %15 : vector<133x1xf32>
    %17 = tpu.reciprocal %16 {approx = true} : vector<133x1xf32> -> vector<133x1xf32>
    %18 = vector.broadcast %17 : vector<133x1xf32> to vector<133x24xf32>
    %19 = arith.mulf %8, %18 : vector<133x24xf32>
    %c0_9 = arith.constant 0 : index
    %c0_10 = arith.constant 0 : index
    %20 = vector.load %arg4[%c0_9, %c0_10] : memref<24x32xf32, #tpu.memory_space<vmem>>, vector<24x32xf32>
    %21 = arith.truncf %19 : vector<133x24xf32> to vector<133x24xbf16>
    %22 = arith.truncf %20 : vector<24x32xf32> to vector<24x32xbf16>
    %cst_11 = arith.constant dense<0.000000e+00> : vector<133x32xf32>
    %23 = tpu.matmul %21, %22, %cst_11 {dimension_numbers = #tpu.dot_dimension_numbers<[1], [0], [0], [1], [0, 0, 1, 1], [], []>} : vector<133x24xbf16>, vector<24x32xbf16>, vector<133x32xf32> -> vector<133x32xf32>
    %24 = arith.mulf %23, %23 : vector<133x32xf32>
    %cst_12 = arith.constant dense<0.000000e+00> : vector<133xf32>
    %25 = vector.multi_reduction <add>, %24, %cst_12 [1] : vector<133x32xf32> to vector<133xf32>
    %26 = vector.shape_cast %25 : vector<133xf32> to vector<133x1xf32>
    %27 = math.sqrt %26 : vector<133x1xf32>
    %cst_13 = arith.constant 0.176776692 : f32
    %28 = vector.broadcast %cst_13 : f32 to vector<133x1xf32>
    %29 = arith.mulf %27, %28 : vector<133x1xf32>
    %cst_14 = arith.constant 9.99999974E-6 : f32
    %30 = vector.broadcast %cst_14 : f32 to vector<133x1xf32>
    %31 = arith.maximumf %29, %30 : vector<133x1xf32>
    %32 = tpu.reciprocal %31 {approx = true} : vector<133x1xf32> -> vector<133x1xf32>
    %33 = vector.broadcast %32 : vector<133x1xf32> to vector<133x32xf32>
    %34 = arith.mulf %23, %33 : vector<133x32xf32>
    %c0_15 = arith.constant 0 : index
    %c0_16 = arith.constant 0 : index
    %35 = vector.load %arg5[%c0_15, %c0_16] : memref<32x144xf32, #tpu.memory_space<vmem>>, vector<32x144xf32>
    %36 = arith.truncf %34 : vector<133x32xf32> to vector<133x32xbf16>
    %37 = arith.truncf %35 : vector<32x144xf32> to vector<32x144xbf16>
    %cst_17 = arith.constant dense<0.000000e+00> : vector<133x144xf32>
    %38 = tpu.matmul %36, %37, %cst_17 {dimension_numbers = #tpu.dot_dimension_numbers<[1], [0], [0], [1], [0, 0, 1, 1], [], []>} : vector<133x32xbf16>, vector<32x144xbf16>, vector<133x144xf32> -> vector<133x144xf32>
    %39 = arith.negf %38 : vector<133x144xf32>
    %40 = math.exp %39 : vector<133x144xf32>
    %cst_18 = arith.constant 1.000000e+00 : f32
    %41 = vector.broadcast %cst_18 : f32 to vector<133x144xf32>
    %42 = arith.addf %41, %40 : vector<133x144xf32>
    %43 = arith.divf %41, %42 : vector<133x144xf32>
    %44 = arith.mulf %38, %43 : vector<133x144xf32>
    %45 = vector.extract_strided_slice %44 {offsets = [0, 0], sizes = [133, 64], strides = [1, 1]} : vector<133x144xf32> to vector<133x64xf32>
    %46 = vector.extract_strided_slice %44 {offsets = [0, 64], sizes = [133, 64], strides = [1, 1]} : vector<133x144xf32> to vector<133x64xf32>
    %47 = vector.extract_strided_slice %44 {offsets = [0, 128], sizes = [133, 16], strides = [1, 1]} : vector<133x144xf32> to vector<133x16xf32>
    %c0_19 = arith.constant 0 : index
    %c0_20 = arith.constant 0 : index
    %48 = vector.load %arg6[%c0_19, %c0_20] : memref<2x16xf32, #tpu.memory_space<vmem>>, vector<1x16xf32>
    %49 = vector.broadcast %48 : vector<1x16xf32> to vector<133x16xf32>
    %50 = arith.mulf %47, %49 : vector<133x16xf32>
    %c0_21 = arith.constant 0 : index
    %c0_22 = arith.constant 0 : index
    %51 = vector.load %arg7[%c0_21, %c0_22] : memref<2x16xf32, #tpu.memory_space<vmem>>, vector<1x16xf32>
    %52 = vector.broadcast %51 : vector<1x16xf32> to vector<133x16xf32>
    %53 = arith.addf %50, %52 : vector<133x16xf32>
    %c1 = arith.constant 1 : index
    %c0_23 = arith.constant 0 : index
    %54 = vector.load %arg6[%c1, %c0_23] : memref<2x16xf32, #tpu.memory_space<vmem>>, vector<1x16xf32>
    %55 = vector.broadcast %54 : vector<1x16xf32> to vector<133x16xf32>
    %56 = arith.mulf %47, %55 : vector<133x16xf32>
    %c1_24 = arith.constant 1 : index
    %c0_25 = arith.constant 0 : index
    %57 = vector.load %arg7[%c1_24, %c0_25] : memref<2x16xf32, #tpu.memory_space<vmem>>, vector<1x16xf32>
    %58 = vector.broadcast %57 : vector<1x16xf32> to vector<133x16xf32>
    %59 = arith.addf %56, %58 : vector<133x16xf32>
    %60 = arith.truncf %53 : vector<133x16xf32> to vector<133x16xbf16>
    %61 = arith.truncf %59 : vector<133x16xf32> to vector<133x16xbf16>
    %cst_26 = arith.constant dense<0.000000e+00> : vector<133x133xf32>
    %62 = tpu.matmul %60, %61, %cst_26 {dimension_numbers = #tpu.dot_dimension_numbers<[1], [1], [0], [0], [0, 0, 1, 0], [], []>} : vector<133x16xbf16>, vector<133x16xbf16>, vector<133x133xf32> -> vector<133x133xf32>
    %cst_27 = arith.constant 2.500000e-01 : f32
    %63 = vector.broadcast %cst_27 : f32 to vector<133x133xf32>
    %64 = arith.mulf %62, %63 : vector<133x133xf32>
    %cst_28 = arith.constant 0.000000e+00 : f32
    %65 = vector.broadcast %cst_28 : f32 to vector<133x133xf32>
    %66 = arith.maximumf %64, %65 : vector<133x133xf32>
    %67 = arith.mulf %66, %66 : vector<133x133xf32>
    %68 = arith.truncf %67 : vector<133x133xf32> to vector<133x133xbf16>
    %69 = arith.truncf %46 : vector<133x64xf32> to vector<133x64xbf16>
    %cst_29 = arith.constant dense<0.000000e+00> : vector<133x64xf32>
    %70 = tpu.matmul %68, %69, %cst_29 {dimension_numbers = #tpu.dot_dimension_numbers<[1], [0], [0], [1], [0, 0, 1, 1], [], []>} : vector<133x133xbf16>, vector<133x64xbf16>, vector<133x64xf32> -> vector<133x64xf32>
    %71 = arith.mulf %45, %70 : vector<133x64xf32>
    %c0_30 = arith.constant 0 : index
    %c0_31 = arith.constant 0 : index
    %72 = vector.load %arg8[%c0_30, %c0_31] : memref<64x32xf32, #tpu.memory_space<vmem>>, vector<64x32xf32>
    %73 = arith.truncf %71 : vector<133x64xf32> to vector<133x64xbf16>
    %74 = arith.truncf %72 : vector<64x32xf32> to vector<64x32xbf16>
    %cst_32 = arith.constant dense<0.000000e+00> : vector<133x32xf32>
    %75 = tpu.matmul %73, %74, %cst_32 {dimension_numbers = #tpu.dot_dimension_numbers<[1], [0], [0], [1], [0, 0, 1, 1], [], []>} : vector<133x64xbf16>, vector<64x32xbf16>, vector<133x32xf32> -> vector<133x32xf32>
    %c0_33 = arith.constant 0 : index
    %c0_34 = arith.constant 0 : index
    %76 = vector.load %arg9[%c0_33, %c0_34] : memref<1x32xf32, #tpu.memory_space<vmem>>, vector<1x32xf32>
    %77 = vector.broadcast %76 : vector<1x32xf32> to vector<133x32xf32>
    %78 = arith.mulf %23, %77 : vector<133x32xf32>
    %79 = arith.addf %78, %75 : vector<133x32xf32>
    %c0_35 = arith.constant 0 : index
    %c0_36 = arith.constant 0 : index
    %80 = vector.load %arg10[%c0_35, %c0_36] : memref<32x80xf32, #tpu.memory_space<vmem>>, vector<32x80xf32>
    %81 = arith.truncf %79 : vector<133x32xf32> to vector<133x32xbf16>
    %82 = arith.truncf %80 : vector<32x80xf32> to vector<32x80xbf16>
    %cst_37 = arith.constant dense<0.000000e+00> : vector<133x80xf32>
    %83 = tpu.matmul %81, %82, %cst_37 {dimension_numbers = #tpu.dot_dimension_numbers<[1], [0], [0], [1], [0, 0, 1, 1], [], []>} : vector<133x32xbf16>, vector<32x80xbf16>, vector<133x80xf32> -> vector<133x80xf32>
    %c0_38 = arith.constant 0 : index
    %c0_39 = arith.constant 0 : index
    %c0_40 = arith.constant 0 : index
    %84 = vector.load %arg11[%c0_38, %c0_39, %c0_40] : memref<1x133x80xf32, #tpu.memory_space<vmem>>, vector<1x133x80xf32>
    %85 = vector.shape_cast %84 : vector<1x133x80xf32> to vector<133x80xf32>
    %86 = vector.shape_cast %83 : vector<133x80xf32> to vector<1x133x80xf32>
    tpu.vector_store %arg11[%c0_38, %c0_39, %c0_40], %86 {strides = array<i32>} : memref<1x133x80xf32, #tpu.memory_space<vmem>>, vector<1x133x80xf32>,
    return
  }
  func.func @transform_0(%arg0: i32) -> (i32, i32, i32) {
    %c0_i32 = arith.constant 0 : i32
    %c0_i32_0 = arith.constant 0 : i32
    %c0_i32_1 = arith.constant 0 : i32
    return %arg0, %c0_i32, %c0_i32_0 : i32, i32, i32
  }
  func.func @transform_1(%arg0: i32) -> (i32, i32) {
    %c0_i32 = arith.constant 0 : i32
    %c0_i32_0 = arith.constant 0 : i32
    %c0_i32_1 = arith.constant 0 : i32
    return %c0_i32, %c0_i32_0 : i32, i32
  }
  func.func @transform_2(%arg0: i32) -> (i32, i32) {
    %c0_i32 = arith.constant 0 : i32
    %c0_i32_0 = arith.constant 0 : i32
    %c0_i32_1 = arith.constant 0 : i32
    return %c0_i32, %c0_i32_0 : i32, i32
  }
  func.func @transform_3(%arg0: i32) -> (i32, i32) {
    %c0_i32 = arith.constant 0 : i32
    %c0_i32_0 = arith.constant 0 : i32
    %c0_i32_1 = arith.constant 0 : i32
    return %c0_i32, %c0_i32_0 : i32, i32
  }
  func.func @transform_4(%arg0: i32) -> (i32, i32) {
    %c0_i32 = arith.constant 0 : i32
    %c0_i32_0 = arith.constant 0 : i32
    %c0_i32_1 = arith.constant 0 : i32
    return %c0_i32, %c0_i32_0 : i32, i32
  }
  func.func @transform_5(%arg0: i32) -> (i32, i32) {
    %c0_i32 = arith.constant 0 : i32
    %c0_i32_0 = arith.constant 0 : i32
    %c0_i32_1 = arith.constant 0 : i32
    return %c0_i32, %c0_i32_0 : i32, i32
  }
  func.func @transform_6(%arg0: i32) -> (i32, i32) {
    %c0_i32 = arith.constant 0 : i32
    %c0_i32_0 = arith.constant 0 : i32
    %c0_i32_1 = arith.constant 0 : i32
    return %c0_i32, %c0_i32_0 : i32, i32
  }
  func.func @transform_7(%arg0: i32) -> (i32, i32) {
    %c0_i32 = arith.constant 0 : i32
    %c0_i32_0 = arith.constant 0 : i32
    %c0_i32_1 = arith.constant 0 : i32
    return %c0_i32, %c0_i32_0 : i32, i32
  }
  func.func @transform_8(%arg0: i32) -> (i32, i32) {
    %c0_i32 = arith.constant 0 : i32
    %c0_i32_0 = arith.constant 0 : i32
    %c0_i32_1 = arith.constant 0 : i32
    return %c0_i32, %c0_i32_0 : i32, i32
  }
  func.func @transform_9(%arg0: i32) -> (i32, i32) {
    %c0_i32 = arith.constant 0 : i32
    %c0_i32_0 = arith.constant 0 : i32
    %c0_i32_1 = arith.constant 0 : i32
    return %c0_i32, %c0_i32_0 : i32, i32
  }
  func.func @transform_10(%arg0: i32) -> (i32, i32, i32) {
    %c0_i32 = arith.constant 0 : i32
    %c0_i32_0 = arith.constant 0 : i32
    %c0_i32_1 = arith.constant 0 : i32
    return %arg0, %c0_i32, %c0_i32_0 : i32, i32, i32
  }
}

</mosaic_0001>

<bundles_post_ra>
// kernel: _lambda_.1
= control target key start
LH: loop header
LB: loop body
LE: loop exit
PB: predicated region body
PF: predicated region fallthrough
CT: control target
= control target key end

     0   :  { %s3405_s13 = smov 0   ;;  %s4504_s0 = inlined_call_operand.vmem [shape: f32[4,144,24], index: 0, kind: input, shape index: {}]   ;;  %s4505_s1 = inlined_call_operand.vmem [shape: f32[133,144], index: 1, kind: input, shape index: {}]   ;;  %s4506_s2 = inlined_call_operand.vmem [shape: f32[133,1], index: 2, kind: input, shape index: {}]   ;;  %s4507_s3 = inlined_call_operand.vmem [shape: f32[24,32], index: 3, kind: input, shape index: {}]   ;;  %s4508_s4 = inlined_call_operand.vmem [shape: f32[32,144], index: 4, kind: input, shape index: {}]   ;;  %s4509_s5 = inlined_call_operand.vmem [shape: f32[2,16], index: 5, kind: input, shape index: {}]   ;;  %s4510_s6 = inlined_call_operand.vmem [shape: f32[2,16], index: 6, kind: input, shape index: {}]   ;;  %s4511_s7 = inlined_call_operand.vmem [shape: f32[64,32], index: 7, kind: input, shape index: {}]   ;;  %s4512_s8 = inlined_call_operand.vmem [shape: f32[1,32], index: 8, kind: input, shape index: {}]   ;;  %s4513_s9 = inlined_call_operand.vmem [shape: f32[32,80], index: 9, kind: input, shape index: {}]   ;;  %s4514_s10 = inlined_call_operand.vmem [shape: f32[4,133,80], index: 10, kind: output, shape index: {}]  }
   0x1 LB: > { %s2759_s14 = sadd.s32 4294967295, %s3343_s13   ;;  %p2763_p0 = scmp.ge.s32.totalorder %s3343_s13, 1  ;;  %s3343_s13 = sphi %s3405_s13, %s20_s13  }
   0x2   : > { %p312_p1 = scmp.lt.s32.totalorder %s3343_s13, 5 }
   0x4   : > { %p313_p2 = pnand %p2763_p0, %p312_p1 }
   0x6   : > { %316 = sbr.rel (%p313_p2) target bundleno = 2115 (0x843), region = 60 }
   0xd   : > { %p350_p3 = scmp.lt.s32.totalorder %s2759_s14, 3  ;;  %v362_v0 = vld [vmem:[%s4505_s1 + $0x8] sm:$0xff]  ;;  %v364_v1 = vld [vmem:[%s4505_s1 + $0x18] sm:$0xff]  ;;  %vm542_vm0 = vcmask 130048   ;;  %v4517_v2 = vmov 0   ;;  %v440_v15 = vld [vmem:[%s4506_s2] sm:$0xff] }
   0xe   : > { %570 = vmatprep.subr.bf16.mxu0 %v4517_v2  ;;  %v414_v3 = vpack.c.bf16 %v364_v1, %v362_v0  ;;  %3062 = vset.pattern.permute.xlu0 %v4517_v2  ;;  %v441_v16 = vld [vmem:[%s4506_s2 + $0x8] sm:$0xff]  ;;  %v442_v17 = vld [vmem:[%s4506_s2 + $0x10] sm:$0xff]  ;;  %v443_v21 = vld [vmem:[%s4506_s2 + $0x18] sm:$0xff]  ;;  %vm691_vm1 = vcmask 195584   ;;  %vm972_vm2 = vcmask 1043456   ;;  %vm3347_vm3 = vmmov 0  }
   0xf   : > { %s4555_s14 = smov (!%p350_p3, %s2759_s14), 3  ;;  %3063 = vset.pattern.permute.xlu1 %v4517_v2  ;;  %459 = vperm.xlu0 %3062, %v440_v15   ;;  %v444_v22 = vld [vmem:[%s4506_s2 + $0x20] sm:$0xff]  ;;  %v445_v26 = vld [vmem:[%s4506_s2 + $0x28] sm:$0xff]  ;;  %v446_v27 = vld [vmem:[%s4506_s2 + $0x30] sm:$0xff]  ;;  %vm740_vm4 = vcmask 192512   ;;  %s3348_s28 = smov 64  }
  0x10   : > { %2766 = vmatprep.mubr.msk.bf16.mxu0 %vm542_vm0, %v414_v3  ;;  %s3047_s19 = smul.u32 144, %s4555_s14  ;;  %469 = vperm.xlu1 %3063, %v442_v17   ;;  %v447_v31 = vld [vmem:[%s4506_s2 + $0x38] sm:$0xff]  ;;  %v448_v32 = vld [vmem:[%s4506_s2 + $0x40] sm:$0xff]  ;;  %v449_v36 = vld [vmem:[%s4506_s2 + $0x48] sm:$0xff] }
  0x11   : > { %v450_v37 = vld [vmem:[%s4506_s2 + $0x50] sm:$0xff]  ;;  %v451_v41 = vld [vmem:[%s4506_s2 + $0x58] sm:$0xff]  ;;  %v452_v42 = vld [vmem:[%s4506_s2 + $0x60] sm:$0xff]  ;;  %s3048_s18 = smul.u32 136, %s4555_s14 }
  0x12   : > { %s3429_s22 = scalar_lea.vmem %s4504_s0, %s3047_s19  ;;  %v361_v44 = vld [vmem:[%s4505_s1] sm:$0xff]  ;;  %v363_v45 = vld [vmem:[%s4505_s1 + $0x10] sm:$0xff]  ;;  %v366_v46 = vld [vmem:[%s4505_s1 + $0x28] sm:$0xff] }
  0x13   : > { %v395_v4 = vld [vmem:[%s3429_s22] sm:$0xff]  ;;  %v396_v5 = vld [vmem:[%s3429_s22 + $0x8] sm:$0xff]  ;;  %v397_v6 = vld [vmem:[%s3429_s22 + $0x10] sm:$0xff]  ;;  %464 = vperm.xlu0 %3062, %v441_v16   ;;  %v413_v49 = vpack.c.bf16 %v363_v45, %v361_v44  ;;  %s4466_s21 = scalar_lea.vmem %s4514_s10, %s3048_s18 }
  0x14   : > { %v431_v7 = vpack.c.bf16 %v396_v5, %v395_v4  ;;  %v398_v8 = vld [vmem:[%s3429_s22 + $0x18] sm:$0xff]  ;;  %v399_v10 = vld [vmem:[%s3429_s22 + $0x20] sm:$0xff]  ;;  %v400_v11 = vld [vmem:[%s3429_s22 + $0x28] sm:$0xff]  ;;  %474 = vperm.xlu1 %3063, %v443_v21  }
  0x15   : > { %v432_v9 = vpack.c.bf16 %v398_v8, %v397_v6  ;;  %v433_v12 = vpack.c.bf16 %v400_v11, %v399_v10  ;;  %v401_v13 = vld [vmem:[%s3429_s22 + $0x30] sm:$0xff]  ;;  %v402_v14 = vld [vmem:[%s3429_s22 + $0x38] sm:$0xff]  ;;  %v403_v19 = vld [vmem:[%s3429_s22 + $0x40] sm:$0xff] }
  0x16   : > { %571 = vmatpush1.bf16.msra.mxu0 %v431_v7  ;;  %v434_v18 = vpack.c.bf16 %v402_v14, %v401_v13  ;;  %v404_v20 = vld [vmem:[%s3429_s22 + $0x48] sm:$0xff]  ;;  %v405_v24 = vld [vmem:[%s3429_s22 + $0x50] sm:$0xff]  ;;  %v406_v25 = vld [vmem:[%s3429_s22 + $0x58] sm:$0xff] }
  0x17   : > { %572 = vmatprep.subr.bf16.mxu0 %v4517_v2  ;;  %v435_v23 = vpack.c.bf16 %v404_v20, %v403_v19  ;;  %479 = vperm.xlu0 %3062, %v444_v22   ;;  %v436_v28 = vpack.c.bf16 %v406_v25, %v405_v24  ;;  %v407_v29 = vld [vmem:[%s3429_s22 + $0x60] sm:$0xff]  ;;  %v408_v30 = vld [vmem:[%s3429_s22 + $0x68] sm:$0xff]  ;;  %v409_v34 = vld [vmem:[%s3429_s22 + $0x70] sm:$0xff] }
  0x18   : > { %484 = vperm.xlu1 %3063, %v445_v26   ;;  %v437_v33 = vpack.c.bf16 %v408_v30, %v407_v29  ;;  %v410_v35 = vld [vmem:[%s3429_s22 + $0x78] sm:$0xff]  ;;  %v411_v39 = vld [vmem:[%s3429_s22 + $0x80] sm:$0xff]  ;;  %v412_v40 = vld [vmem:[%s3429_s22 + $0x88] sm:$0xff] }
  0x19   : > { %v438_v38 = vpack.c.bf16 %v410_v35, %v409_v34  ;;  %v439_v43 = vpack.c.bf16 %v412_v40, %v411_v39  ;;  %v368_v47 = vld [vmem:[%s4505_s1 + $0x38] sm:$0xff]  ;;  %v453_v48 = vld [vmem:[%s4506_s2 + $0x68] sm:$0xff]  ;;  %v454_v50 = vld [vmem:[%s4506_s2 + $0x70] sm:$0xff] }
  0x1a   : > { %573 = vmatpush1.bf16.msra.mxu0 %v432_v9  ;;  %v416_v51 = vpack.c.bf16 %v368_v47, %v366_v46  ;;  %v455_v52 = vld [vmem:[%s4506_s2 + $0x78] sm:$0xff]  ;;  %v456_v53 = vld [vmem:[%s4506_s2 + $0x80] sm:$0x1f]  ;;  %v367_v55 = vld [vmem:[%s4505_s1 + $0x30] sm:$0xff] }
  0x1b   : > { %574 = vmatprep.subr.bf16.mxu0 %v4517_v2  ;;  %489 = vperm.xlu0 %3062, %v446_v27   ;;  %v365_v54 = vld [vmem:[%s4505_s1 + $0x20] sm:$0xff]  ;;  %v370_v56 = vld [vmem:[%s4505_s1 + $0x48] sm:$0xff]  ;;  %v372_v57 = vld [vmem:[%s4505_s1 + $0x58] sm:$0xff] }
  0x1c   : > { %494 = vperm.xlu1 %3063, %v447_v31   ;;  %v415_v58 = vpack.c.bf16 %v367_v55, %v365_v54  ;;  %v418_v59 = vpack.c.bf16 %v372_v57, %v370_v56  ;;  %v369_v60 = vld [vmem:[%s4505_s1 + $0x40] sm:$0xff]  ;;  %v371_v61 = vld [vmem:[%s4505_s1 + $0x50] sm:$0xff]  ;;  %v374_v62 = vld [vmem:[%s4505_s1 + $0x68] sm:$0xff] }
  0x1d   : > { %v376_v63 = vld [vmem:[%s4505_s1 + $0x78] sm:$0xff]  ;;  %v417_v0 = vpack.c.bf16 %v371_v61, %v369_v60  ;;  %v373_v3 = vld [vmem:[%s4505_s1 + $0x60] sm:$0xff]  ;;  %v375_v4 = vld [vmem:[%s4505_s1 + $0x70] sm:$0xff] }
  0x1e   : > { %575 = vmatpush1.bf16.msra.mxu0 %v433_v12  ;;  %v420_v1 = vpack.c.bf16 %v376_v63, %v374_v62  ;;  %v378_v5 = vld [vmem:[%s4505_s1 + $0x88] sm:$0xff]  ;;  %v380_v6 = vld [vmem:[%s4505_s1 + $0x98] sm:$0xff]  ;;  %v419_v7 = vpack.c.bf16 %v375_v4, %v373_v3  ;;  %v377_v9 = vld [vmem:[%s4505_s1 + $0x80] sm:$0xff] }
  0x1f   : > { %576 = vmatprep.subr.bf16.mxu0 %v4517_v2  ;;  %499 = vperm.xlu0 %3062, %v448_v32   ;;  %v422_v8 = vpack.c.bf16 %v380_v6, %v378_v5  ;;  %v379_v10 = vld [vmem:[%s4505_s1 + $0x90] sm:$0xff]  ;;  %v382_v11 = vld [vmem:[%s4505_s1 + $0xa8] sm:$0xff]  ;;  %v384_v12 = vld [vmem:[%s4505_s1 + $0xb8] sm:$0xff] }
  0x20   : > { %504 = vperm.xlu1 %3063, %v449_v36   ;;  %v421_v13 = vpack.c.bf16 %v379_v10, %v377_v9  ;;  %v424_v14 = vpack.c.bf16 %v384_v12, %v382_v11  ;;  %v381_v15 = vld [vmem:[%s4505_s1 + $0xa0] sm:$0xff]  ;;  %v383_v16 = vld [vmem:[%s4505_s1 + $0xb0] sm:$0xff]  ;;  %v386_v17 = vld [vmem:[%s4505_s1 + $0xc8] sm:$0xff] }
  0x21   : > { %v423_v19 = vpack.c.bf16 %v383_v16, %v381_v15  ;;  %v385_v21 = vld [vmem:[%s4505_s1 + $0xc0] sm:$0xff]  ;;  %v387_v22 = vld [vmem:[%s4505_s1 + $0xd0] sm:$0xff]  ;;  %v392_v24 = vld [vmem:[%s4505_s1 + $0xf8] sm:$0xff] }
  0x22   : > { %577 = vmatpush1.bf16.msra.mxu0 %v434_v18  ;;  %v388_v18 = vld [vmem:[%s4505_s1 + $0xd8] sm:$0xff]  ;;  %v425_v25 = vpack.c.bf16 %v387_v22, %v385_v21  ;;  %v389_v27 = vld [vmem:[%s4505_s1 + $0xe0] sm:$0xff]  ;;  %v394_v29 = vld [vmem:[%s4505_s1 + $0x108] sm:$0x1f] }
  0x23   : > { %578 = vmatprep.subr.bf16.mxu0 %v4517_v2  ;;  %509 = vperm.xlu0 %3062, %v450_v37   ;;  %v426_v20 = vpack.c.bf16 %v388_v18, %v386_v17  ;;  %v430_v31 = vpack.c.bf16 %v394_v29, %v394_v29  ;;  %v393_v32 = vld [vmem:[%s4505_s1 + $0x100] sm:$0x1f] }
  0x24   : > { %514 = vperm.xlu1 %3063, %v451_v41  }
  0x26   : > { %579 = vmatpush1.bf16.msra.mxu0 %v435_v23  ;;  %v390_v23 = vld [vmem:[%s4505_s1 + $0xe8] sm:$0xff] }
  0x27   : > { %580 = vmatprep.subr.bf16.mxu0 %v4517_v2  ;;  %519 = vperm.xlu0 %3062, %v452_v42   ;;  %v428_v26 = vpack.c.bf16 %v392_v24, %v390_v23 }
  0x28   : > { %524 = vperm.xlu1 %3063, %v453_v48  }
  0x2a   : > { %581 = vmatpush1.bf16.msra.mxu0 %v436_v28  ;;  %v391_v28 = vld [vmem:[%s4505_s1 + $0xf0] sm:$0xff] }
  0x2b   : > { %582 = vmatprep.subr.bf16.mxu0 %v4517_v2  ;;  %529 = vperm.xlu0 %3062, %v454_v50   ;;  %v427_v30 = vpack.c.bf16 %v391_v28, %v389_v27 }
  0x2c   : > { %534 = vperm.xlu1 %3063, %v455_v52  }
  0x2e   : > { %583 = vmatpush1.bf16.msra.mxu0 %v437_v33  ;;  %v429_v33 = vpack.c.bf16 %v393_v32, %v393_v32 }
  0x2f   : > { %584 = vmatprep.subr.bf16.mxu0 %v4517_v2  ;;  %539 = vperm.xlu0 %3062, %v456_v53  }
  0x32   : > { %585 = vmatpush1.bf16.msra.mxu0 %v438_v38 }
  0x33   : > { %586 = vmatprep.subr.bf16.mxu0 %v4517_v2 }
  0x36   : > { %587 = vmatpush1.bf16.msra.mxu0 %v439_v43 }
  0x37   : > { %1904 = vmatprep.subr.bf16.mxu0 %v4517_v2 }
  0x39   : > { %603 = vmatmul.mubr.bf16.vlgmr.msra.gmra.mrb[0].mxu0 %v413_v49 }
  0x3a   : > { %2767 = vmatprep.mubr.msk.bf16.mxu0 %vm542_vm0, %v416_v51 }
  0x41   : > { %611 = vmatmul.mubr.bf16.gmra.mrb[4].mxu0 %v415_v58 }
  0x42   : > { %2768 = vmatprep.mubr.msk.bf16.mxu0 %vm542_vm0, %v418_v59 }
  0x49   : > { %619 = vmatmul.mubr.bf16.gmra.mrb[8].mxu0 %v417_v0 }
  0x4a   : > { %2769 = vmatprep.mubr.msk.bf16.mxu0 %vm542_vm0, %v420_v1 }
  0x51   : > { %627 = vmatmul.mubr.bf16.gmra.mrb[12].mxu0 %v419_v7 }
  0x52   : > { %2770 = vmatprep.mubr.msk.bf16.mxu0 %vm542_vm0, %v422_v8 }
  0x59   : > { %635 = vmatmul.mubr.bf16.gmra.mrb[16].mxu0 %v421_v13 }
  0x5a   : > { %2771 = vmatprep.mubr.msk.bf16.mxu0 %vm542_vm0, %v424_v14 }
  0x61   : > { %643 = vmatmul.mubr.bf16.gmra.mrb[20].mxu0 %v423_v19 }
  0x62   : > { %2772 = vmatprep.mubr.msk.bf16.mxu0 %vm542_vm0, %v426_v20 }
  0x69   : > { %651 = vmatmul.mubr.bf16.gmra.mrb[24].mxu0 %v425_v25 }
  0x6a   : > { %2773 = vmatprep.mubr.msk.bf16.mxu0 %vm542_vm0, %v428_v26 }
  0x71   : > { %659 = vmatmul.mubr.bf16.gmra.mrb[28].mxu0 %v427_v30 }
  0x72   : > { %2774 = vmatprep.mubr.msk.bf16.mxu0 %vm542_vm0, %v430_v31 }
  0x79   : > { %667 = vmatmul.mubr.bf16.gmra.mrb[32].mxu0 %v429_v33 }
  0x7a   : > { %1936 = vmatprep.mubr.bf16.mxu0 %v4517_v2 }
  0x8e   : > { %v460_v34 = vpop.permute.xlu0 %459 }
  0x8f   : > { %v470_v43 = vpop.permute.xlu1 %469 }
  0x92   : > { %v465_v38 = vpop.permute.xlu0 %464 }
  0x93   : > { %v475_v50 = vpop.permute.xlu1 %474 }
  0x96   : > { %v480_v58 = vpop.permute.xlu0 %479 }
  0x97   : > { %v485_v62 = vpop.permute.xlu1 %484 }
  0x9a   : > { %v490_v7 = vpop.permute.xlu0 %489 }
  0x9b   : > { %v495_v11 = vpop.permute.xlu1 %494 }
  0x9e   : > { %v500_v19 = vpop.permute.xlu0 %499 }
  0x9f   : > { %v505_v23 = vpop.permute.xlu1 %504 }
  0xa2   : > { %v510_v31 = vpop.permute.xlu0 %509 }
 0x10c   : > { %v604_v35 = vpop.f32.mrb[0].mxu0 }
 0x10d   : > { %v3614_v36 = vadd.f32 %v604_v35, %v460_v34  ;;  %v606_v37 = vpop.f32.mrb[1].mxu0  ;;  %v515_v35 = vpop.permute.xlu1 %514 }
 0x10e   : > { %v607_v39 = vpop.f32.mrb[2].mxu0 }
 0x10f   : > { %v3616_v40 = vadd.f32 %v607_v39, %v465_v38  ;;  %v609_v41 = vpop.f32.mrb[3].mxu0  ;;  %v674_v42 = vmul.f32 %v3614_v36, %v3614_v36 }
 0x111   : > { %v692_v44 = vsel %vm691_vm1, %v674_v42, 0.0  ;;  %v675_v45 = vmul.f32 %v3616_v40, %v3616_v40 }
 0x112   : > { %693 = vadd.xlane.f32.xlu1 %v692_v44 }
 0x113   : > { %v695_v46 = vsel %vm691_vm1, %v675_v45, 0.0  ;;  %v931_v45 = vld [vmem:[%s4507_s3] sm:$0xff] }
 0x114   : > { %v612_v47 = vpop.f32.mrb[4].mxu0  ;;  %696 = vadd.xlane.f32.xlu0 %v695_v46  ;;  %v932_v46 = vld [vmem:[%s4507_s3 + $0x8] sm:$0xff] }
 0x115   : > { %v3624_v48 = vadd.f32 %v612_v47, %v470_v43  ;;  %v614_v49 = vpop.f32.mrb[5].mxu0  ;;  %v520_v47 = vpop.permute.xlu0 %519 }
 0x116   : > { %v615_v51 = vpop.f32.mrb[6].mxu0 }
 0x117   : > { %v3626_v52 = vadd.f32 %v615_v51, %v475_v50  ;;  %v617_v53 = vpop.f32.mrb[7].mxu0  ;;  %v676_v54 = vmul.f32 %v3624_v48, %v3624_v48  ;;  %v943_v50 = vpack.c.bf16 %v932_v46, %v931_v45 }
 0x119   : > { %v698_v55 = vsel %vm691_vm1, %v676_v54, 0.0  ;;  %v677_v56 = vmul.f32 %v3626_v52, %v3626_v52  ;;  %v4515_v54 = vmov 0.0  }
 0x11a   : > { %699 = vadd.xlane.f32.xlu0 %v698_v55  ;;  %2905 = vmatprep.subr.bf16.mxu1 %v4515_v54  ;;  %v525_v55 = vpop.permute.xlu1 %524 }
 0x11b   : > { %v701_v57 = vsel %vm691_vm1, %v677_v56, 0.0  ;;  %2906 = vmatpush3.bf16.msra.mxu1 %v943_v50  ;;  %2909 = vmatprep.mubr.msk.bf16.mxu1 %vm3347_vm3, %v4515_v54 }
 0x11c   : > { %v620_v59 = vpop.f32.mrb[8].mxu0  ;;  %702 = vadd.xlane.f32.xlu1 %v701_v57  ;;  %v933_v57 = vld [vmem:[%s4507_s3 + $0x10] sm:$0xff]  ;;  %2907 = vmatprep.subr.bf16.mxu1 %v4515_v54 }
 0x11d   : > { %v3634_v60 = vadd.f32 %v620_v59, %v480_v58  ;;  %v622_v61 = vpop.f32.mrb[9].mxu0 }
 0x11e   : > { %v623_v63 = vpop.f32.mrb[10].mxu0 }
 0x11f   : > { %v3636_v0 = vadd.f32 %v623_v63, %v485_v62  ;;  %v625_v1 = vpop.f32.mrb[11].mxu0  ;;  %v678_v3 = vmul.f32 %v3634_v60, %v3634_v60  ;;  %v944_v62 = vpack.c.bf16 %v933_v57, %v933_v57 }
 0x121   : > { %v704_v4 = vsel %vm691_vm1, %v678_v3, 0.0  ;;  %v679_v5 = vmul.f32 %v3636_v0, %v3636_v0  ;;  %v974_v3 = vsel %vm972_vm2, %v944_v62, 0 }
 0x122   : > { %705 = vadd.xlane.f32.xlu0 %v704_v4  ;;  %2908 = vmatpush3.bf16.msra.mxu1 %v974_v3 }
 0x123   : > { %v707_v6 = vsel %vm691_vm1, %v679_v5, 0.0  ;;  %v530_v5 = vpop.permute.xlu0 %529 }
 0x124   : > { %v628_v8 = vpop.f32.mrb[12].mxu0  ;;  %708 = vadd.xlane.f32.xlu1 %v707_v6 }
 0x125   : > { %v3644_v9 = vadd.f32 %v628_v8, %v490_v7  ;;  %v630_v10 = vpop.f32.mrb[13].mxu0 }
 0x126   : > { %v631_v12 = vpop.f32.mrb[14].mxu0  ;;  %v535_v10 = vpop.permute.xlu1 %534 }
 0x127   : > { %v3646_v13 = vadd.f32 %v631_v12, %v495_v11  ;;  %v633_v14 = vpop.f32.mrb[15].mxu0  ;;  %v680_v15 = vmul.f32 %v3644_v9, %v3644_v9 }
 0x129   : > { %v710_v16 = vsel %vm691_vm1, %v680_v15, 0.0  ;;  %v681_v17 = vmul.f32 %v3646_v13, %v3646_v13 }
 0x12a   : > { %711 = vadd.xlane.f32.xlu0 %v710_v16 }
 0x12b   : > { %v713_v18 = vsel %vm691_vm1, %v681_v17, 0.0 }
 0x12c   : > { %v636_v20 = vpop.f32.mrb[16].mxu0  ;;  %714 = vadd.xlane.f32.xlu1 %v713_v18 }
 0x12d   : > { %v3654_v21 = vadd.f32 %v636_v20, %v500_v19  ;;  %v638_v22 = vpop.f32.mrb[17].mxu0  ;;  %v540_v19 = vpop.permute.xlu0 %539 }
 0x12e   : > { %v639_v24 = vpop.f32.mrb[18].mxu0 }
 0x12f   : > { %v3656_v25 = vadd.f32 %v639_v24, %v505_v23  ;;  %v641_v26 = vpop.f32.mrb[19].mxu0  ;;  %v682_v27 = vmul.f32 %v3654_v21, %v3654_v21 }
 0x131   : > { %v716_v28 = vsel %vm691_vm1, %v682_v27, 0.0  ;;  %v683_v29 = vmul.f32 %v3656_v25, %v3656_v25 }
 0x132   : > { %717 = vadd.xlane.f32.xlu0 %v716_v28 }
 0x133   : > { %v719_v30 = vsel %vm691_vm1, %v683_v29, 0.0 }
 0x134   : > { %v644_v32 = vpop.f32.mrb[20].mxu0  ;;  %720 = vadd.xlane.f32.xlu1 %v719_v30 }
 0x135   : > { %v3664_v33 = vadd.f32 %v644_v32, %v510_v31  ;;  %v646_v34 = vpop.f32.mrb[21].mxu0 }
 0x136   : > { %v647_v37 = vpop.f32.mrb[22].mxu0 }
 0x137   : > { %v3666_v38 = vadd.f32 %v647_v37, %v515_v35  ;;  %v649_v39 = vpop.f32.mrb[23].mxu0  ;;  %v684_v41 = vmul.f32 %v3664_v33, %v3664_v33 }
 0x139   : > { %v722_v42 = vsel %vm691_vm1, %v684_v41, 0.0  ;;  %v685_v43 = vmul.f32 %v3666_v38, %v3666_v38 }
 0x13a   : > { %723 = vadd.xlane.f32.xlu0 %v722_v42 }
 0x13b   : > { %v725_v44 = vsel %vm691_vm1, %v685_v43, 0.0 }
 0x13c   : > { %v652_v49 = vpop.f32.mrb[24].mxu0  ;;  %726 = vadd.xlane.f32.xlu1 %v725_v44 }
 0x13d   : > { %v3680_v51 = vadd.f32 %v652_v49, %v520_v47  ;;  %v654_v53 = vpop.f32.mrb[25].mxu0 }
 0x13e   : > { %v655_v56 = vpop.f32.mrb[26].mxu0 }
 0x13f   : > { %v3686_v58 = vadd.f32 %v655_v56, %v525_v55  ;;  %v657_v59 = vpop.f32.mrb[27].mxu0  ;;  %v686_v61 = vmul.f32 %v3680_v51, %v3680_v51 }
 0x141   : > { %v728_v63 = vsel %vm691_vm1, %v686_v61, 0.0  ;;  %v687_v1 = vmul.f32 %v3686_v58, %v3686_v58 }
 0x142   : > { %729 = vadd.xlane.f32.xlu0 %v728_v63 }
 0x143   : > { %v731_v4 = vsel %vm691_vm1, %v687_v1, 0.0 }
 0x144   : > { %v660_v6 = vpop.f32.mrb[28].mxu0  ;;  %732 = vadd.xlane.f32.xlu1 %v731_v4 }
 0x145   : > { %v3697_v7 = vadd.f32 %v660_v6, %v530_v5  ;;  %v662_v8 = vpop.f32.mrb[29].mxu0 }
 0x146   : > { %v663_v11 = vpop.f32.mrb[30].mxu0 }
 0x147   : > { %v3699_v12 = vadd.f32 %v663_v11, %v535_v10  ;;  %v665_v14 = vpop.f32.mrb[31].mxu0  ;;  %v688_v15 = vmul.f32 %v3697_v7, %v3697_v7 }
 0x149   : > { %v734_v16 = vsel %vm691_vm1, %v688_v15, 0.0  ;;  %v689_v17 = vmul.f32 %v3699_v12, %v3699_v12 }
 0x14a   : > { %735 = vadd.xlane.f32.xlu0 %v734_v16 }
 0x14b   : > { %v737_v18 = vsel %vm691_vm1, %v689_v17, 0.0 }
 0x14c   : > { %v668_v20 = vpop.f32.mrb[32].mxu0  ;;  %738 = vadd.xlane.f32.xlu1 %v737_v18 }
 0x14d   : > { %v3707_v22 = vadd.f32 %v668_v20, %v540_v19  ;;  %v670_v23 = vpop.f32.mrb[33].mxu0 }
 0x14e   : > { %v671_v24 = vpop.f32.mrb[34].mxu0 }
 0x14f   : > { %v672_v26 = vpop.f32.mrb[35].mxu0  ;;  %v690_v27 = vmul.f32 %v3707_v22, %v3707_v22 }
 0x151   : > { %v741_v28 = vsel %vm740_vm4, %v690_v27, 0.0 }
 0x152   : > { %742 = vadd.xlane.f32.xlu0 %v741_v28 }
 0x19f   : > { %v694_v29 = vpop.xlane.xlu1 %693 }
 0x1a0   : > { %3064 = vrsqrt.f32 %v694_v29  ;;  %vm746_vm5 = vcmp.eq.f32.partialorder %v694_v29, inf  ;;  %v749_v39 = vand.u32 2147483648, %v694_v29  ;;  %vm748_vm6 = vcmp.eq.f32.partialorder %v694_v29, 0.0 }
 0x1a1   : > { %v697_v30 = vpop.xlane.xlu0 %696 }
 0x1a2   : > { %3066 = vrsqrt.f32 %v697_v30  ;;  %vm753_vm7 = vcmp.eq.f32.partialorder %v697_v30, inf  ;;  %v756_v44 = vand.u32 2147483648, %v697_v30  ;;  %vm755_vm8 = vcmp.eq.f32.partialorder %v697_v30, 0.0 }
 0x1a7   : > { %v700_v31 = vpop.xlane.xlu0 %699 }
 0x1a8   : > { %3068 = vrsqrt.f32 %v700_v31  ;;  %vm760_vm9 = vcmp.eq.f32.partialorder %v700_v31, inf  ;;  %v763_v62 = vand.u32 2147483648, %v700_v31  ;;  %vm762_vm10 = vcmp.eq.f32.partialorder %v700_v31, 0.0 }
 0x1a9   : > { %v703_v32 = vpop.xlane.xlu1 %702 }
 0x1aa   : > { %v3065_v34 = vpop.eup %3064  ;;  %3070 = vrsqrt.f32 %v703_v32  ;;  %vm767_vm11 = vcmp.eq.f32.partialorder %v703_v32, inf  ;;  %v770_v4 = vand.u32 2147483648, %v703_v32  ;;  %vm769_vm12 = vcmp.eq.f32.partialorder %v703_v32, 0.0 }
 0x1ab   : > { %v745_v35 = vmul.f32 %v3065_v34, %v694_v29 }
 0x1ac   : > { %v3067_v37 = vpop.eup %3066 }
 0x1ad   : > { %v747_v41 = vsel %vm746_vm5, %v694_v29, %v745_v35  ;;  %v752_v42 = vmul.f32 %v3067_v37, %v697_v30 }
 0x1ae   : > { %v750_v43 = vsel %vm748_vm6, %v749_v39, %v747_v41 }
 0x1af   : > { %v863_v45 = vmul.f32 0.20412415, %v750_v43  ;;  %v754_v46 = vsel %vm753_vm7, %v697_v30, %v752_v42  ;;  %v706_v47 = vpop.xlane.xlu0 %705 }
 0x1b0   : > { %v757_v49 = vsel %vm755_vm8, %v756_v44, %v754_v46  ;;  %3072 = vrsqrt.f32 %v706_v47  ;;  %vm774_vm13 = vcmp.eq.f32.partialorder %v706_v47, inf  ;;  %v777_v20 = vand.u32 2147483648, %v706_v47 }
 0x1b1   : > { %v880_v50 = vmax.f32 %v863_v45, 1e-05  ;;  %v864_v53 = vmul.f32 0.20412415, %v757_v49  ;;  %v709_v55 = vpop.xlane.xlu1 %708  ;;  %vm776_vm14 = vcmp.eq.f32.partialorder %v706_v47, 0.0 }
 0x1b2   : > { %v3069_v56 = vpop.eup %3068  ;;  %3074 = vrsqrt.f32 %v709_v55  ;;  %vm781_vm15 = vcmp.eq.f32.partialorder %v709_v55, inf  ;;  %v784_v28 = vand.u32 2147483648, %v709_v55  ;;  %vm783_vm2 = vcmp.eq.f32.partialorder %v709_v55, 0.0 }
 0x1b3   : > { %v881_v57 = vmax.f32 %v864_v53, 1e-05  ;;  %v759_v59 = vmul.f32 %v3069_v56, %v700_v31  ;;  %3076 = vrcp.f32 %v880_v50 }
 0x1b4   : > { %v3071_v61 = vpop.eup %3070 }
 0x1b5   : > { %3078 = vrcp.f32 %v881_v57  ;;  %v761_v63 = vsel %vm760_vm9, %v700_v31, %v759_v59  ;;  %v766_v1 = vmul.f32 %v3071_v61, %v703_v32 }
 0x1b6   : > { %v764_v3 = vsel %vm762_vm10, %v763_v62, %v761_v63 }
 0x1b7   : > { %v865_v5 = vmul.f32 0.20412415, %v764_v3  ;;  %v768_v6 = vsel %vm767_vm11, %v703_v32, %v766_v1  ;;  %v712_v8 = vpop.xlane.xlu0 %711 }
 0x1b8   : > { %v771_v10 = vsel %vm769_vm12, %v770_v4, %v768_v6  ;;  %3080 = vrsqrt.f32 %v712_v8  ;;  %vm788_vm4 = vcmp.eq.f32.partialorder %v712_v8, inf  ;;  %v791_v49 = vand.u32 2147483648, %v712_v8 }
 0x1b9   : > { %v882_v11 = vmax.f32 %v865_v5, 1e-05  ;;  %v866_v14 = vmul.f32 0.20412415, %v771_v10  ;;  %v715_v15 = vpop.xlane.xlu1 %714  ;;  %vm790_vm5 = vcmp.eq.f32.partialorder %v712_v8, 0.0 }
 0x1ba   : > { %v3073_v16 = vpop.eup %3072  ;;  %3082 = vrsqrt.f32 %v715_v15  ;;  %vm795_vm6 = vcmp.eq.f32.partialorder %v715_v15, inf  ;;  %vm797_vm7 = vcmp.eq.f32.partialorder %v715_v15, 0.0 }
 0x1bb   : > { %v883_v17 = vmax.f32 %v866_v14, 1e-05  ;;  %v773_v18 = vmul.f32 %v3073_v16, %v706_v47  ;;  %3084 = vrcp.f32 %v882_v11 }
 0x1bc   : > { %v3075_v19 = vpop.eup %3074 }
 0x1bd   : > { %3086 = vrcp.f32 %v883_v17  ;;  %v775_v23 = vsel %vm774_vm13, %v706_v47, %v773_v18  ;;  %v780_v24 = vmul.f32 %v3075_v19, %v709_v55  ;;  %v3077_v26 = vpop.eup %3076 }
 0x1be   : > { %v778_v27 = vsel %vm776_vm14, %v777_v20, %v775_v23  ;;  %v914_v41 = vmul.f32 %v3077_v26, %v3614_v36  ;;  %v798_v36 = vand.u32 2147483648, %v715_v15 }
 0x1bf   : > { %v3079_v29 = vpop.eup %3078  ;;  %v867_v30 = vmul.f32 0.20412415, %v778_v27  ;;  %v782_v31 = vsel %vm781_vm15, %v709_v55, %v780_v24  ;;  %v718_v32 = vpop.xlane.xlu0 %717 }
 0x1c0   : > { %v785_v34 = vsel %vm783_vm2, %v784_v28, %v782_v31  ;;  %3088 = vrsqrt.f32 %v718_v32  ;;  %v915_v42 = vmul.f32 %v3079_v29, %v3616_v40  ;;  %vm802_vm8 = vcmp.eq.f32.partialorder %v718_v32, inf }
 0x1c1   : > { %v884_v35 = vmax.f32 %v867_v30, 1e-05  ;;  %v868_v37 = vmul.f32 0.20412415, %v785_v34  ;;  %v721_v39 = vpop.xlane.xlu1 %720  ;;  %v805_v16 = vand.u32 2147483648, %v718_v32  ;;  %vm804_vm9 = vcmp.eq.f32.partialorder %v718_v32, 0.0 }
 0x1c2   : > { %v3081_v43 = vpop.eup %3080  ;;  %3090 = vrsqrt.f32 %v721_v39  ;;  %v934_v46 = vpack.c.bf16 %v915_v42, %v914_v41  ;;  %vm809_vm10 = vcmp.eq.f32.partialorder %v721_v39, inf  ;;  %vm811_vm11 = vcmp.eq.f32.partialorder %v721_v39, 0.0 }
 0x1c3   : > { %v885_v44 = vmax.f32 %v868_v37, 1e-05  ;;  %v787_v45 = vmul.f32 %v3081_v43, %v712_v8  ;;  %3092 = vrcp.f32 %v884_v35 }
 0x1c4   : > { %v3083_v47 = vpop.eup %3082  ;;  %2910 = vmatmul.mubr.msk.bf16.vlgmr.msra.gmra.mrb[0].mxu1 %vm691_vm1, %v934_v46 }
 0x1c5   : > { %3094 = vrcp.f32 %v885_v44  ;;  %v789_v50 = vsel %vm788_vm4, %v712_v8, %v787_v45  ;;  %v794_v53 = vmul.f32 %v3083_v47, %v715_v15  ;;  %v3085_v55 = vpop.eup %3084  ;;  %2913 = vmatprep.mubr.msk.bf16.mxu1 %vm3347_vm3, %v4515_v54 }
 0x1c6   : > { %v792_v56 = vsel %vm790_vm5, %v791_v49, %v789_v50  ;;  %v916_v4 = vmul.f32 %v3085_v55, %v3624_v48  ;;  %v812_v48 = vand.u32 2147483648, %v721_v39 }
 0x1c7   : > { %v3087_v40 = vpop.eup %3086  ;;  %v869_v57 = vmul.f32 0.20412415, %v792_v56  ;;  %v796_v59 = vsel %vm795_vm6, %v715_v15, %v794_v53  ;;  %v724_v61 = vpop.xlane.xlu0 %723 }
 0x1c8   : > { %v799_v62 = vsel %vm797_vm7, %v798_v36, %v796_v59  ;;  %3096 = vrsqrt.f32 %v724_v61  ;;  %v917_v5 = vmul.f32 %v3087_v40, %v3626_v52  ;;  %vm816_vm12 = vcmp.eq.f32.partialorder %v724_v61, inf }
 0x1c9   : > { %v886_v63 = vmax.f32 %v869_v57, 1e-05  ;;  %v870_v1 = vmul.f32 0.20412415, %v799_v62  ;;  %v727_v3 = vpop.xlane.xlu1 %726  ;;  %v819_v42 = vand.u32 2147483648, %v724_v61  ;;  %vm818_vm13 = vcmp.eq.f32.partialorder %v724_v61, 0.0 }
 0x1ca   : > { %v3089_v6 = vpop.eup %3088  ;;  %3098 = vrsqrt.f32 %v727_v3  ;;  %v935_v11 = vpack.c.bf16 %v917_v5, %v916_v4  ;;  %vm823_vm14 = vcmp.eq.f32.partialorder %v727_v3, inf  ;;  %vm825_vm15 = vcmp.eq.f32.partialorder %v727_v3, 0.0 }
 0x1cb   : > { %v887_v8 = vmax.f32 %v870_v1, 1e-05  ;;  %v801_v10 = vmul.f32 %v3089_v6, %v718_v32  ;;  %3100 = vrcp.f32 %v886_v63 }
 0x1cc   : > { %v3091_v14 = vpop.eup %3090  ;;  %2914 = vmatmul.mubr.msk.bf16.gmra.mrb[4].mxu1 %vm691_vm1, %v935_v11 }
 0x1cd   : > { %3102 = vrcp.f32 %v887_v8  ;;  %v803_v15 = vsel %vm802_vm8, %v718_v32, %v801_v10  ;;  %v808_v17 = vmul.f32 %v3091_v14, %v721_v39  ;;  %v3093_v18 = vpop.eup %3092  ;;  %2917 = vmatprep.mubr.msk.bf16.mxu1 %vm3347_vm3, %v4515_v54 }
 0x1ce   : > { %v806_v19 = vsel %vm804_vm9, %v805_v16, %v803_v15  ;;  %v918_v30 = vmul.f32 %v3093_v18, %v3634_v60  ;;  %v826_v60 = vand.u32 2147483648, %v727_v3 }
 0x1cf   : > { %v3095_v52 = vpop.eup %3094  ;;  %v871_v20 = vmul.f32 0.20412415, %v806_v19  ;;  %v810_v23 = vsel %vm809_vm10, %v721_v39, %v808_v17  ;;  %v730_v24 = vpop.xlane.xlu0 %729 }
 0x1d0   : > { %v813_v26 = vsel %vm811_vm11, %v812_v48, %v810_v23  ;;  %3104 = vrsqrt.f32 %v730_v24  ;;  %v919_v31 = vmul.f32 %v3095_v52, %v3636_v0  ;;  %vm830_vm2 = vcmp.eq.f32.partialorder %v730_v24, inf }
 0x1d1   : > { %v888_v27 = vmax.f32 %v871_v20, 1e-05  ;;  %v872_v28 = vmul.f32 0.20412415, %v813_v26  ;;  %v733_v29 = vpop.xlane.xlu1 %732  ;;  %v833_v1 = vand.u32 2147483648, %v730_v24  ;;  %vm832_vm4 = vcmp.eq.f32.partialorder %v730_v24, 0.0 }
 0x1d2   : > { %v3097_v32 = vpop.eup %3096  ;;  %3106 = vrsqrt.f32 %v733_v29  ;;  %v936_v37 = vpack.c.bf16 %v919_v31, %v918_v30  ;;  %vm837_vm5 = vcmp.eq.f32.partialorder %v733_v29, inf  ;;  %vm839_vm6 = vcmp.eq.f32.partialorder %v733_v29, 0.0 }
 0x1d3   : > { %v889_v34 = vmax.f32 %v872_v28, 1e-05  ;;  %v815_v35 = vmul.f32 %v3097_v32, %v724_v61  ;;  %3108 = vrcp.f32 %v888_v27 }
 0x1d4   : > { %v3099_v41 = vpop.eup %3098  ;;  %2918 = vmatmul.mubr.msk.bf16.gmra.mrb[8].mxu1 %vm691_vm1, %v936_v37 }
 0x1d5   : > { %3110 = vrcp.f32 %v889_v34  ;;  %v817_v39 = vsel %vm816_vm12, %v724_v61, %v815_v35  ;;  %v822_v43 = vmul.f32 %v3099_v41, %v727_v3  ;;  %v3101_v44 = vpop.eup %3100  ;;  %2921 = vmatprep.mubr.msk.bf16.mxu1 %vm3347_vm3, %v4515_v54 }
 0x1d6   : > { %v820_v45 = vsel %vm818_vm13, %v819_v42, %v817_v39  ;;  %v920_v36 = vmul.f32 %v3101_v44, %v3644_v9  ;;  %v840_v9 = vand.u32 2147483648, %v733_v29  ;;  %vm1146_vm13 = vcmask 258048  }
 0x1d7   : > { %v3103_v0 = vpop.eup %3102  ;;  %v873_v46 = vmul.f32 0.20412415, %v820_v45  ;;  %v824_v47 = vsel %vm823_vm14, %v727_v3, %v822_v43  ;;  %v736_v49 = vpop.xlane.xlu0 %735 }
 0x1d8   : > { %v827_v50 = vsel %vm825_vm15, %v826_v60, %v824_v47  ;;  %3112 = vrsqrt.f32 %v736_v49  ;;  %v921_v40 = vmul.f32 %v3103_v0, %v3646_v13  ;;  %vm844_vm7 = vcmp.eq.f32.partialorder %v736_v49, inf }
 0x1d9   : > { %v890_v53 = vmax.f32 %v873_v46, 1e-05  ;;  %v874_v55 = vmul.f32 0.20412415, %v827_v50  ;;  %v739_v56 = vpop.xlane.xlu1 %738  ;;  %vm846_vm8 = vcmp.eq.f32.partialorder %v736_v49, 0.0 }
 0x1da   : > { %v3105_v57 = vpop.eup %3104  ;;  %3114 = vrsqrt.f32 %v739_v56  ;;  %v937_v62 = vpack.c.bf16 %v921_v40, %v920_v36  ;;  %vm851_vm9 = vcmp.eq.f32.partialorder %v739_v56, inf  ;;  %vm853_vm10 = vcmp.eq.f32.partialorder %v739_v56, 0.0 }
 0x1db   : > { %3116 = vrcp.f32 %v890_v53  ;;  %v891_v59 = vmax.f32 %v874_v55, 1e-05  ;;  %v829_v61 = vmul.f32 %v3105_v57, %v730_v24 }
 0x1dc   : > { %v3107_v63 = vpop.eup %3106  ;;  %2922 = vmatmul.mubr.msk.bf16.gmra.mrb[12].mxu1 %vm691_vm1, %v937_v62 }
 0x1dd   : > { %3118 = vrcp.f32 %v891_v59  ;;  %v831_v3 = vsel %vm830_vm2, %v730_v24, %v829_v61  ;;  %v836_v4 = vmul.f32 %v3107_v63, %v733_v29  ;;  %v3109_v5 = vpop.eup %3108  ;;  %2925 = vmatprep.mubr.msk.bf16.mxu1 %vm3347_vm3, %v4515_v54  ;;  %v847_v24 = vand.u32 2147483648, %v736_v49  ;;  %v1337_v61 = vld [vmem:[%s4508_s4] sm:$0xff] }
 0x1de   : > { %v834_v6 = vsel %vm832_vm4, %v833_v1, %v831_v3  ;;  %v922_v17 = vmul.f32 %v3109_v5, %v3654_v21  ;;  %v854_v21 = vand.u32 2147483648, %v739_v56 }
 0x1df   : > { %v3111_v13 = vpop.eup %3110  ;;  %v875_v8 = vmul.f32 0.20412415, %v834_v6  ;;  %v838_v10 = vsel %vm837_vm5, %v733_v29, %v836_v4  ;;  %v743_v11 = vpop.xlane.xlu0 %742 }
 0x1e0   : > { %v841_v14 = vsel %vm839_vm6, %v840_v9, %v838_v10  ;;  %3120 = vrsqrt.f32 %v743_v11  ;;  %v923_v18 = vmul.f32 %v3111_v13, %v3656_v25  ;;  %vm858_vm11 = vcmp.eq.f32.partialorder %v743_v11, inf }
 0x1e1   : > { %v892_v16 = vmax.f32 %v875_v8, 1e-05  ;;  %v876_v15 = vmul.f32 0.20412415, %v841_v14  ;;  %v861_v45 = vand.u32 2147483648, %v743_v11  ;;  %vm860_vm12 = vcmp.eq.f32.partialorder %v743_v11, 0.0 }
 0x1e2   : > { %v3113_v19 = vpop.eup %3112  ;;  %v938_v20 = vpack.c.bf16 %v923_v18, %v922_v17 }
 0x1e3   : > { %3122 = vrcp.f32 %v892_v16  ;;  %v893_v48 = vmax.f32 %v876_v15, 1e-05  ;;  %v843_v52 = vmul.f32 %v3113_v19, %v736_v49 }
 0x1e4   : > { %v3115_v23 = vpop.eup %3114  ;;  %2926 = vmatmul.mubr.msk.bf16.gmra.mrb[16].mxu1 %vm691_vm1, %v938_v20 }
 0x1e5   : > { %v3117_v26 = vpop.eup %3116  ;;  %3124 = vrcp.f32 %v893_v48  ;;  %v845_v27 = vsel %vm844_vm7, %v736_v49, %v843_v52  ;;  %v850_v28 = vmul.f32 %v3115_v23, %v739_v56  ;;  %2929 = vmatprep.mubr.msk.bf16.mxu1 %vm3347_vm3, %v4515_v54 }
 0x1e6   : > { %v848_v29 = vsel %vm846_vm8, %v847_v24, %v845_v27  ;;  %v924_v34 = vmul.f32 %v3117_v26, %v3664_v33 }
 0x1e7   : > { %v3119_v25 = vpop.eup %3118  ;;  %v877_v30 = vmul.f32 0.20412415, %v848_v29  ;;  %v852_v31 = vsel %vm851_vm9, %v739_v56, %v850_v28 }
 0x1e8   : > { %v855_v32 = vsel %vm853_vm10, %v854_v21, %v852_v31  ;;  %v925_v35 = vmul.f32 %v3119_v25, %v3666_v38 }
 0x1e9   : > { %v894_v37 = vmax.f32 %v877_v30, 1e-05  ;;  %v878_v41 = vmul.f32 0.20412415, %v855_v32 }
 0x1ea   : > { %v3121_v42 = vpop.eup %3120  ;;  %v939_v39 = vpack.c.bf16 %v925_v35, %v924_v34 }
 0x1eb   : > { %3126 = vrcp.f32 %v894_v37  ;;  %v895_v43 = vmax.f32 %v878_v41, 1e-05  ;;  %v857_v44 = vmul.f32 %v3121_v42, %v743_v11 }
 0x1ec   : > { %2930 = vmatmul.mubr.msk.bf16.gmra.mrb[20].mxu1 %vm691_vm1, %v939_v39 }
 0x1ed   : > { %v3123_v60 = vpop.eup %3122  ;;  %3128 = vrcp.f32 %v895_v43  ;;  %v859_v0 = vsel %vm858_vm11, %v743_v11, %v857_v44  ;;  %2933 = vmatprep.mubr.msk.bf16.mxu1 %vm3347_vm3, %v4515_v54 }
 0x1ee   : > { %v862_v46 = vsel %vm860_vm12, %v861_v45, %v859_v0  ;;  %v926_v47 = vmul.f32 %v3123_v60, %v3680_v51  ;;  %v1342_v0 = vld [vmem:[%s4508_s4 + $0x28] sm:$0xff] }
 0x1ef   : > { %v3125_v33 = vpop.eup %3124  ;;  %v879_v38 = vmul.f32 0.20412415, %v862_v46  ;;  %v1344_v46 = vld [vmem:[%s4508_s4 + $0x38] sm:$0xff] }
 0x1f0   : > { %v927_v49 = vmul.f32 %v3125_v33, %v3686_v58  ;;  %v1341_v33 = vld [vmem:[%s4508_s4 + $0x20] sm:$0xff] }
 0x1f1   : > { %v896_v50 = vmax.f32 %v879_v38, 1e-05  ;;  %v1357_v38 = vpack.c.bf16 %v1344_v46, %v1342_v0 }
 0x1f2   : > { %v940_v53 = vpack.c.bf16 %v927_v49, %v926_v47  ;;  %v1343_v47 = vld [vmem:[%s4508_s4 + $0x30] sm:$0xff] }
 0x1f3   : > { %3130 = vrcp.f32 %v896_v50  ;;  %v1356_v49 = vpack.c.bf16 %v1343_v47, %v1341_v33 }
 0x1f4   : > { %2934 = vmatmul.mubr.msk.bf16.gmra.mrb[24].mxu1 %vm691_vm1, %v940_v53 }
 0x1f5   : > { %v3127_v55 = vpop.eup %3126  ;;  %2937 = vmatprep.mubr.msk.bf16.mxu1 %vm3347_vm3, %v4515_v54 }
 0x1f6   : > { %v928_v36 = vmul.f32 %v3127_v55, %v3697_v7  ;;  %v1338_v7 = vld [vmem:[%s4508_s4 + $0x8] sm:$0xff] }
 0x1f7   : > { %v3129_v56 = vpop.eup %3128 }
 0x1f8   : > { %v929_v40 = vmul.f32 %v3129_v56, %v3699_v12  ;;  %v1340_v12 = vld [vmem:[%s4508_s4 + $0x18] sm:$0xff] }
 0x1f9   : > { %v1355_v62 = vpack.c.bf16 %v1340_v12, %v1338_v7 }
 0x1fa   : > { %v941_v57 = vpack.c.bf16 %v929_v40, %v928_v36 }
 0x1fb   : > { %1385 = vmatprep.subr.bf16.mxu1 %v1355_v62 }
 0x1fc   : > { %2938 = vmatmul.mubr.msk.bf16.gmra.mrb[28].mxu1 %vm691_vm1, %v941_v57 }
 0x1fd   : > { %v3131_v59 = vpop.eup %3130  ;;  %2941 = vmatprep.mubr.msk.bf16.mxu1 %vm3347_vm3, %v4515_v54 }
 0x1fe   : > { %v930_v51 = vmul.f32 %v3131_v59, %v3707_v22  ;;  %v1339_v22 = vld [vmem:[%s4508_s4 + $0x10] sm:$0xff] }
 0x1ff   : > { %v1354_v63 = vpack.c.bf16 %v1339_v22, %v1337_v61 }
 0x200   : > { %v942_v58 = vpack.c.bf16 %v930_v51, %v930_v51 }
 0x201   : > { %1386 = vmatpush1.bf16.msra.mxu1 %v1354_v63 }
 0x202   : > { %1387 = vmatprep.subr.bf16.mxu1 %v1357_v38 }
 0x204   : > { %2942 = vmatmul.mubr.msk.bf16.gmra.mrb[32].mxu1 %vm691_vm1, %v942_v58  ;;  %vm1097_vm1 = vcmask 261120  }
 0x205   : > { %1417 = vmatprep.mubr.bf16.mxu1 %v4517_v2  ;;  %1388 = vmatpush1.bf16.msra.mxu1 %v1356_v49 }
 0x206   : > { %3029 = vmatprep.subr.bf16.mxu1 %v4517_v2 }
 0x297   : > { %v3766_v1 = vpop.f32.mrb[0].mxu1 }
 0x298   : > { %v2911_v3 = vpop.f32.mrb[1].mxu1  ;;  %v1080_v4 = vmul.f32 %v3766_v1, %v3766_v1 }
 0x299   : > { %v3770_v5 = vpop.f32.mrb[2].mxu1 }
 0x29a   : > { %v2912_v6 = vpop.f32.mrb[3].mxu1  ;;  %v1098_v9 = vsel %vm1097_vm1, %v1080_v4, 0.0  ;;  %v1081_v13 = vmul.f32 %v3770_v5, %v3770_v5 }
 0x29b   : > { %1099 = vadd.xlane.f32.xlu1 %v1098_v9 }
 0x29c   : > { %v1101_v8 = vsel %vm1097_vm1, %v1081_v13, 0.0 }
 0x29d   : > { %1102 = vadd.xlane.f32.xlu0 %v1101_v8 }
 0x29f   : > { %v3776_v10 = vpop.f32.mrb[4].mxu1 }
 0x2a0   : > { %v2915_v11 = vpop.f32.mrb[5].mxu1  ;;  %v1082_v14 = vmul.f32 %v3776_v10, %v3776_v10 }
 0x2a1   : > { %v3780_v16 = vpop.f32.mrb[6].mxu1 }
 0x2a2   : > { %v2916_v15 = vpop.f32.mrb[7].mxu1  ;;  %v1104_v17 = vsel %vm1097_vm1, %v1082_v14, 0.0  ;;  %v1083_v18 = vmul.f32 %v3780_v16, %v3780_v16 }
 0x2a3   : > { %1105 = vadd.xlane.f32.xlu1 %v1104_v17  ;;  %v2858_v17 = vld [vmem:[%s4512_s8] ss:$0 sm:$0xff] }
 0x2a4   : > { %v1107_v19 = vsel %vm1097_vm1, %v1083_v18, 0.0 }
 0x2a5   : > { %1108 = vadd.xlane.f32.xlu0 %v1107_v19 }
 0x2a7   : > { %v3786_v48 = vpop.f32.mrb[8].mxu1 }
 0x2a8   : > { %v2919_v52 = vpop.f32.mrb[9].mxu1  ;;  %v1084_v20 = vmul.f32 %v3786_v48, %v3786_v48 }
 0x2a9   : > { %v3790_v23 = vpop.f32.mrb[10].mxu1 }
 0x2aa   : > { %v2920_v24 = vpop.f32.mrb[11].mxu1  ;;  %v1110_v26 = vsel %vm1097_vm1, %v1084_v20, 0.0  ;;  %v1085_v27 = vmul.f32 %v3790_v23, %v3790_v23 }
 0x2ab   : > { %1111 = vadd.xlane.f32.xlu1 %v1110_v26 }
 0x2ac   : > { %v1113_v28 = vsel %vm1097_vm1, %v1085_v27, 0.0 }
 0x2ad   : > { %1114 = vadd.xlane.f32.xlu0 %v1113_v28 }
 0x2af   : > { %v3796_v29 = vpop.f32.mrb[12].mxu1 }
 0x2b0   : > { %v2923_v21 = vpop.f32.mrb[13].mxu1  ;;  %v1086_v25 = vmul.f32 %v3796_v29, %v3796_v29 }
 0x2b1   : > { %v3800_v30 = vpop.f32.mrb[14].mxu1 }
 0x2b2   : > { %4528 = vst [vmem:[#allocation2_spill] sm:$0xff] %v3800_v30  ;;  %v2924_v31 = vpop.f32.mrb[15].mxu1  ;;  %v1116_v32 = vsel %vm1097_vm1, %v1086_v25, 0.0  ;;  %v1087_v34 = vmul.f32 %v3800_v30, %v3800_v30 }
 0x2b3   : > { %1117 = vadd.xlane.f32.xlu1 %v1116_v32 }
 0x2b4   : > { %v1119_v35 = vsel %vm1097_vm1, %v1087_v34, 0.0 }
 0x2b5   : > { %1120 = vadd.xlane.f32.xlu0 %v1119_v35 }
 0x2b7   : > { %v3806_v37 = vpop.f32.mrb[16].mxu1 }
 0x2b8   : > { %4529 = vst [vmem:[#allocation3_spill] sm:$0xff] %v3806_v37  ;;  %v2927_v41 = vpop.f32.mrb[17].mxu1  ;;  %v1088_v42 = vmul.f32 %v3806_v37, %v3806_v37 }
 0x2b9   : > { %v3810_v39 = vpop.f32.mrb[18].mxu1 }
 0x2ba   : > { %4530 = vst [vmem:[#allocation4_spill] sm:$0xff] %v3810_v39  ;;  %v2928_v43 = vpop.f32.mrb[19].mxu1  ;;  %v1122_v44 = vsel %vm1097_vm1, %v1088_v42, 0.0  ;;  %v1089_v45 = vmul.f32 %v3810_v39, %v3810_v39 }
 0x2bb   : > { %1123 = vadd.xlane.f32.xlu1 %v1122_v44 }
 0x2bc   : > { %v1125_v60 = vsel %vm1097_vm1, %v1089_v45, 0.0 }
 0x2bd   : > { %1126 = vadd.xlane.f32.xlu0 %v1125_v60 }
 0x2bf   : > { %v3828_v50 = vpop.f32.mrb[20].mxu1 }
 0x2c0   : > { %4531 = vst [vmem:[#allocation5_spill] sm:$0xff] %v3828_v50  ;;  %v2931_v53 = vpop.f32.mrb[21].mxu1  ;;  %v1090_v55 = vmul.f32 %v3828_v50, %v3828_v50 }
 0x2c1   : > { %v3832_v56 = vpop.f32.mrb[22].mxu1 }
 0x2c2   : > { %4532 = vst [vmem:[#allocation6_spill] sm:$0xff] %v3832_v56  ;;  %v2932_v36 = vpop.f32.mrb[23].mxu1  ;;  %v1128_v40 = vsel %vm1097_vm1, %v1090_v55, 0.0  ;;  %v1091_v57 = vmul.f32 %v3832_v56, %v3832_v56 }
 0x2c3   : > { %1129 = vadd.xlane.f32.xlu1 %v1128_v40 }
 0x2c4   : > { %v1131_v59 = vsel %vm1097_vm1, %v1091_v57, 0.0 }
 0x2c5   : > { %1132 = vadd.xlane.f32.xlu0 %v1131_v59 }
 0x2c7   : > { %v3839_v51 = vpop.f32.mrb[24].mxu1 }
 0x2c8   : > { %4533 = vst [vmem:[#allocation7_spill] sm:$0xff] %v3839_v51  ;;  %v2935_v58 = vpop.f32.mrb[25].mxu1  ;;  %v1092_v7 = vmul.f32 %v3839_v51, %v3839_v51 }
 0x2c9   : > { %v3843_v12 = vpop.f32.mrb[26].mxu1 }
 0x2ca   : > { %4534 = vst [vmem:[#allocation8_spill] sm:$0xff] %v3843_v12  ;;  %v2936_v61 = vpop.f32.mrb[27].mxu1  ;;  %v1134_v62 = vsel %vm1097_vm1, %v1092_v7, 0.0  ;;  %v1093_v22 = vmul.f32 %v3843_v12, %v3843_v12 }
 0x2cb   : > { %1135 = vadd.xlane.f32.xlu1 %v1134_v62 }
 0x2cc   : > { %v1137_v63 = vsel %vm1097_vm1, %v1093_v22, 0.0 }
 0x2cd   : > { %1138 = vadd.xlane.f32.xlu0 %v1137_v63 }
 0x2cf   : > { %v3849_v3 = vpop.f32.mrb[28].mxu1 }
 0x2d0   : > { %4535 = vst [vmem:[#allocation9_spill] sm:$0xff] %v3849_v3  ;;  %v2939_v4 = vpop.f32.mrb[29].mxu1  ;;  %v1094_v6 = vmul.f32 %v3849_v3, %v3849_v3 }
 0x2d1   : > { %v3853_v9 = vpop.f32.mrb[30].mxu1 }
 0x2d2   : > { %4536 = vst [vmem:[#allocation10_spill] sm:$0xff] %v3853_v9  ;;  %v2940_v13 = vpop.f32.mrb[31].mxu1  ;;  %v1140_v8 = vsel %vm1097_vm1, %v1094_v6, 0.0  ;;  %v1095_v11 = vmul.f32 %v3853_v9, %v3853_v9 }
 0x2d3   : > { %1141 = vadd.xlane.f32.xlu1 %v1140_v8 }
 0x2d4   : > { %v1143_v14 = vsel %vm1097_vm1, %v1095_v11, 0.0 }
 0x2d5   : > { %1144 = vadd.xlane.f32.xlu0 %v1143_v14 }
 0x2d7   : > { %v3859_v15 = vpop.f32.mrb[32].mxu1 }
 0x2d8   : > { %v2943_v18 = vpop.f32.mrb[33].mxu1  ;;  %v1096_v19 = vmul.f32 %v3859_v15, %v3859_v15  ;;  %v3867_v52 = vmul.f32 %v2858_v17, %v3859_v15 }
 0x2d9   : > { %v1077_v20 = vpop.f32.mrb[34].mxu1 }
 0x2da   : > { %4537 = vst [vmem:[#allocation11_spill] sm:$0xff] %v3867_v52  ;;  %v2944_v24 = vpop.f32.mrb[35].mxu1  ;;  %v1147_v26 = vsel %vm1146_vm13, %v1096_v19, 0.0 }
 0x2db   : > { %1148 = vadd.xlane.f32.xlu1 %v1147_v26 }
 0x328   : > { %v1100_v27 = vpop.xlane.xlu1 %1099 }
 0x329   : > { %3132 = vrsqrt.f32 %v1100_v27  ;;  %vm1152_vm14 = vcmp.eq.f32.partialorder %v1100_v27, inf  ;;  %v1155_v35 = vand.u32 2147483648, %v1100_v27  ;;  %vm1154_vm15 = vcmp.eq.f32.partialorder %v1100_v27, 0.0 }
 0x32a   : > { %v1103_v28 = vpop.xlane.xlu0 %1102 }
 0x32b   : > { %3134 = vrsqrt.f32 %v1103_v28  ;;  %vm1159_vm2 = vcmp.eq.f32.partialorder %v1103_v28, inf  ;;  %v1162_v44 = vand.u32 2147483648, %v1103_v28  ;;  %vm1161_vm4 = vcmp.eq.f32.partialorder %v1103_v28, 0.0 }
 0x330   : > { %v1106_v21 = vpop.xlane.xlu1 %1105 }
 0x331   : > { %3136 = vrsqrt.f32 %v1106_v21  ;;  %vm1166_vm5 = vcmp.eq.f32.partialorder %v1106_v21, inf  ;;  %v1169_v40 = vand.u32 2147483648, %v1106_v21  ;;  %vm1168_vm6 = vcmp.eq.f32.partialorder %v1106_v21, 0.0 }
 0x332   : > { %v1109_v25 = vpop.xlane.xlu0 %1108 }
 0x333   : > { %v3133_v31 = vpop.eup %3132  ;;  %3138 = vrsqrt.f32 %v1109_v25  ;;  %vm1173_vm7 = vcmp.eq.f32.partialorder %v1109_v25, inf  ;;  %v1176_v7 = vand.u32 2147483648, %v1109_v25  ;;  %vm1175_vm8 = vcmp.eq.f32.partialorder %v1109_v25, 0.0 }
 0x334   : > { %v1151_v32 = vmul.f32 %v3133_v31, %v1100_v27 }
 0x335   : > { %v3135_v34 = vpop.eup %3134 }
 0x336   : > { %v1153_v41 = vsel %vm1152_vm14, %v1100_v27, %v1151_v32  ;;  %v1158_v42 = vmul.f32 %v3135_v34, %v1103_v28 }
 0x337   : > { %v1156_v43 = vsel %vm1154_vm15, %v1155_v35, %v1153_v41 }
 0x338   : > { %v1269_v45 = vmul.f32 0.17677669, %v1156_v43  ;;  %v1160_v60 = vsel %vm1159_vm2, %v1103_v28, %v1158_v42  ;;  %v1112_v0 = vpop.xlane.xlu1 %1111 }
 0x339   : > { %v1163_v46 = vsel %vm1161_vm4, %v1162_v44, %v1160_v60  ;;  %3140 = vrsqrt.f32 %v1112_v0  ;;  %vm1180_vm9 = vcmp.eq.f32.partialorder %v1112_v0, inf  ;;  %v1183_v18 = vand.u32 2147483648, %v1112_v0 }
 0x33a   : > { %v1286_v33 = vmax.f32 %v1269_v45, 1e-05  ;;  %v1270_v38 = vmul.f32 0.17677669, %v1163_v46  ;;  %v1115_v47 = vpop.xlane.xlu0 %1114  ;;  %vm1182_vm10 = vcmp.eq.f32.partialorder %v1112_v0, 0.0 }
 0x33b   : > { %v3137_v49 = vpop.eup %3136  ;;  %3142 = vrsqrt.f32 %v1115_v47  ;;  %vm1187_vm11 = vcmp.eq.f32.partialorder %v1115_v47, inf  ;;  %v1190_v27 = vand.u32 2147483648, %v1115_v47  ;;  %vm1189_vm12 = vcmp.eq.f32.partialorder %v1115_v47, 0.0 }
 0x33c   : > { %v1287_v53 = vmax.f32 %v1270_v38, 1e-05  ;;  %v1165_v55 = vmul.f32 %v3137_v49, %v1106_v21  ;;  %3144 = vrcp.f32 %v1286_v33 }
 0x33d   : > { %v3139_v36 = vpop.eup %3138 }
 0x33e   : > { %3146 = vrcp.f32 %v1287_v53  ;;  %v1167_v57 = vsel %vm1166_vm5, %v1106_v21, %v1165_v55  ;;  %v1172_v59 = vmul.f32 %v3139_v36, %v1109_v25 }
 0x33f   : > { %v1170_v58 = vsel %vm1168_vm6, %v1169_v40, %v1167_v57 }
 0x340   : > { %v1271_v61 = vmul.f32 0.17677669, %v1170_v58  ;;  %v1174_v62 = vsel %vm1173_vm7, %v1109_v25, %v1172_v59  ;;  %v1118_v22 = vpop.xlane.xlu1 %1117 }
 0x341   : > { %v1177_v63 = vsel %vm1175_vm8, %v1176_v7, %v1174_v62  ;;  %3148 = vrsqrt.f32 %v1118_v22  ;;  %vm1194_vm13 = vcmp.eq.f32.partialorder %v1118_v22, inf  ;;  %v1197_v33 = vand.u32 2147483648, %v1118_v22 }
 0x342   : > { %v1288_v4 = vmax.f32 %v1271_v61, 1e-05  ;;  %v1272_v6 = vmul.f32 0.17677669, %v1177_v63  ;;  %v1121_v13 = vpop.xlane.xlu0 %1120  ;;  %vm1196_vm14 = vcmp.eq.f32.partialorder %v1118_v22, 0.0 }
 0x343   : > { %v3141_v8 = vpop.eup %3140  ;;  %3150 = vrsqrt.f32 %v1121_v13  ;;  %vm1201_vm15 = vcmp.eq.f32.partialorder %v1121_v13, inf  ;;  %v1204_v55 = vand.u32 2147483648, %v1121_v13  ;;  %vm1203_vm2 = vcmp.eq.f32.partialorder %v1121_v13, 0.0 }
 0x344   : > { %v1289_v11 = vmax.f32 %v1272_v6, 1e-05  ;;  %v1179_v14 = vmul.f32 %v3141_v8, %v1112_v0  ;;  %3152 = vrcp.f32 %v1288_v4 }
 0x345   : > { %v3143_v17 = vpop.eup %3142 }
 0x346   : > { %3154 = vrcp.f32 %v1289_v11  ;;  %v1181_v19 = vsel %vm1180_vm9, %v1112_v0, %v1179_v14  ;;  %v1186_v20 = vmul.f32 %v3143_v17, %v1115_v47  ;;  %v3145_v24 = vpop.eup %3144 }
 0x347   : > { %v1184_v26 = vsel %vm1182_vm10, %v1183_v18, %v1181_v19  ;;  %v1320_v42 = vmul.f32 %v3145_v24, %v3766_v1 }
 0x348   : > { %v3147_v28 = vpop.eup %3146  ;;  %v1273_v21 = vmul.f32 0.17677669, %v1184_v26  ;;  %v1188_v25 = vsel %vm1187_vm11, %v1115_v47, %v1186_v20  ;;  %v1124_v31 = vpop.xlane.xlu1 %1123 }
 0x349   : > { %v1191_v32 = vsel %vm1189_vm12, %v1190_v27, %v1188_v25  ;;  %3156 = vrsqrt.f32 %v1124_v31  ;;  %v1321_v43 = vmul.f32 %v3147_v28, %v3770_v5  ;;  %vm1208_vm4 = vcmp.eq.f32.partialorder %v1124_v31, inf }
 0x34a   : > { %v1290_v34 = vmax.f32 %v1273_v21, 1e-05  ;;  %v1274_v35 = vmul.f32 0.17677669, %v1191_v32  ;;  %v1127_v41 = vpop.xlane.xlu0 %1126  ;;  %v1211_v17 = vand.u32 2147483648, %v1124_v31  ;;  %vm1210_vm5 = vcmp.eq.f32.partialorder %v1124_v31, 0.0 }
 0x34b   : > { %v3149_v44 = vpop.eup %3148  ;;  %3158 = vrsqrt.f32 %v1127_v41  ;;  %v1345_v0 = vpack.c.bf16 %v1321_v43, %v1320_v42  ;;  %vm1215_vm6 = vcmp.eq.f32.partialorder %v1127_v41, inf  ;;  %v1218_v24 = vand.u32 2147483648, %v1127_v41 }
 0x34c   : > { %v1291_v45 = vmax.f32 %v1274_v35, 1e-05  ;;  %v1193_v60 = vmul.f32 %v3149_v44, %v1118_v22  ;;  %3160 = vrcp.f32 %v1290_v34  ;;  %vm1217_vm7 = vcmp.eq.f32.partialorder %v1127_v41, 0.0 }
 0x34d   : > { %v3151_v46 = vpop.eup %3150  ;;  %2784 = vmatmul.mubr.msk.bf16.vlgmr.msra.gmra.mrb[36].mxu1 %vm1097_vm1, %v1345_v0 }
 0x34e   : > { %3162 = vrcp.f32 %v1291_v45  ;;  %v1195_v38 = vsel %vm1194_vm13, %v1118_v22, %v1193_v60  ;;  %v1200_v47 = vmul.f32 %v3151_v46, %v1121_v13  ;;  %v3153_v49 = vpop.eup %3152  ;;  %1427 = vmatprep.mubr.bf16.mxu1 %v4517_v2 }
 0x34f   : > { %v1198_v53 = vsel %vm1196_vm14, %v1197_v33, %v1195_v38  ;;  %v1322_v22 = vmul.f32 %v3153_v49, %v3776_v10 }
 0x350   : > { %v3155_v36 = vpop.eup %3154  ;;  %v1275_v40 = vmul.f32 0.17677669, %v1198_v53  ;;  %v1202_v57 = vsel %vm1201_vm15, %v1121_v13, %v1200_v47  ;;  %v1130_v59 = vpop.xlane.xlu1 %1129 }
 0x351   : > { %v1205_v58 = vsel %vm1203_vm2, %v1204_v55, %v1202_v57  ;;  %3164 = vrsqrt.f32 %v1130_v59  ;;  %v1323_v63 = vmul.f32 %v3155_v36, %v3780_v16  ;;  %vm1222_vm8 = vcmp.eq.f32.partialorder %v1130_v59, inf }
 0x352   : > { %v1292_v7 = vmax.f32 %v1275_v40, 1e-05  ;;  %v1276_v61 = vmul.f32 0.17677669, %v1205_v58  ;;  %v1133_v62 = vpop.xlane.xlu0 %1132  ;;  %v1225_v46 = vand.u32 2147483648, %v1130_v59  ;;  %vm1224_vm9 = vcmp.eq.f32.partialorder %v1130_v59, 0.0 }
 0x353   : > { %v3157_v4 = vpop.eup %3156  ;;  %3166 = vrsqrt.f32 %v1133_v62  ;;  %v1346_v11 = vpack.c.bf16 %v1323_v63, %v1322_v22  ;;  %vm1229_vm10 = vcmp.eq.f32.partialorder %v1133_v62, inf  ;;  %v1232_v49 = vand.u32 2147483648, %v1133_v62 }
 0x354   : > { %v1293_v6 = vmax.f32 %v1276_v61, 1e-05  ;;  %v1207_v8 = vmul.f32 %v3157_v4, %v1124_v31  ;;  %3168 = vrcp.f32 %v1292_v7  ;;  %vm1231_vm11 = vcmp.eq.f32.partialorder %v1133_v62, 0.0 }
 0x355   : > { %v3159_v14 = vpop.eup %3158  ;;  %2785 = vmatmul.mubr.msk.bf16.gmra.mrb[40].mxu1 %vm1097_vm1, %v1346_v11 }
 0x356   : > { %3170 = vrcp.f32 %v1293_v6  ;;  %v1209_v13 = vsel %vm1208_vm4, %v1124_v31, %v1207_v8  ;;  %v1214_v18 = vmul.f32 %v3159_v14, %v1127_v41  ;;  %v3161_v19 = vpop.eup %3160  ;;  %1437 = vmatprep.mubr.bf16.mxu1 %v4517_v2 }
 0x357   : > { %v1212_v20 = vsel %vm1210_vm5, %v1211_v17, %v1209_v13  ;;  %v1324_v31 = vmul.f32 %v3161_v19, %v3786_v48 }
 0x358   : > { %v3163_v26 = vpop.eup %3162  ;;  %v1277_v27 = vmul.f32 0.17677669, %v1212_v20  ;;  %v1216_v28 = vsel %vm1215_vm6, %v1127_v41, %v1214_v18  ;;  %v1136_v21 = vpop.xlane.xlu1 %1135 }
 0x359   : > { %v1219_v25 = vsel %vm1217_vm7, %v1218_v24, %v1216_v28  ;;  %3172 = vrsqrt.f32 %v1136_v21  ;;  %v1325_v42 = vmul.f32 %v3163_v26, %v3790_v23  ;;  %vm1236_vm12 = vcmp.eq.f32.partialorder %v1136_v21, inf }
 0x35a   : > { %v1294_v32 = vmax.f32 %v1277_v27, 1e-05  ;;  %v1278_v34 = vmul.f32 0.17677669, %v1219_v25  ;;  %v1139_v35 = vpop.xlane.xlu0 %1138  ;;  %v1239_v14 = vand.u32 2147483648, %v1136_v21  ;;  %vm1238_vm13 = vcmp.eq.f32.partialorder %v1136_v21, 0.0 }
 0x35b   : > { %v3165_v43 = vpop.eup %3164  ;;  %3174 = vrsqrt.f32 %v1139_v35  ;;  %v1347_v60 = vpack.c.bf16 %v1325_v42, %v1324_v31  ;;  %vm1243_vm14 = vcmp.eq.f32.partialorder %v1139_v35, inf  ;;  %v1246_v19 = vand.u32 2147483648, %v1139_v35 }
 0x35c   : > { %v1295_v44 = vmax.f32 %v1278_v34, 1e-05  ;;  %v1221_v45 = vmul.f32 %v3165_v43, %v1130_v59  ;;  %3176 = vrcp.f32 %v1294_v32  ;;  %vm1245_vm15 = vcmp.eq.f32.partialorder %v1139_v35, 0.0 }
 0x35d   : > { %v3167_v0 = vpop.eup %3166  ;;  %2786 = vmatmul.mubr.msk.bf16.gmra.mrb[44].mxu1 %vm1097_vm1, %v1347_v60 }
 0x35e   : > { %3178 = vrcp.f32 %v1295_v44  ;;  %v1223_v41 = vsel %vm1222_vm8, %v1130_v59, %v1221_v45  ;;  %v1228_v33 = vmul.f32 %v3167_v0, %v1133_v62  ;;  %v3169_v38 = vpop.eup %3168  ;;  %1447 = vmatprep.mubr.bf16.mxu1 %v4517_v2 }
 0x35f   : > { %v1226_v47 = vsel %vm1224_vm9, %v1225_v46, %v1223_v41  ;;  %v1326_v59 = vmul.f32 %v3169_v38, %v3796_v29  ;;  %vm2218_vm9 = vcmask 1042432  }
 0x360   : > { %v3171_v53 = vpop.eup %3170  ;;  %v1279_v55 = vmul.f32 0.17677669, %v1226_v47  ;;  %v1230_v36 = vsel %vm1229_vm10, %v1133_v62, %v1228_v33  ;;  %v1142_v40 = vpop.xlane.xlu1 %1141  ;;  %vm2189_vm10 = vcmask 39936  }
 0x361   : > { %v1233_v57 = vsel %vm1231_vm11, %v1232_v49, %v1230_v36  ;;  %3180 = vrsqrt.f32 %v1142_v40  ;;  %v1327_v22 = vmul.f32 %v3171_v53, %v3800_v30  ;;  %vm1250_vm2 = vcmp.eq.f32.partialorder %v1142_v40, inf }
 0x362   : > { %v1296_v58 = vmax.f32 %v1279_v55, 1e-05  ;;  %v1280_v7 = vmul.f32 0.17677669, %v1233_v57  ;;  %v1145_v61 = vpop.xlane.xlu0 %1144  ;;  %v1253_v60 = vand.u32 2147483648, %v1142_v40  ;;  %vm1252_vm4 = vcmp.eq.f32.partialorder %v1142_v40, 0.0 }
 0x363   : > { %v3173_v63 = vpop.eup %3172  ;;  %3182 = vrsqrt.f32 %v1145_v61  ;;  %v1348_v8 = vpack.c.bf16 %v1327_v22, %v1326_v59  ;;  %vm1257_vm5 = vcmp.eq.f32.partialorder %v1145_v61, inf  ;;  %v1260_v33 = vand.u32 2147483648, %v1145_v61 }
 0x364   : > { %3184 = vrcp.f32 %v1296_v58  ;;  %v1297_v4 = vmax.f32 %v1280_v7, 1e-05  ;;  %v1235_v6 = vmul.f32 %v3173_v63, %v1136_v21  ;;  %vm1259_vm6 = vcmp.eq.f32.partialorder %v1145_v61, 0.0 }
 0x365   : > { %v3175_v11 = vpop.eup %3174  ;;  %2787 = vmatmul.mubr.msk.bf16.gmra.mrb[48].mxu1 %vm1097_vm1, %v1348_v8  ;;  %vm2366_vm11 = vcmask 523264  }
 0x366   : > { %3186 = vrcp.f32 %v1297_v4  ;;  %v1237_v62 = vsel %vm1236_vm12, %v1136_v21, %v1235_v6  ;;  %v1242_v17 = vmul.f32 %v3175_v11, %v1139_v35  ;;  %v3177_v13 = vpop.eup %3176  ;;  %1457 = vmatprep.mubr.bf16.mxu1 %v4517_v2 }
 0x367   : > { %v1240_v18 = vsel %vm1238_vm13, %v1239_v14, %v1237_v62  ;;  %v1328_v21 = vmul.f32 %v3177_v13, %v3806_v37 }
 0x368   : > { %v3179_v20 = vpop.eup %3178  ;;  %v1281_v24 = vmul.f32 0.17677669, %v1240_v18  ;;  %v1244_v26 = vsel %vm1243_vm14, %v1139_v35, %v1242_v17  ;;  %v1149_v27 = vpop.xlane.xlu1 %1148 }
 0x369   : > { %v1247_v28 = vsel %vm1245_vm15, %v1246_v19, %v1244_v26  ;;  %3188 = vrsqrt.f32 %v1149_v27  ;;  %v1329_v34 = vmul.f32 %v3179_v20, %v3810_v39  ;;  %vm1264_vm7 = vcmp.eq.f32.partialorder %v1149_v27, inf }
 0x36a   : > { %v1298_v25 = vmax.f32 %v1281_v24, 1e-05  ;;  %v1282_v32 = vmul.f32 0.17677669, %v1247_v28  ;;  %v1267_v63 = vand.u32 2147483648, %v1149_v27  ;;  %vm1266_vm8 = vcmp.eq.f32.partialorder %v1149_v27, 0.0 }
 0x36b   : > { %v3181_v31 = vpop.eup %3180  ;;  %v1349_v44 = vpack.c.bf16 %v1329_v34, %v1328_v21 }
 0x36c   : > { %3190 = vrcp.f32 %v1298_v25  ;;  %v1299_v42 = vmax.f32 %v1282_v32, 1e-05  ;;  %v1249_v43 = vmul.f32 %v3181_v31, %v1142_v40 }
 0x36d   : > { %v3183_v45 = vpop.eup %3182  ;;  %2788 = vmatmul.mubr.msk.bf16.gmra.mrb[52].mxu1 %vm1097_vm1, %v1349_v44 }
 0x36e   : > { %v3185_v0 = vpop.eup %3184  ;;  %3192 = vrcp.f32 %v1299_v42  ;;  %v1251_v35 = vsel %vm1250_vm2, %v1142_v40, %v1249_v43  ;;  %v1256_v46 = vmul.f32 %v3183_v45, %v1145_v61  ;;  %1467 = vmatprep.mubr.bf16.mxu1 %v4517_v2 }
 0x36f   : > { %v1254_v41 = vsel %vm1252_vm4, %v1253_v60, %v1251_v35  ;;  %v1330_v55 = vmul.f32 %v3185_v0, %v3828_v50 }
 0x370   : > { %v3187_v38 = vpop.eup %3186  ;;  %v1283_v47 = vmul.f32 0.17677669, %v1254_v41  ;;  %v1258_v49 = vsel %vm1257_vm5, %v1145_v61, %v1256_v46 }
 0x371   : > { %v1261_v53 = vsel %vm1259_vm6, %v1260_v33, %v1258_v49  ;;  %v1331_v36 = vmul.f32 %v3187_v38, %v3832_v56 }
 0x372   : > { %v1300_v57 = vmax.f32 %v1283_v47, 1e-05  ;;  %v1284_v58 = vmul.f32 0.17677669, %v1261_v53 }
 0x373   : > { %v3189_v40 = vpop.eup %3188  ;;  %v1350_v7 = vpack.c.bf16 %v1331_v36, %v1330_v55 }
 0x374   : > { %3194 = vrcp.f32 %v1300_v57  ;;  %v1301_v59 = vmax.f32 %v1284_v58, 1e-05  ;;  %v1263_v22 = vmul.f32 %v3189_v40, %v1149_v27 }
 0x375   : > { %2789 = vmatmul.mubr.msk.bf16.gmra.mrb[56].mxu1 %vm1097_vm1, %v1350_v7 }
 0x376   : > { %v3191_v4 = vpop.eup %3190  ;;  %3196 = vrcp.f32 %v1301_v59  ;;  %v1265_v6 = vsel %vm1264_vm7, %v1149_v27, %v1263_v22  ;;  %1477 = vmatprep.mubr.bf16.mxu1 %v4517_v2 }
 0x377   : > { %v1268_v61 = vsel %vm1266_vm8, %v1267_v63, %v1265_v6  ;;  %v1332_v14 = vmul.f32 %v3191_v4, %v3839_v51 }
 0x378   : > { %v3193_v8 = vpop.eup %3192  ;;  %v1285_v11 = vmul.f32 0.17677669, %v1268_v61 }
 0x379   : > { %v1333_v62 = vmul.f32 %v3193_v8, %v3843_v12 }
 0x37a   : > { %v1302_v17 = vmax.f32 %v1285_v11, 1e-05 }
 0x37b   : > { %v1351_v13 = vpack.c.bf16 %v1333_v62, %v1332_v14 }
 0x37c   : > { %3198 = vrcp.f32 %v1302_v17 }
 0x37d   : > { %2790 = vmatmul.mubr.msk.bf16.gmra.mrb[60].mxu1 %vm1097_vm1, %v1351_v13 }
 0x37e   : > { %v3195_v18 = vpop.eup %3194  ;;  %1487 = vmatprep.mubr.bf16.mxu1 %v4517_v2 }
 0x37f   : > { %v1334_v20 = vmul.f32 %v3195_v18, %v3849_v3 }
 0x380   : > { %v3197_v19 = vpop.eup %3196 }
 0x381   : > { %v1335_v24 = vmul.f32 %v3197_v19, %v3853_v9 }
 0x383   : > { %v1352_v26 = vpack.c.bf16 %v1335_v24, %v1334_v20 }
 0x385   : > { %2791 = vmatmul.mubr.msk.bf16.gmra.mrb[64].mxu1 %vm1097_vm1, %v1352_v26 }
 0x386   : > { %v3199_v27 = vpop.eup %3198  ;;  %1497 = vmatprep.mubr.bf16.mxu1 %v4517_v2 }
 0x387   : > { %v1336_v28 = vmul.f32 %v3199_v27, %v3859_v15 }
 0x389   : > { %v1353_v25 = vpack.c.bf16 %v1336_v28, %v1336_v28 }
 0x38d   : > { %2792 = vmatmul.mubr.msk.bf16.gmra.mrb[68].mxu1 %vm1097_vm1, %v1353_v25 }
 0x420   : > { %v3903_v32 = vpop.f32.mrb[36].mxu1 }
 0x421   : > { %v2793_v21 = vmul.f32 -1.442695, %v3903_v32  ;;  %v3906_v34 = vpop.f32.mrb[37].mxu1 }
 0x422   : > { %v2794_v31 = vmul.f32 -1.442695, %v3906_v34  ;;  %v3909_v42 = vpop.f32.mrb[38].mxu1 }
 0x423   : > { %3200 = vpow2.f32 %v2793_v21  ;;  %v2795_v43 = vmul.f32 -1.442695, %v3909_v42  ;;  %v3912_v44 = vpop.f32.mrb[39].mxu1 }
 0x424   : > { %3202 = vpow2.f32 %v2794_v31  ;;  %v2796_v15 = vmul.f32 -1.442695, %v3912_v44 }
 0x425   : > { %3204 = vpow2.f32 %v2795_v43  ;;  %v3950_v43 = vld [vmem:[%s4509_s5] ss:$0 sm:$0xff] }
 0x426   : > { %3206 = vpow2.f32 %v2796_v15 }
 0x428   : > { %v3915_v45 = vpop.f32.mrb[40].mxu1 }
 0x429   : > { %v2797_v60 = vmul.f32 -1.442695, %v3915_v45  ;;  %v3918_v0 = vpop.f32.mrb[41].mxu1 }
 0x42a   : > { %v2798_v35 = vmul.f32 -1.442695, %v3918_v0  ;;  %v3921_v46 = vpop.f32.mrb[42].mxu1 }
 0x42b   : > { %3208 = vpow2.f32 %v2797_v60  ;;  %v2799_v41 = vmul.f32 -1.442695, %v3921_v46  ;;  %v3924_v33 = vpop.f32.mrb[43].mxu1 }
 0x42c   : > { %3210 = vpow2.f32 %v2798_v35  ;;  %v2800_v38 = vmul.f32 -1.442695, %v3924_v33 }
 0x42d   : > { %v3201_v47 = vpop.eup %3200  ;;  %3212 = vpow2.f32 %v2799_v41 }
 0x42e   : > { %v3203_v49 = vpop.eup %3202  ;;  %v1608_v53 = vadd.f32 1.0, %v3201_v47  ;;  %3214 = vpow2.f32 %v2800_v38  ;;  %v3959_v38 = vld [vmem:[%s4509_s5 + $0x1] ss:$0 sm:$0xff] }
 0x42f   : > { %v3205_v55 = vpop.eup %3204  ;;  %v1609_v36 = vadd.f32 1.0, %v3203_v49 }
 0x430   : > { %v3207_v57 = vpop.eup %3206  ;;  %3216 = vrcp.f32 %v1608_v53  ;;  %v1610_v58 = vadd.f32 1.0, %v3205_v55  ;;  %v3927_v40 = vpop.f32.mrb[44].mxu1 }
 0x431   : > { %3218 = vrcp.f32 %v1609_v36  ;;  %v1611_v7 = vadd.f32 1.0, %v3207_v57  ;;  %v2801_v59 = vmul.f32 -1.442695, %v3927_v40  ;;  %v3930_v22 = vpop.f32.mrb[45].mxu1 }
 0x432   : > { %3220 = vrcp.f32 %v1610_v58  ;;  %v2802_v63 = vmul.f32 -1.442695, %v3930_v22  ;;  %v3933_v4 = vpop.f32.mrb[46].mxu1 }
 0x433   : > { %3222 = vrcp.f32 %v1611_v7  ;;  %v2803_v6 = vmul.f32 -1.442695, %v3933_v4  ;;  %v3936_v61 = vpop.f32.mrb[47].mxu1 }
 0x434   : > { %3224 = vpow2.f32 %v2801_v59  ;;  %v2804_v8 = vmul.f32 -1.442695, %v3936_v61 }
 0x435   : > { %v3209_v11 = vpop.eup %3208  ;;  %3226 = vpow2.f32 %v2802_v63 }
 0x436   : > { %v3211_v14 = vpop.eup %3210  ;;  %v1612_v62 = vadd.f32 1.0, %v3209_v11  ;;  %3228 = vpow2.f32 %v2803_v6  ;;  %v3981_v6 = vld [vmem:[%s4510_s6 + $0x1] ss:$0 sm:$0xff] }
 0x437   : > { %v3213_v17 = vpop.eup %3212  ;;  %v1613_v13 = vadd.f32 1.0, %v3211_v14  ;;  %3230 = vpow2.f32 %v2804_v8 }
 0x438   : > { %v3215_v18 = vpop.eup %3214  ;;  %3232 = vrcp.f32 %v1612_v62  ;;  %v1614_v19 = vadd.f32 1.0, %v3213_v17  ;;  %v3939_v20 = vpop.f32.mrb[48].mxu1 }
 0x439   : > { %3234 = vrcp.f32 %v1613_v13  ;;  %v1615_v24 = vadd.f32 1.0, %v3215_v18  ;;  %v2805_v26 = vmul.f32 -1.442695, %v3939_v20  ;;  %v3942_v27 = vpop.f32.mrb[49].mxu1 }
 0x43a   : > { %v3217_v28 = vpop.eup %3216  ;;  %3236 = vrcp.f32 %v1614_v19  ;;  %v2806_v25 = vmul.f32 -1.442695, %v3942_v27  ;;  %v3945_v21 = vpop.f32.mrb[50].mxu1 }
 0x43b   : > { %v3219_v31 = vpop.eup %3218  ;;  %3238 = vrcp.f32 %v1615_v24  ;;  %v2807_v15 = vmul.f32 -1.442695, %v3945_v21  ;;  %v3953_v60 = vpop.f32.mrb[51].mxu1  ;;  %v3963_v53 = vmul.f32 %v3217_v28, %v3903_v32 }
 0x43c   : > { %v3221_v35 = vpop.eup %3220  ;;  %v1711_v41 = vmul.f32 %v3219_v31, %v3906_v34  ;;  %3240 = vpow2.f32 %v2805_v26  ;;  %v2808_v47 = vmul.f32 -1.442695, %v3953_v60  ;;  %v3972_v34 = vld [vmem:[%s4510_s6] ss:$0 sm:$0xff] }
 0x43d   : > { %v3223_v49 = vpop.eup %3222  ;;  %v3966_v55 = vmul.f32 %v3221_v35, %v3909_v42  ;;  %3242 = vpow2.f32 %v2806_v25 }
 0x43e   : > { %v3225_v36 = vpop.eup %3224  ;;  %v1749_v57 = vmul.f32 %v3950_v43, %v1711_v41  ;;  %v1713_v58 = vmul.f32 %v3223_v49, %v3912_v44  ;;  %3244 = vpow2.f32 %v2807_v15  ;;  %v1793_v59 = vmul.f32 %v3959_v38, %v1711_v41 }
 0x43f   : > { %v3227_v7 = vpop.eup %3226  ;;  %v2145_v32 = vpack.c.bf16 %v3966_v55, %v3963_v53  ;;  %v1616_v42 = vadd.f32 1.0, %v3225_v36  ;;  %3246 = vpow2.f32 %v2808_v47 }
 0x440   : > { %v3229_v63 = vpop.eup %3228  ;;  %v1750_v8 = vmul.f32 %v3950_v43, %v1713_v58  ;;  %v1794_v11 = vmul.f32 %v3959_v38, %v1713_v58  ;;  %v3985_v44 = vpop.f32.mrb[52].mxu1  ;;  %v3988_v62 = vadd.f32 %v3972_v34, %v1749_v57  ;;  %v1617_v17 = vadd.f32 1.0, %v3227_v7 }
 0x441   : > { %v3231_v14 = vpop.eup %3230  ;;  %3248 = vrcp.f32 %v1616_v42  ;;  %v1618_v13 = vadd.f32 1.0, %v3229_v63  ;;  %2163 = vrot.lane.b32.xlu0 %v2145_v32, %s3348_s28  ;;  %v3991_v18 = vpop.f32.mrb[53].mxu1  ;;  %v2809_v25 = vmul.f32 -1.442695, %v3985_v44  ;;  %v1815_v35 = vadd.f32 %v3981_v6, %v1793_v59 }
 0x442   : > { %v3233_v19 = vpop.eup %3232  ;;  %v3994_v24 = vadd.f32 %v3972_v34, %v1750_v8  ;;  %v1816_v26 = vadd.f32 %v3981_v6, %v1794_v11  ;;  %v1619_v28 = vadd.f32 1.0, %v3231_v14  ;;  %v3998_v31 = vpop.f32.mrb[54].mxu1  ;;  %3250 = vrcp.f32 %v1617_v17 }
 0x443   : > { %v3235_v15 = vpop.eup %3234  ;;  %v2810_v41 = vmul.f32 -1.442695, %v3991_v18  ;;  %v4002_v47 = vpop.f32.mrb[55].mxu1  ;;  %v4007_v57 = vmul.f32 %v3233_v19, %v3915_v45  ;;  %3252 = vrcp.f32 %v1618_v13  ;;  %v2811_v59 = vmul.f32 -1.442695, %v3998_v31 }
 0x444   : > { %v3237_v49 = vpop.eup %3236  ;;  %v1715_v58 = vmul.f32 %v3235_v15, %v3918_v0  ;;  %3254 = vrcp.f32 %v1619_v28  ;;  %v1841_v42 = vpack.c.bf16 %v1816_v26, %v1815_v35  ;;  %v2812_v28 = vmul.f32 -1.442695, %v4002_v47 }
 0x445   : > { %v3239_v7 = vpop.eup %3238  ;;  %v4011_v32 = vmul.f32 %v3237_v49, %v3921_v46  ;;  %3256 = vpow2.f32 %v2809_v25 }
 0x446   : > { %v3241_v63 = vpop.eup %3240  ;;  %v1751_v8 = vmul.f32 %v3950_v43, %v1715_v58  ;;  %v1795_v11 = vmul.f32 %v3959_v38, %v1715_v58  ;;  %v1717_v14 = vmul.f32 %v3239_v7, %v3924_v33  ;;  %3258 = vpow2.f32 %v2810_v41 }
 0x447   : > { %v3243_v45 = vpop.eup %3242  ;;  %v2146_v0 = vpack.c.bf16 %v4011_v32, %v4007_v57  ;;  %v1620_v17 = vadd.f32 1.0, %v3241_v63  ;;  %v1878_v46 = vsel %vm542_vm0, %v1841_v42, 0 }
 0x448   : > { %v3245_v13 = vpop.eup %3244  ;;  %v1752_v19 = vmul.f32 %v3950_v43, %v1717_v14  ;;  %v1796_v26 = vmul.f32 %v3959_v38, %v1717_v14  ;;  %1905 = vmatpush1.bf16.xpose.msra.mxu0 %v1878_v46  ;;  %v4023_v15 = vpop.f32.mrb[56].mxu1  ;;  %v1817_v25 = vadd.f32 %v3981_v6, %v1795_v11  ;;  %v1621_v35 = vadd.f32 1.0, %v3243_v45 }
 0x449   : > { %v3247_v33 = vpop.eup %3246  ;;  %3260 = vrcp.f32 %v1620_v17  ;;  %v1622_v49 = vadd.f32 1.0, %v3245_v13  ;;  %2165 = vrot.lane.b32.xlu1 %v2146_v0, %s3348_s28  ;;  %v4027_v41 = vpop.f32.mrb[57].mxu1  ;;  %1906 = vmatprep.subr.bf16.mxu0 %v4517_v2  ;;  %v4037_v11 = vadd.f32 %v3972_v34, %v1751_v8  ;;  %v2813_v45 = vmul.f32 -1.442695, %v4023_v15 }
 0x44a   : > { %v4031_v58 = vadd.f32 %v3972_v34, %v1752_v19  ;;  %v1818_v7 = vadd.f32 %v3981_v6, %v1796_v26  ;;  %v1623_v42 = vadd.f32 1.0, %v3247_v33  ;;  %3262 = vpow2.f32 %v2811_v59  ;;  %v4034_v63 = vpop.f32.mrb[58].mxu1 }
 0x44b   : > { %v3249_v14 = vpop.eup %3248  ;;  %3264 = vrcp.f32 %v1621_v35  ;;  %v4040_v0 = vpop.f32.mrb[59].mxu1  ;;  %v2814_v17 = vmul.f32 -1.442695, %v4027_v41  ;;  %v2815_v19 = vmul.f32 -1.442695, %v4034_v63 }
 0x44c   : > { %3266 = vrcp.f32 %v1622_v49  ;;  %v1842_v46 = vpack.c.bf16 %v1818_v7, %v1817_v25  ;;  %v3251_v13 = vpop.eup %3250  ;;  %v4049_v54 = vmul.f32 %v3249_v14, %v3927_v40  ;;  %v2816_v25 = vmul.f32 -1.442695, %v4040_v0 }
 0x44d   : > { %3268 = vrcp.f32 %v1623_v42  ;;  %v3253_v26 = vpop.eup %3252  ;;  %v1719_v8 = vmul.f32 %v3251_v13, %v3930_v22 }
 0x44e   : > { %3270 = vpow2.f32 %v2812_v28  ;;  %v1881_v33 = vsel %vm542_vm0, %v1842_v46, 0  ;;  %v3255_v35 = vpop.eup %3254  ;;  %v4052_v49 = vmul.f32 %v3253_v26, %v3933_v4 }
 0x44f   : > { %3272 = vpow2.f32 %v2813_v45  ;;  %v3257_v7 = vpop.eup %3256  ;;  %v1753_v42 = vmul.f32 %v3950_v43, %v1719_v8  ;;  %v1797_v59 = vmul.f32 %v3959_v38, %v1719_v8  ;;  %v1721_v22 = vmul.f32 %v3255_v35, %v3936_v61 }
 0x450   : > { %3274 = vpow2.f32 %v2814_v17  ;;  %1907 = vmatpush1.bf16.xpose.msra.mxu0 %v1881_v33  ;;  %v4058_v28 = vpop.f32.mrb[60].mxu1  ;;  %v3259_v46 = vpop.eup %3258  ;;  %v2147_v40 = vpack.c.bf16 %v4052_v49, %v4049_v54  ;;  %v1624_v4 = vadd.f32 1.0, %v3257_v7 }
 0x451   : > { %3276 = vpow2.f32 %v2815_v19  ;;  %v4062_v14 = vpop.f32.mrb[61].mxu1  ;;  %1908 = vmatprep.subr.bf16.mxu0 %v4517_v2  ;;  %v1754_v45 = vmul.f32 %v3950_v43, %v1721_v22  ;;  %v1798_v13 = vmul.f32 %v3959_v38, %v1721_v22  ;;  %v2817_v61 = vmul.f32 -1.442695, %v4058_v28 }
 0x452   : > { %v4068_v17 = vpop.f32.mrb[62].mxu1  ;;  %v4071_v8 = vadd.f32 %v3972_v34, %v1753_v42  ;;  %v1819_v33 = vadd.f32 %v3981_v6, %v1797_v59  ;;  %3278 = vrcp.f32 %v1624_v4  ;;  %v1625_v19 = vadd.f32 1.0, %v3259_v46  ;;  %2167 = vrot.lane.b32.xlu1 %v2147_v40, %s3348_s28 }
 0x453   : > { %v3261_v26 = vpop.eup %3260  ;;  %v4075_v35 = vpop.f32.mrb[63].mxu1  ;;  %v4078_v36 = vadd.f32 %v3972_v34, %v1754_v45  ;;  %v1820_v22 = vadd.f32 %v3981_v6, %v1798_v13  ;;  %3280 = vpow2.f32 %v2816_v25  ;;  %v2818_v2 = vmul.f32 -1.442695, %v4062_v14 }
 0x454   : > { %v3263_v7 = vpop.eup %3262  ;;  %3282 = vrcp.f32 %v1625_v19  ;;  %v2819_v59 = vmul.f32 -1.442695, %v4068_v17  ;;  %v4087_v3 = vmul.f32 %v3261_v26, %v3939_v20  ;;  %v2820_v13 = vmul.f32 -1.442695, %v4075_v35 }
 0x455   : > { %v3265_v52 = vpop.eup %3264  ;;  %v1626_v42 = vadd.f32 1.0, %v3263_v7  ;;  %3284 = vpow2.f32 %v2817_v61  ;;  %v1843_v40 = vpack.c.bf16 %v1820_v22, %v1819_v33 }
 0x456   : > { %v3267_v4 = vpop.eup %3266  ;;  %v1723_v46 = vmul.f32 %v3265_v52, %v3942_v27 }
 0x457   : > { %v3269_v45 = vpop.eup %3268  ;;  %v4090_v25 = vmul.f32 %v3267_v4, %v3945_v21  ;;  %3286 = vrcp.f32 %v1626_v42  ;;  %v1884_v21 = vsel %vm542_vm0, %v1843_v40, 0 }
 0x458   : > { %v3271_v19 = vpop.eup %3270  ;;  %v1755_v7 = vmul.f32 %v3950_v43, %v1723_v46  ;;  %v1799_v52 = vmul.f32 %v3959_v38, %v1723_v46  ;;  %v1725_v27 = vmul.f32 %v3269_v45, %v3953_v60  ;;  %3288 = vpow2.f32 %v2818_v2  ;;  %v4096_v61 = vpop.f32.mrb[64].mxu1  ;;  %1909 = vmatpush1.bf16.xpose.msra.mxu0 %v1884_v21 }
 0x459   : > { %v3273_v33 = vpop.eup %3272  ;;  %v2148_v20 = vpack.c.bf16 %v4090_v25, %v4087_v3  ;;  %v1627_v26 = vadd.f32 1.0, %v3271_v19  ;;  %3290 = vpow2.f32 %v2819_v59  ;;  %v4101_v22 = vpop.f32.mrb[65].mxu1  ;;  %v2821_v40 = vmul.f32 -1.442695, %v4096_v61 }
 0x45a   : > { %v3275_v42 = vpop.eup %3274  ;;  %v4104_v4 = vadd.f32 %v3972_v34, %v1755_v7  ;;  %v1821_v46 = vadd.f32 %v3981_v6, %v1799_v52  ;;  %v1756_v2 = vmul.f32 %v3950_v43, %v1725_v27  ;;  %v1800_v60 = vmul.f32 %v3959_v38, %v1725_v27  ;;  %v4109_v45 = vpop.f32.mrb[66].mxu1 }
 0x45b   : > { %v3277_v9 = vpop.eup %3276  ;;  %3292 = vrcp.f32 %v1627_v26  ;;  %v1628_v59 = vadd.f32 1.0, %v3273_v33  ;;  %v1629_v19 = vadd.f32 1.0, %v3275_v42  ;;  %2169 = vrot.lane.b32.xlu0 %v2148_v20, %s3348_s28  ;;  %v4113_v12 = vpop.f32.mrb[67].mxu1  ;;  %v4538_v7 = vmov 0  }
 0x45c   : > { %1910 = vmatprep.subr.bf16.mxu0 %v4538_v7  ;;  %v4117_v52 = vadd.f32 %v3972_v34, %v1756_v2  ;;  %v1822_v27 = vadd.f32 %v3981_v6, %v1800_v60  ;;  %v1630_v21 = vadd.f32 1.0, %v3277_v9  ;;  %3294 = vpow2.f32 %v2820_v13  ;;  %v3279_v51 = vpop.eup %3278 }
 0x45d   : > { %3296 = vrcp.f32 %v1628_v59  ;;  %v3281_v26 = vpop.eup %3280  ;;  %v2822_v33 = vmul.f32 -1.442695, %v4101_v22 }
 0x45e   : > { %3298 = vrcp.f32 %v1629_v19  ;;  %v1844_v42 = vpack.c.bf16 %v1822_v27, %v1821_v46  ;;  %v3283_v56 = vpop.eup %3282  ;;  %v1631_v50 = vadd.f32 1.0, %v3281_v26  ;;  %v4130_v27 = vmul.f32 %v3279_v51, %v3985_v44 }
 0x45f   : > { %3300 = vrcp.f32 %v1630_v21  ;;  %v3285_v39 = vpop.eup %3284  ;;  %v1727_v2 = vmul.f32 %v3283_v56, %v3991_v18  ;;  %v2823_v26 = vmul.f32 -1.442695, %v4109_v45 }
 0x460   : > { %3302 = vpow2.f32 %v2821_v40  ;;  %v1887_v9 = vsel %vm542_vm0, %v1844_v42, 0  ;;  %v4125_v13 = vpop.f32.mrb[68].mxu1  ;;  %v1632_v59 = vadd.f32 1.0, %v3285_v39  ;;  %v2824_v42 = vmul.f32 -1.442695, %v4113_v12 }
 0x461   : > { %v3287_v60 = vpop.eup %3286  ;;  %3304 = vrcp.f32 %v1631_v50  ;;  %v4127_v19 = vpop.f32.mrb[69].mxu1  ;;  %1911 = vmatpush1.bf16.xpose.msra.mxu0 %v1887_v9  ;;  %v1757_v39 = vmul.f32 %v3950_v43, %v1727_v2 }
 0x462   : > { %v3289_v46 = vpop.eup %3288  ;;  %v4133_v21 = vmul.f32 %v3287_v60, %v3998_v31  ;;  %3306 = vpow2.f32 %v2822_v33  ;;  %v1503_v56 = vpop.f32.mrb[70].mxu1  ;;  %1912 = vmatprep.subr.bf16.mxu0 %v4538_v7  ;;  %v1801_v33 = vmul.f32 %v3959_v38, %v1727_v2  ;;  %v2826_v20 = vmul.f32 -1.442695, %v4127_v19 }
 0x463   : > { %v3291_v18 = vpop.eup %3290  ;;  %v1633_v40 = vadd.f32 1.0, %v3289_v46  ;;  %v1504_v50 = vpop.f32.mrb[71].mxu1  ;;  %3308 = vrcp.f32 %v1632_v59  ;;  %v2825_v46 = vmul.f32 -1.442695, %v4125_v13  ;;  %v4147_v59 = vadd.f32 %v3972_v34, %v1757_v39 }
 0x464   : > { %v2149_v51 = vpack.c.bf16 %v4133_v21, %v4130_v27  ;;  %v1634_v44 = vadd.f32 1.0, %v3291_v18 }
 0x465   : > { %v3293_v31 = vpop.eup %3292  ;;  %3310 = vrcp.f32 %v1633_v40  ;;  %v1823_v40 = vadd.f32 %v3981_v6, %v1801_v33 }
 0x466   : > { %v3295_v9 = vpop.eup %3294  ;;  %v1729_v60 = vmul.f32 %v3293_v31, %v4002_v47  ;;  %3312 = vrcp.f32 %v1634_v44  ;;  %2171 = vrot.lane.b32.xlu1 %v2149_v51, %s3348_s28 }
 0x467   : > { %v3297_v56 = vpop.eup %3296  ;;  %v1635_v50 = vadd.f32 1.0, %v3295_v9  ;;  %3314 = vpow2.f32 %v2823_v26 }
 0x468   : > { %v3299_v37 = vpop.eup %3298  ;;  %v1758_v2 = vmul.f32 %v3950_v43, %v1729_v60  ;;  %v1802_v18 = vmul.f32 %v3959_v38, %v1729_v60  ;;  %3316 = vpow2.f32 %v2824_v42  ;;  %v4153_v44 = vmul.f32 %v3297_v56, %v4023_v15 }
 0x469   : > { %v3301_v47 = vpop.eup %3300  ;;  %v1731_v51 = vmul.f32 %v3299_v37, %v4027_v41  ;;  %3318 = vrcp.f32 %v1635_v50 }
 0x46a   : > { %v3303_v26 = vpop.eup %3302  ;;  %v4157_v31 = vadd.f32 %v3972_v34, %v1758_v2  ;;  %v1824_v39 = vadd.f32 %v3981_v6, %v1802_v18  ;;  %v4161_v9 = vmul.f32 %v3301_v47, %v4034_v63  ;;  %3320 = vpow2.f32 %v2825_v46 }
 0x46b   : > { %v3305_v42 = vpop.eup %3304  ;;  %v1803_v60 = vmul.f32 %v3959_v38, %v1731_v51  ;;  %3322 = vpow2.f32 %v2826_v20  ;;  %v1759_v50 = vmul.f32 %v3950_v43, %v1731_v51  ;;  %v1636_v47 = vadd.f32 1.0, %v3303_v26 }
 0x46c   : > { %v3307_v33 = vpop.eup %3306  ;;  %v2150_v15 = vpack.c.bf16 %v4161_v9, %v4153_v44  ;;  %v1733_v37 = vmul.f32 %v3305_v42, %v4040_v0  ;;  %v1845_v41 = vpack.c.bf16 %v1824_v39, %v1823_v40  ;;  %v1836_v56 = vpack.c.bf16 %v4157_v31, %v4147_v59 }
 0x46d   : > { %v1637_v2 = vadd.f32 1.0, %v3307_v33  ;;  %v3309_v63 = vpop.eup %3308  ;;  %v1825_v40 = vadd.f32 %v3981_v6, %v1803_v60  ;;  %v4182_v33 = vadd.f32 %v3972_v34, %v1759_v50  ;;  %v3349_v59 = vmov 65535  }
 0x46e   : > { %v1760_v46 = vmul.f32 %v3950_v43, %v1733_v37  ;;  %v1804_v18 = vmul.f32 %v3959_v38, %v1733_v37  ;;  %v1890_v20 = vsel %vm542_vm0, %v1845_v41, 0  ;;  %2173 = vrot.lane.b32.xlu0 %v2150_v15, %s3348_s28  ;;  %v4185_v15 = vmul.f32 %v3309_v63, %v4058_v28 }
 0x46f   : > { %v3311_v30 = vpop.eup %3310  ;;  %3324 = vrcp.f32 %v1637_v2  ;;  %1913 = vmatpush1.bf16.xpose.msra.mxu0 %v1890_v20 }
 0x470   : > { %v3313_v0 = vpop.eup %3312  ;;  %v4176_v39 = vadd.f32 %v3972_v34, %v1760_v46  ;;  %v1826_v51 = vadd.f32 %v3981_v6, %v1804_v18  ;;  %v1735_v42 = vmul.f32 %v3311_v30, %v4062_v14  ;;  %1914 = vmatprep.subr.bf16.mxu0 %v4538_v7  ;;  %3326 = vrcp.f32 %v1636_v47 }
 0x471   : > { %v3315_v26 = vpop.eup %3314  ;;  %v4188_v37 = vmul.f32 %v3313_v0, %v4068_v17 }
 0x472   : > { %v3317_v60 = vpop.eup %3316  ;;  %v1638_v41 = vadd.f32 1.0, %v3315_v26  ;;  %v1846_v2 = vpack.c.bf16 %v1826_v51, %v1825_v40  ;;  %v1761_v18 = vmul.f32 %v3950_v43, %v1735_v42  ;;  %v1837_v50 = vpack.c.bf16 %v4176_v39, %v4182_v33 }
 0x473   : > { %v3319_v46 = vpop.eup %3318  ;;  %v2151_v30 = vpack.c.bf16 %v4188_v37, %v4185_v15  ;;  %v1639_v14 = vadd.f32 1.0, %v3317_v60  ;;  %v1805_v28 = vmul.f32 %v3959_v38, %v1735_v42 }
 0x474   : > { %v3321_v20 = vpop.eup %3320  ;;  %v1737_v17 = vmul.f32 %v3319_v46, %v4075_v35  ;;  %3328 = vrcp.f32 %v1638_v41  ;;  %v1893_v0 = vsel %vm542_vm0, %v1846_v2, 0  ;;  %v4202_v60 = vadd.f32 %v3972_v34, %v1761_v18 }
 0x475   : > { %v3323_v63 = vpop.eup %3322  ;;  %3330 = vrcp.f32 %v1639_v14  ;;  %v1640_v47 = vadd.f32 1.0, %v3321_v20  ;;  %2175 = vrot.lane.b32.xlu1 %v2151_v30, %s3348_s28  ;;  %v1827_v35 = vadd.f32 %v3981_v6, %v1805_v28 }
 0x476   : > { %v1762_v40 = vmul.f32 %v3950_v43, %v1737_v17  ;;  %v1806_v51 = vmul.f32 %v3959_v38, %v1737_v17  ;;  %v1641_v26 = vadd.f32 1.0, %v3323_v63 }
 0x477   : > { %3332 = vrcp.f32 %v1640_v47  ;;  %1915 = vmatpush1.bf16.xpose.msra.mxu0 %v1893_v0 }
 0x478   : > { %v4206_v42 = vadd.f32 %v3972_v34, %v1762_v40  ;;  %v1828_v41 = vadd.f32 %v3981_v6, %v1806_v51  ;;  %3334 = vrcp.f32 %v1641_v26  ;;  %1916 = vmatprep.subr.bf16.mxu0 %v4538_v7 }
 0x479   : > { %v3325_v2 = vpop.eup %3324 }
 0x47a   : > { %v1847_v46 = vpack.c.bf16 %v1828_v41, %v1827_v35  ;;  %v1838_v30 = vpack.c.bf16 %v4206_v42, %v4202_v60  ;;  %v1739_v18 = vmul.f32 %v3325_v2, %v4101_v22  ;;  %v3327_v14 = vpop.eup %3326  ;;  %v4543_v60 = vmov 0.0  }
 0x47b   : > { %v4215_v63 = vmul.f32 %v3327_v14, %v4096_v61 }
 0x47c   : > { %v1896_v20 = vsel %vm542_vm0, %v1847_v46, 0  ;;  %v1763_v47 = vmul.f32 %v3950_v43, %v1739_v18  ;;  %v1807_v40 = vmul.f32 %v3959_v38, %v1739_v18 }
 0x47e   : > { %v3329_v17 = vpop.eup %3328 }
 0x47f   : > { %v3331_v28 = vpop.eup %3330  ;;  %v4219_v0 = vmul.f32 %v3329_v17, %v4109_v45  ;;  %1917 = vmatpush1.bf16.xpose.msra.mxu0 %v1896_v20  ;;  %v1785_v45 = vadd.f32 %v3972_v34, %v1763_v47 }
 0x480   : > { %v1741_v51 = vmul.f32 %v3331_v28, %v4113_v12  ;;  %1918 = vmatprep.subr.bf16.mxu0 %v4538_v7  ;;  %v1829_v12 = vadd.f32 %v3981_v6, %v1807_v40 }
 0x481   : > { %v3333_v22 = vpop.eup %3332  ;;  %v2152_v26 = vpack.c.bf16 %v4219_v0, %v4215_v63 }
 0x482   : > { %v3335_v35 = vpop.eup %3334  ;;  %v1764_v61 = vmul.f32 %v3950_v43, %v1741_v51  ;;  %v1808_v41 = vmul.f32 %v3959_v38, %v1741_v51  ;;  %v4229_v2 = vmul.f32 %v3333_v22, %v4125_v13 }
 0x483   : > { %v1743_v46 = vmul.f32 %v3335_v35, %v4127_v19  ;;  %2177 = vrot.lane.b32.xlu0 %v2152_v26, %s3348_s28 }
 0x484   : > { %v1786_v18 = vadd.f32 %v3972_v34, %v1764_v61  ;;  %v1830_v14 = vadd.f32 %v3981_v6, %v1808_v41  ;;  %v2153_v20 = vpack.c.bf16 %v4229_v2, %v4229_v2 }
 0x485   : > { %v1765_v17 = vmul.f32 %v3950_v43, %v1743_v46  ;;  %v1809_v13 = vmul.f32 %v3959_v38, %v1743_v46  ;;  %v4539_v43 = vpack.c.bf16 %v3994_v24, %v3988_v62  ;;  %v4540_v38 = vpack.c.bf16 %v4031_v58, %v4037_v11 }
 0x486   : > { %v1848_v28 = vpack.c.bf16 %v1830_v14, %v1829_v12  ;;  %2179 = vrot.lane.b32.xlu1 %v2153_v20, %s3348_s28  ;;  %v1839_v47 = vpack.c.bf16 %v1786_v18, %v1785_v45 }
 0x487   : > { %v1787_v19 = vadd.f32 %v3972_v34, %v1765_v17  ;;  %v1831_v51 = vadd.f32 %v3981_v6, %v1809_v13  ;;  %v4541_v34 = vpack.c.bf16 %v4078_v36, %v4071_v8  ;;  %v4542_v6 = vpack.c.bf16 %v4117_v52, %v4104_v4 }
 0x488   : > { %v1899_v40 = vsel %vm542_vm0, %v1848_v28, 0  ;;  %v2345_v28 = vld [vmem:[%s4511_s7] sm:$0xff] }
 0x489   : > { %1919 = vmatpush1.bf16.xpose.msra.mxu0 %v1899_v40  ;;  %v1849_v22 = vpack.c.bf16 %v1831_v51, %v1831_v51  ;;  %v1840_v11 = vpack.c.bf16 %v1787_v19, %v1787_v19 }
 0x48a   : > { %1920 = vmatprep.subr.bf16.mxu0 %v4538_v7 }
 0x48b   : > { %v1902_v26 = vsel %vm542_vm0, %v1849_v22, 0 }
 0x491   : > { %1921 = vmatpush1.bf16.xpose.msra.mxu0 %v1902_v26 }
 0x492   : > { %2224 = vmatprep.subr.bf16.mxu0 %v4538_v7 }
 0x498   : > { %2831 = vmatmul.mubr.msk.bf16.vlgmr.msra.gmra.mrb[36].mxu0 %vm542_vm0, %v4539_v43 }
 0x499   : > { %1946 = vmatprep.mubr.bf16.mxu0 %v4538_v7 }
 0x4a0   : > { %2832 = vmatmul.mubr.msk.bf16.gmra.mrb[40].mxu0 %vm542_vm0, %v4540_v38 }
 0x4a1   : > { %1956 = vmatprep.mubr.bf16.mxu0 %v4538_v7 }
 0x4a8   : > { %2833 = vmatmul.mubr.msk.bf16.gmra.mrb[44].mxu0 %vm542_vm0, %v4541_v34 }
 0x4a9   : > { %1966 = vmatprep.mubr.bf16.mxu0 %v4538_v7 }
 0x4b0   : > { %2834 = vmatmul.mubr.msk.bf16.gmra.mrb[48].mxu0 %vm542_vm0, %v4542_v6 }
 0x4b1   : > { %1976 = vmatprep.mubr.bf16.mxu0 %v4538_v7 }
 0x4b3   : > { %v2164_v62 = vpop.permute.xlu0 %2163 }
 0x4b4   : > { %2225 = vmatpush1.bf16.msra.mxu0 %v2164_v62  ;;  %3038 = vmatpush1.bf16.msra.mxu1 %v2164_v62 }
 0x4b5   : > { %2226 = vmatprep.subr.bf16.mxu0 %v4538_v7  ;;  %3030 = vmatprep.subr.bf16.mxu1 %v4538_v7 }
 0x4b8   : > { %2835 = vmatmul.mubr.msk.bf16.gmra.mrb[52].mxu0 %vm542_vm0, %v1836_v56 }
 0x4b9   : > { %1986 = vmatprep.mubr.bf16.mxu0 %v4538_v7 }
 0x4bb   : > { %v2166_v24 = vpop.permute.xlu1 %2165 }
 0x4bc   : > { %2227 = vmatpush1.bf16.msra.mxu0 %v2166_v24  ;;  %3039 = vmatpush1.bf16.msra.mxu1 %v2166_v24 }
 0x4bd   : > { %2228 = vmatprep.subr.bf16.mxu0 %v4538_v7  ;;  %3031 = vmatprep.subr.bf16.mxu1 %v4538_v7 }
 0x4c0   : > { %2836 = vmatmul.mubr.msk.bf16.gmra.mrb[56].mxu0 %vm542_vm0, %v1837_v50 }
 0x4c1   : > { %1996 = vmatprep.mubr.bf16.mxu0 %v4538_v7 }
 0x4c4   : > { %v2168_v36 = vpop.permute.xlu1 %2167 }
 0x4c5   : > { %2229 = vmatpush1.bf16.msra.mxu0 %v2168_v36  ;;  %3040 = vmatpush1.bf16.msra.mxu1 %v2168_v36 }
 0x4c6   : > { %2230 = vmatprep.subr.bf16.mxu0 %v4538_v7  ;;  %3032 = vmatprep.subr.bf16.mxu1 %v4538_v7 }
 0x4c8   : > { %2837 = vmatmul.mubr.msk.bf16.gmra.mrb[60].mxu0 %vm542_vm0, %v1838_v30 }
 0x4c9   : > { %2006 = vmatprep.mubr.bf16.mxu0 %v4538_v7 }
 0x4cd   : > { %v2170_v58 = vpop.permute.xlu0 %2169 }
 0x4ce   : > { %2231 = vmatpush1.bf16.msra.mxu0 %v2170_v58  ;;  %3041 = vmatpush1.bf16.msra.mxu1 %v2170_v58 }
 0x4cf   : > { %2232 = vmatprep.subr.bf16.mxu0 %v4538_v7  ;;  %3033 = vmatprep.subr.bf16.mxu1 %v4538_v7 }
 0x4d0   : > { %2838 = vmatmul.mubr.msk.bf16.gmra.mrb[64].mxu0 %vm542_vm0, %v1839_v47  ;;  %v2346_v47 = vld [vmem:[%s4511_s7 + $0x8] sm:$0xff] }
 0x4d1   : > { %2016 = vmatprep.mubr.bf16.mxu0 %v4538_v7  ;;  %v2362_v62 = vpack.c.bf16 %v2346_v47, %v2345_v28 }
 0x4d8   : > { %2839 = vmatmul.mubr.msk.bf16.gmra.mrb[68].mxu0 %vm542_vm0, %v1840_v11  ;;  %v2172_v8 = vpop.permute.xlu1 %2171  ;;  %vm2217_vm0 = vcmask 1041408   ;;  %v2347_v11 = vld [vmem:[%s4511_s7 + $0x10] sm:$0xff] }
 0x4d9   : > { %2233 = vmatpush1.bf16.msra.mxu0 %v2172_v8  ;;  %3042 = vmatpush1.bf16.msra.mxu1 %v2172_v8  ;;  %v2219_v31 = vsel %vm2217_vm0, 4294967295, %v3349_v59  ;;  %v2348_v8 = vld [vmem:[%s4511_s7 + $0x18] sm:$0xff] }
 0x4da   : > { %2234 = vmatprep.subr.bf16.mxu0 %v4538_v7  ;;  %3034 = vmatprep.subr.bf16.mxu1 %v4538_v7  ;;  %v2220_v39 = vsel %vm2218_vm9, %v2219_v31, 0 }
 0x4e0   : > { %v2174_v4 = vpop.permute.xlu0 %2173 }
 0x4e1   : > { %2235 = vmatpush1.bf16.msra.mxu0 %v2174_v4  ;;  %3043 = vmatpush1.bf16.msra.mxu1 %v2174_v4 }
 0x4e2   : > { %2236 = vmatprep.subr.bf16.mxu0 %v4538_v7  ;;  %3035 = vmatprep.subr.bf16.mxu1 %v4538_v7 }
 0x4e7   : > { %v2176_v52 = vpop.permute.xlu1 %2175 }
 0x4e8   : > { %2237 = vmatpush1.bf16.msra.mxu0 %v2176_v52  ;;  %3044 = vmatpush1.bf16.msra.mxu1 %v2176_v52 }
 0x4e9   : > { %2238 = vmatprep.subr.bf16.mxu0 %v4538_v7  ;;  %3036 = vmatprep.subr.bf16.mxu1 %v4538_v7 }
 0x4f5   : > { %v2178_v56 = vpop.permute.xlu0 %2177 }
 0x4f6   : > { %2239 = vmatpush1.bf16.msra.mxu0 %v2178_v56  ;;  %3045 = vmatpush1.bf16.msra.mxu1 %v2178_v56  ;;  %v2363_v56 = vpack.c.bf16 %v2348_v8, %v2347_v11 }
 0x4f7   : > { %2240 = vmatprep.subr.bf16.mxu0 %v4538_v7  ;;  %3037 = vmatprep.subr.bf16.mxu1 %v4538_v7 }
 0x4f8   : > { %v2180_v33 = vpop.permute.xlu1 %2179 }
 0x4f9   : > { %v2222_v50 = vand.u32 %v2220_v39, %v2180_v33 }
 0x4fb   : > { %2241 = vmatpush1.bf16.msra.mxu0 %v2222_v50  ;;  %3046 = vmatpush1.bf16.msra.mxu1 %v2222_v50 }
 0x4fc   : > { %2945 = vmatprep.subr.bf16.mxu0 %v4543_v60  ;;  %2989 = vmatprep.subr.bf16.mxu1 %v4543_v60 }
 0x56b   : > { %v1938_v42 = vpop.f32.mrb[36].mxu0 }
 0x56c   : > { %v2025_v30 = vmul.f32 0.25, %v1938_v42  ;;  %v1940_v35 = vpop.f32.mrb[37].mxu0 }
 0x56d   : > { %v2026_v61 = vmul.f32 0.25, %v1940_v35  ;;  %v1942_v41 = vpop.f32.mrb[38].mxu0 }
 0x56e   : > { %v2059_v45 = vmax.f32 %v2025_v30, 0.0  ;;  %v2027_v46 = vmul.f32 0.25, %v1942_v41  ;;  %v1944_v12 = vpop.f32.mrb[39].mxu0 }
 0x56f   : > { %v2060_v18 = vmax.f32 %v2026_v61, 0.0  ;;  %v2028_v14 = vmul.f32 0.25, %v1944_v12 }
 0x570   : > { %v2061_v20 = vmax.f32 %v2027_v46, 0.0  ;;  %v2093_v17 = vmul.f32 %v2059_v45, %v2059_v45 }
 0x571   : > { %v2062_v7 = vmax.f32 %v2028_v14, 0.0  ;;  %v2094_v19 = vmul.f32 %v2060_v18, %v2060_v18 }
 0x572   : > { %v2095_v13 = vmul.f32 %v2061_v20, %v2061_v20 }
 0x573   : > { %v2096_v51 = vmul.f32 %v2062_v7, %v2062_v7  ;;  %v1948_v40 = vpop.f32.mrb[40].mxu0 }
 0x574   : > { %v2127_v22 = vpack.c.bf16 %v2095_v13, %v2093_v17  ;;  %v2029_v26 = vmul.f32 0.25, %v1948_v40  ;;  %v1950_v43 = vpop.f32.mrb[41].mxu0 }
 0x575   : > { %v2128_v38 = vpack.c.bf16 %v2096_v51, %v2094_v19  ;;  %v2030_v34 = vmul.f32 0.25, %v1950_v43  ;;  %v1952_v6 = vpop.f32.mrb[42].mxu0 }
 0x576   : > { %v2063_v24 = vmax.f32 %v2029_v26, 0.0  ;;  %v2031_v36 = vmul.f32 0.25, %v1952_v6  ;;  %v1954_v58 = vpop.f32.mrb[43].mxu0 }
 0x577   : > { %v2064_v4 = vmax.f32 %v2030_v34, 0.0  ;;  %v2032_v52 = vmul.f32 0.25, %v1954_v58  ;;  %2840 = vmatprep.mubr.msk.bf16.mxu0 %vm2189_vm10, %v2128_v38 }
 0x578   : > { %v2065_v59 = vmax.f32 %v2031_v36, 0.0  ;;  %2257 = vmatmul.mubr.bf16.vlgmr.msra.gmra.mrb[72].mxu0 %v2127_v22  ;;  %v2097_v39 = vmul.f32 %v2063_v24, %v2063_v24 }
 0x579   : > { %v2066_v31 = vmax.f32 %v2032_v52, 0.0  ;;  %2946 = vmatpush3.bf16.msra.mxu0 %v2362_v62  ;;  %v2098_v50 = vmul.f32 %v2064_v4, %v2064_v4 }
 0x57a   : > { %v2099_v33 = vmul.f32 %v2065_v59, %v2065_v59  ;;  %2947 = vmatprep.subr.bf16.mxu0 %v4543_v60 }
 0x57b   : > { %v2100_v42 = vmul.f32 %v2066_v31, %v2066_v31  ;;  %v1958_v30 = vpop.f32.mrb[44].mxu0 }
 0x57c   : > { %v2129_v35 = vpack.c.bf16 %v2099_v33, %v2097_v39  ;;  %v2033_v61 = vmul.f32 0.25, %v1958_v30  ;;  %v1960_v41 = vpop.f32.mrb[45].mxu0 }
 0x57d   : > { %v2130_v45 = vpack.c.bf16 %v2100_v42, %v2098_v50  ;;  %v2034_v46 = vmul.f32 0.25, %v1960_v41  ;;  %v1962_v12 = vpop.f32.mrb[46].mxu0  ;;  %2948 = vmatpush3.bf16.msra.mxu0 %v2363_v56 }
 0x57e   : > { %v2067_v18 = vmax.f32 %v2033_v61, 0.0  ;;  %v2035_v14 = vmul.f32 0.25, %v1962_v12  ;;  %v1964_v20 = vpop.f32.mrb[47].mxu0  ;;  %2949 = vmatprep.subr.bf16.mxu0 %v4543_v60 }
 0x57f   : > { %v2068_v7 = vmax.f32 %v2034_v46, 0.0  ;;  %v2036_v17 = vmul.f32 0.25, %v1964_v20  ;;  %2841 = vmatprep.mubr.msk.bf16.mxu0 %vm2189_vm10, %v2130_v45 }
 0x580   : > { %v2069_v13 = vmax.f32 %v2035_v14, 0.0  ;;  %2265 = vmatmul.mubr.bf16.gmra.mrb[76].mxu0 %v2129_v35  ;;  %v2101_v47 = vmul.f32 %v2067_v18, %v2067_v18 }
 0x581   : > { %v2070_v28 = vmax.f32 %v2036_v17, 0.0  ;;  %2953 = vmatprep.mubr.msk.bf16.mxu0 %vm3347_vm3, %v4543_v60  ;;  %v2102_v51 = vmul.f32 %v2068_v7, %v2068_v7 }
 0x582   : > { %v2103_v19 = vmul.f32 %v2069_v13, %v2069_v13 }
 0x583   : > { %v2104_v40 = vmul.f32 %v2070_v28, %v2070_v28  ;;  %v1968_v22 = vpop.f32.mrb[48].mxu0 }
 0x584   : > { %v2131_v26 = vpack.c.bf16 %v2103_v19, %v2101_v47  ;;  %v2037_v43 = vmul.f32 0.25, %v1968_v22  ;;  %v1970_v38 = vpop.f32.mrb[49].mxu0 }
 0x585   : > { %v2132_v34 = vpack.c.bf16 %v2104_v40, %v2102_v51  ;;  %v2038_v6 = vmul.f32 0.25, %v1970_v38  ;;  %v1972_v62 = vpop.f32.mrb[50].mxu0 }
 0x586   : > { %v2071_v24 = vmax.f32 %v2037_v43, 0.0  ;;  %v2039_v36 = vmul.f32 0.25, %v1972_v62  ;;  %v1974_v58 = vpop.f32.mrb[51].mxu0 }
 0x587   : > { %v2072_v11 = vmax.f32 %v2038_v6, 0.0  ;;  %v2040_v8 = vmul.f32 0.25, %v1974_v58  ;;  %2842 = vmatprep.mubr.msk.bf16.mxu1 %vm2189_vm10, %v2132_v34 }
 0x588   : > { %v2073_v4 = vmax.f32 %v2039_v36, 0.0  ;;  %2273 = vmatmul.mubr.bf16.vlgmr.msra.gmra.mrb[72].mxu1 %v2131_v26  ;;  %v2105_v59 = vmul.f32 %v2071_v24, %v2071_v24 }
 0x589   : > { %v2074_v52 = vmax.f32 %v2040_v8, 0.0  ;;  %v2106_v56 = vmul.f32 %v2072_v11, %v2072_v11 }
 0x58a   : > { %v2107_v31 = vmul.f32 %v2073_v4, %v2073_v4 }
 0x58b   : > { %v2108_v39 = vmul.f32 %v2074_v52, %v2074_v52  ;;  %v1978_v33 = vpop.f32.mrb[52].mxu0 }
 0x58c   : > { %v2133_v50 = vpack.c.bf16 %v2107_v31, %v2105_v59  ;;  %v2041_v42 = vmul.f32 0.25, %v1978_v33  ;;  %v1980_v30 = vpop.f32.mrb[53].mxu0 }
 0x58d   : > { %v2134_v35 = vpack.c.bf16 %v2108_v39, %v2106_v56  ;;  %v2042_v61 = vmul.f32 0.25, %v1980_v30  ;;  %v1982_v41 = vpop.f32.mrb[54].mxu0 }
 0x58e   : > { %v2075_v45 = vmax.f32 %v2041_v42, 0.0  ;;  %v2043_v46 = vmul.f32 0.25, %v1982_v41  ;;  %v1984_v12 = vpop.f32.mrb[55].mxu0 }
 0x58f   : > { %v2076_v18 = vmax.f32 %v2042_v61, 0.0  ;;  %v2044_v14 = vmul.f32 0.25, %v1984_v12  ;;  %2843 = vmatprep.mubr.msk.bf16.mxu1 %vm2189_vm10, %v2134_v35 }
 0x590   : > { %v2077_v20 = vmax.f32 %v2043_v46, 0.0  ;;  %2281 = vmatmul.mubr.bf16.gmra.mrb[76].mxu1 %v2133_v50  ;;  %v2109_v17 = vmul.f32 %v2075_v45, %v2075_v45 }
 0x591   : > { %v2078_v7 = vmax.f32 %v2044_v14, 0.0  ;;  %v2110_v28 = vmul.f32 %v2076_v18, %v2076_v18 }
 0x592   : > { %v2111_v13 = vmul.f32 %v2077_v20, %v2077_v20 }
 0x593   : > { %v2112_v47 = vmul.f32 %v2078_v7, %v2078_v7  ;;  %v1988_v19 = vpop.f32.mrb[56].mxu0 }
 0x594   : > { %v2135_v51 = vpack.c.bf16 %v2111_v13, %v2109_v17  ;;  %v2045_v40 = vmul.f32 0.25, %v1988_v19  ;;  %v1990_v22 = vpop.f32.mrb[57].mxu0 }
 0x595   : > { %v2136_v26 = vpack.c.bf16 %v2112_v47, %v2110_v28  ;;  %v2046_v43 = vmul.f32 0.25, %v1990_v22  ;;  %v1992_v38 = vpop.f32.mrb[58].mxu0 }
 0x596   : > { %v2079_v34 = vmax.f32 %v2045_v40, 0.0  ;;  %v2047_v6 = vmul.f32 0.25, %v1992_v38  ;;  %v1994_v62 = vpop.f32.mrb[59].mxu0 }
 0x597   : > { %v2080_v24 = vmax.f32 %v2046_v43, 0.0  ;;  %v2048_v36 = vmul.f32 0.25, %v1994_v62  ;;  %2844 = vmatprep.mubr.msk.bf16.mxu1 %vm2189_vm10, %v2136_v26 }
 0x598   : > { %v2081_v58 = vmax.f32 %v2047_v6, 0.0  ;;  %2289 = vmatmul.mubr.bf16.gmra.mrb[80].mxu1 %v2135_v51  ;;  %v2113_v8 = vmul.f32 %v2079_v34, %v2079_v34 }
 0x599   : > { %v2082_v11 = vmax.f32 %v2048_v36, 0.0  ;;  %v2114_v52 = vmul.f32 %v2080_v24, %v2080_v24 }
 0x59a   : > { %v2115_v4 = vmul.f32 %v2081_v58, %v2081_v58 }
 0x59b   : > { %v2116_v59 = vmul.f32 %v2082_v11, %v2082_v11  ;;  %v1998_v31 = vpop.f32.mrb[60].mxu0 }
 0x59c   : > { %v2137_v56 = vpack.c.bf16 %v2115_v4, %v2113_v8  ;;  %v2049_v39 = vmul.f32 0.25, %v1998_v31  ;;  %v2000_v33 = vpop.f32.mrb[61].mxu0 }
 0x59d   : > { %v2138_v50 = vpack.c.bf16 %v2116_v59, %v2114_v52  ;;  %v2050_v42 = vmul.f32 0.25, %v2000_v33  ;;  %v2002_v30 = vpop.f32.mrb[62].mxu0 }
 0x59e   : > { %v2083_v35 = vmax.f32 %v2049_v39, 0.0  ;;  %v2051_v61 = vmul.f32 0.25, %v2002_v30  ;;  %v2004_v41 = vpop.f32.mrb[63].mxu0 }
 0x59f   : > { %v2084_v45 = vmax.f32 %v2050_v42, 0.0  ;;  %v2052_v46 = vmul.f32 0.25, %v2004_v41  ;;  %2845 = vmatprep.mubr.msk.bf16.mxu1 %vm2189_vm10, %v2138_v50 }
 0x5a0   : > { %v2085_v12 = vmax.f32 %v2051_v61, 0.0  ;;  %2297 = vmatmul.mubr.bf16.gmra.mrb[84].mxu1 %v2137_v56  ;;  %v2117_v14 = vmul.f32 %v2083_v35, %v2083_v35 }
 0x5a1   : > { %v2086_v18 = vmax.f32 %v2052_v46, 0.0  ;;  %v2118_v7 = vmul.f32 %v2084_v45, %v2084_v45  ;;  %v2349_v46 = vld [vmem:[%s4511_s7 + $0x20] sm:$0xff] }
 0x5a2   : > { %v2119_v20 = vmul.f32 %v2085_v12, %v2085_v12  ;;  %v2350_v12 = vld [vmem:[%s4511_s7 + $0x28] sm:$0xff] }
 0x5a3   : > { %v2120_v17 = vmul.f32 %v2086_v18, %v2086_v18  ;;  %v2008_v13 = vpop.f32.mrb[64].mxu0  ;;  %v2364_v18 = vpack.c.bf16 %v2350_v12, %v2349_v46 }
 0x5a4   : > { %v2139_v28 = vpack.c.bf16 %v2119_v20, %v2117_v14  ;;  %v2053_v47 = vmul.f32 0.25, %v2008_v13  ;;  %v2010_v19 = vpop.f32.mrb[65].mxu0  ;;  %v2351_v14 = vld [vmem:[%s4511_s7 + $0x30] sm:$0xff]  ;;  %v2352_v20 = vld [vmem:[%s4511_s7 + $0x38] sm:$0xff]  ;;  %v2540_v13 = vld [vmem:[%s4513_s9 + $0x8] sm:$0xff] }
 0x5a5   : > { %v2140_v51 = vpack.c.bf16 %v2120_v17, %v2118_v7  ;;  %v2054_v40 = vmul.f32 0.25, %v2010_v19  ;;  %v2012_v22 = vpop.f32.mrb[66].mxu0  ;;  %2950 = vmatpush3.bf16.msra.mxu0 %v2364_v18  ;;  %v2365_v7 = vpack.c.bf16 %v2352_v20, %v2351_v14  ;;  %v2539_v17 = vld [vmem:[%s4513_s9] sm:$0xff]  ;;  %v2542_v19 = vld [vmem:[%s4513_s9 + $0x18] sm:$0xff] }
 0x5a6   : > { %v2087_v26 = vmax.f32 %v2053_v47, 0.0  ;;  %v2055_v43 = vmul.f32 0.25, %v2012_v22  ;;  %v2014_v38 = vpop.f32.mrb[67].mxu0  ;;  %2951 = vmatprep.subr.bf16.mxu0 %v4543_v60  ;;  %v2552_v47 = vpack.c.bf16 %v2540_v13, %v2539_v17 }
 0x5a7   : > { %v2088_v34 = vmax.f32 %v2054_v40, 0.0  ;;  %v2056_v6 = vmul.f32 0.25, %v2014_v38  ;;  %2846 = vmatprep.mubr.msk.bf16.mxu1 %vm2189_vm10, %v2140_v51 }
 0x5a8   : > { %v2089_v62 = vmax.f32 %v2055_v43, 0.0  ;;  %2305 = vmatmul.mubr.bf16.gmra.mrb[88].mxu1 %v2139_v28  ;;  %v2121_v36 = vmul.f32 %v2087_v26, %v2087_v26  ;;  %v2541_v28 = vld [vmem:[%s4513_s9 + $0x10] sm:$0xff] }
 0x5a9   : > { %v2090_v24 = vmax.f32 %v2056_v6, 0.0  ;;  %v2122_v11 = vmul.f32 %v2088_v34, %v2088_v34  ;;  %2952 = vmatpush3.bf16.msra.mxu0 %v2365_v7  ;;  %2990 = vmatpush3.bf16.msra.mxu1 %v2552_v47  ;;  %v2553_v51 = vpack.c.bf16 %v2542_v19, %v2541_v28 }
 0x5aa   : > { %v2123_v58 = vmul.f32 %v2089_v62, %v2089_v62  ;;  %2991 = vmatprep.subr.bf16.mxu1 %v4543_v60 }
 0x5ab   : > { %v2124_v8 = vmul.f32 %v2090_v24, %v2090_v24  ;;  %v2018_v4 = vpop.f32.mrb[68].mxu0 }
 0x5ac   : > { %v2141_v52 = vpack.c.bf16 %v2123_v58, %v2121_v36  ;;  %v2057_v59 = vmul.f32 0.25, %v2018_v4  ;;  %v2020_v31 = vpop.f32.mrb[69].mxu0 }
 0x5ad   : > { %v2142_v56 = vpack.c.bf16 %v2124_v8, %v2122_v11  ;;  %v2058_v39 = vmul.f32 0.25, %v2020_v31  ;;  %v2022_v33 = vpop.f32.mrb[70].mxu0  ;;  %2992 = vmatpush3.bf16.msra.mxu1 %v2553_v51 }
 0x5ae   : > { %v2091_v50 = vmax.f32 %v2057_v59, 0.0  ;;  %v2023_v42 = vpop.f32.mrb[71].mxu0 }
 0x5af   : > { %v2092_v30 = vmax.f32 %v2058_v39, 0.0  ;;  %2847 = vmatprep.mubr.msk.bf16.mxu1 %vm2189_vm10, %v2142_v56 }
 0x5b0   : > { %2313 = vmatmul.mubr.bf16.gmra.mrb[92].mxu1 %v2141_v52  ;;  %v2125_v61 = vmul.f32 %v2091_v50, %v2091_v50 }
 0x5b1   : > { %v2126_v35 = vmul.f32 %v2092_v30, %v2092_v30 }
 0x5b2   : > { %v2143_v45 = vpack.c.bf16 %v2125_v61, %v2125_v61 }
 0x5b3   : > { %v2144_v41 = vpack.c.bf16 %v2126_v35, %v2126_v35 }
 0x5b5   : > { %2848 = vmatprep.mubr.msk.bf16.mxu1 %vm2189_vm10, %v2144_v41 }
 0x5b8   : > { %2321 = vmatmul.mubr.bf16.gmra.mrb[96].mxu1 %v2143_v45 }
 0x5b9   : > { %2993 = vmatprep.mubr.msk.bf16.mxu1 %vm3347_vm3, %v4543_v60 }
 0x64b   : > { %v2258_v40 = vpop.f32.mrb[72].mxu0 }
 0x64c   : > { %v2260_v22 = vpop.f32.mrb[73].mxu0  ;;  %v2328_v43 = vmul.f32 %v2258_v40, %v3963_v53 }
 0x64d   : > { %v2261_v26 = vpop.f32.mrb[74].mxu0 }
 0x64e   : > { %v2329_v38 = vmul.f32 %v2261_v26, %v3966_v55  ;;  %v2263_v34 = vpop.f32.mrb[75].mxu0 }
 0x650   : > { %v2353_v6 = vpack.c.bf16 %v2329_v38, %v2328_v43 }
 0x652   : > { %2954 = vmatmul.mubr.msk.bf16.vlgmr.msra.gmra.mrb[80].mxu0 %vm2366_vm11, %v2353_v6 }
 0x653   : > { %v2266_v62 = vpop.f32.mrb[76].mxu0  ;;  %2957 = vmatprep.mubr.msk.bf16.mxu0 %vm3347_vm3, %v4543_v60 }
 0x654   : > { %v2268_v24 = vpop.f32.mrb[77].mxu0  ;;  %v2330_v58 = vmul.f32 %v2266_v62, %v4007_v57 }
 0x655   : > { %v2269_v36 = vpop.f32.mrb[78].mxu0 }
 0x656   : > { %v2331_v11 = vmul.f32 %v2269_v36, %v4011_v32  ;;  %v2271_v8 = vpop.f32.mrb[79].mxu0 }
 0x658   : > { %v2354_v4 = vpack.c.bf16 %v2331_v11, %v2330_v58 }
 0x65a   : > { %2958 = vmatmul.mubr.msk.bf16.gmra.mrb[84].mxu0 %vm2366_vm11, %v2354_v4 }
 0x65b   : > { %v2274_v53 = vpop.f32.mrb[72].mxu1  ;;  %2961 = vmatprep.mubr.msk.bf16.mxu0 %vm3347_vm3, %v4543_v60 }
 0x65c   : > { %v2276_v55 = vpop.f32.mrb[73].mxu1  ;;  %v2332_v59 = vmul.f32 %v2274_v53, %v4049_v54 }
 0x65d   : > { %v2277_v52 = vpop.f32.mrb[74].mxu1 }
 0x65e   : > { %v2333_v31 = vmul.f32 %v2277_v52, %v4052_v49  ;;  %v2279_v56 = vpop.f32.mrb[75].mxu1 }
 0x660   : > { %v2355_v39 = vpack.c.bf16 %v2333_v31, %v2332_v59 }
 0x662   : > { %2962 = vmatmul.mubr.msk.bf16.gmra.mrb[88].mxu0 %vm2366_vm11, %v2355_v39 }
 0x663   : > { %v2282_v57 = vpop.f32.mrb[76].mxu1  ;;  %2965 = vmatprep.mubr.msk.bf16.mxu0 %vm3347_vm3, %v4543_v60 }
 0x664   : > { %v2284_v32 = vpop.f32.mrb[77].mxu1  ;;  %v2334_v50 = vmul.f32 %v2282_v57, %v4087_v3 }
 0x665   : > { %v2285_v33 = vpop.f32.mrb[78].mxu1 }
 0x666   : > { %v2335_v42 = vmul.f32 %v2285_v33, %v4090_v25  ;;  %v2287_v30 = vpop.f32.mrb[79].mxu1 }
 0x668   : > { %v2356_v35 = vpack.c.bf16 %v2335_v42, %v2334_v50 }
 0x66a   : > { %2966 = vmatmul.mubr.msk.bf16.gmra.mrb[92].mxu0 %vm2366_vm11, %v2356_v35 }
 0x66b   : > { %v2290_v54 = vpop.f32.mrb[80].mxu1  ;;  %2969 = vmatprep.mubr.msk.bf16.mxu0 %vm3347_vm3, %v4543_v60 }
 0x66c   : > { %v2292_v49 = vpop.f32.mrb[81].mxu1  ;;  %v2336_v41 = vmul.f32 %v2290_v54, %v4130_v27 }
 0x66d   : > { %v2293_v61 = vpop.f32.mrb[82].mxu1 }
 0x66e   : > { %v2337_v45 = vmul.f32 %v2293_v61, %v4133_v21  ;;  %v2295_v46 = vpop.f32.mrb[83].mxu1 }
 0x66f   : > { %v4544_v46 = vld [vmem:[#allocation2_spill] sm:$0xff] }
 0x670   : > { %v2357_v12 = vpack.c.bf16 %v2337_v45, %v2336_v41 }
 0x672   : > { %2970 = vmatmul.mubr.msk.bf16.gmra.mrb[96].mxu0 %vm2366_vm11, %v2357_v12 }
 0x673   : > { %v2298_v3 = vpop.f32.mrb[84].mxu1  ;;  %2973 = vmatprep.mubr.msk.bf16.mxu0 %vm3347_vm3, %v4543_v60 }
 0x674   : > { %v2300_v25 = vpop.f32.mrb[85].mxu1  ;;  %v2338_v14 = vmul.f32 %v2298_v3, %v4153_v44 }
 0x675   : > { %v2301_v18 = vpop.f32.mrb[86].mxu1 }
 0x676   : > { %v2339_v20 = vmul.f32 %v2301_v18, %v4161_v9  ;;  %v2303_v7 = vpop.f32.mrb[87].mxu1 }
 0x678   : > { %v2358_v17 = vpack.c.bf16 %v2339_v20, %v2338_v14  ;;  %v4545_v14 = vld [vmem:[#allocation3_spill] sm:$0xff] }
 0x67a   : > { %2974 = vmatmul.mubr.msk.bf16.gmra.mrb[100].mxu0 %vm2366_vm11, %v2358_v17 }
 0x67b   : > { %v2306_v27 = vpop.f32.mrb[88].mxu1  ;;  %2977 = vmatprep.mubr.msk.bf16.mxu0 %vm3347_vm3, %v4543_v60 }
 0x67c   : > { %v2308_v21 = vpop.f32.mrb[89].mxu1  ;;  %v2340_v28 = vmul.f32 %v2306_v27, %v4185_v15  ;;  %v4546_v27 = vld [vmem:[#allocation4_spill] sm:$0xff] }
 0x67d   : > { %v2309_v13 = vpop.f32.mrb[90].mxu1 }
 0x67e   : > { %v2341_v47 = vmul.f32 %v2309_v13, %v4188_v37  ;;  %v2311_v19 = vpop.f32.mrb[91].mxu1 }
 0x680   : > { %v2359_v51 = vpack.c.bf16 %v2341_v47, %v2340_v28 }
 0x682   : > { %2978 = vmatmul.mubr.msk.bf16.gmra.mrb[104].mxu0 %vm2366_vm11, %v2359_v51  ;;  %v4547_v51 = vld [vmem:[#allocation5_spill] sm:$0xff] }
 0x683   : > { %v2314_v44 = vpop.f32.mrb[92].mxu1  ;;  %2981 = vmatprep.mubr.msk.bf16.mxu0 %vm3347_vm3, %v4543_v60 }
 0x684   : > { %v2316_v9 = vpop.f32.mrb[93].mxu1  ;;  %v2342_v22 = vmul.f32 %v2314_v44, %v4215_v63  ;;  %v4402_v63 = vld [vmem:[%s4512_s8] ss:$0 sm:$0xff] }
 0x685   : > { %v2317_v40 = vpop.f32.mrb[94].mxu1  ;;  %v2507_v52 = vmul.f32 %v4402_v63, %v3776_v10  ;;  %v2508_v56 = vmul.f32 %v4402_v63, %v3780_v16  ;;  %v2509_v33 = vmul.f32 %v4402_v63, %v3786_v48  ;;  %v2510_v30 = vmul.f32 %v4402_v63, %v3790_v23 }
 0x686   : > { %v2343_v26 = vmul.f32 %v2317_v40, %v4219_v0  ;;  %v2319_v43 = vpop.f32.mrb[95].mxu1  ;;  %v2505_v0 = vmul.f32 %v4402_v63, %v3766_v1  ;;  %v2511_v61 = vmul.f32 %v4402_v63, %v3796_v29  ;;  %v2512_v12 = vmul.f32 %v4402_v63, %v4544_v46 }
 0x687   : > { %v2513_v20 = vmul.f32 %v4402_v63, %v4545_v14  ;;  %v2514_v21 = vmul.f32 %v4402_v63, %v4546_v27  ;;  %v2515_v44 = vmul.f32 %v4402_v63, %v4547_v51 }
 0x688   : > { %v2360_v38 = vpack.c.bf16 %v2343_v26, %v2342_v22  ;;  %v4548_v26 = vld [vmem:[#allocation6_spill] sm:$0xff] }
 0x689   : > { %v2516_v43 = vmul.f32 %v4402_v63, %v4548_v26 }
 0x68a   : > { %2982 = vmatmul.mubr.msk.bf16.gmra.mrb[108].mxu0 %vm2366_vm11, %v2360_v38 }
 0x68b   : > { %v2322_v15 = vpop.f32.mrb[96].mxu1  ;;  %2985 = vmatprep.mubr.msk.bf16.mxu0 %vm3347_vm3, %v4543_v60 }
 0x68c   : > { %v2344_v37 = vmul.f32 %v2322_v15, %v4229_v2  ;;  %v2324_v34 = vpop.f32.mrb[97].mxu1  ;;  %v2506_v2 = vmul.f32 %v4402_v63, %v3770_v5 }
 0x68d   : > { %v2325_v6 = vpop.f32.mrb[98].mxu1 }
 0x68e   : > { %v2326_v62 = vpop.f32.mrb[99].mxu1  ;;  %v2361_v24 = vpack.c.bf16 %v2344_v37, %v2344_v37  ;;  %v4549_v6 = vld [vmem:[#allocation7_spill] sm:$0xff] }
 0x68f   : > { %v2517_v62 = vmul.f32 %v4402_v63, %v4549_v6 }
 0x692   : > { %2986 = vmatmul.mubr.msk.bf16.gmra.mrb[112].mxu0 %vm2366_vm11, %v2361_v24 }
 0x725   : > { %v2428_v36 = vpop.f32.mrb[80].mxu0 }
 0x726   : > { %v2522_v58 = vadd.f32 %v2505_v0, %v2428_v36  ;;  %v2955_v11 = vpop.f32.mrb[81].mxu0 }
 0x727   : > { %v2431_v8 = vpop.f32.mrb[82].mxu0 }
 0x728   : > { %v2523_v4 = vadd.f32 %v2506_v2, %v2431_v8  ;;  %v2956_v53 = vpop.f32.mrb[83].mxu0 }
 0x72a   : > { %v2543_v55 = vpack.c.bf16 %v2523_v4, %v2522_v58  ;;  %v4550_v58 = vld [vmem:[#allocation8_spill] sm:$0xff] }
 0x72b   : > { %v2518_v11 = vmul.f32 %v4402_v63, %v4550_v58 }
 0x72c   : > { %2994 = vmatmul.mubr.msk.bf16.vlgmr.msra.gmra.mrb[100].mxu1 %vm1097_vm1, %v2543_v55  ;;  %v4551_v55 = vld [vmem:[#allocation9_spill] sm:$0xff] }
 0x72d   : > { %v2436_v59 = vpop.f32.mrb[84].mxu0  ;;  %2997 = vmatprep.mubr.msk.bf16.mxu1 %vm3347_vm3, %v4543_v60 }
 0x72e   : > { %v2524_v1 = vadd.f32 %v2507_v52, %v2436_v59  ;;  %v2959_v31 = vpop.f32.mrb[85].mxu0  ;;  %v2519_v52 = vmul.f32 %v4402_v63, %v4551_v55 }
 0x72f   : > { %v2439_v39 = vpop.f32.mrb[86].mxu0 }
 0x730   : > { %v2525_v5 = vadd.f32 %v2508_v56, %v2439_v39  ;;  %v2960_v57 = vpop.f32.mrb[87].mxu0  ;;  %v4552_v56 = vld [vmem:[#allocation10_spill] sm:$0xff] }
 0x731   : > { %v2520_v39 = vmul.f32 %v4402_v63, %v4552_v56 }
 0x732   : > { %v2544_v32 = vpack.c.bf16 %v2525_v5, %v2524_v1 }
 0x734   : > { %2998 = vmatmul.mubr.msk.bf16.gmra.mrb[104].mxu1 %vm1097_vm1, %v2544_v32 }
 0x735   : > { %v2444_v50 = vpop.f32.mrb[88].mxu0  ;;  %3001 = vmatprep.mubr.msk.bf16.mxu1 %vm3347_vm3, %v4543_v60 }
 0x736   : > { %v2526_v10 = vadd.f32 %v2509_v33, %v2444_v50  ;;  %v2963_v42 = vpop.f32.mrb[89].mxu0 }
 0x737   : > { %v2447_v35 = vpop.f32.mrb[90].mxu0 }
 0x738   : > { %v2527_v16 = vadd.f32 %v2510_v30, %v2447_v35  ;;  %v2964_v54 = vpop.f32.mrb[91].mxu0 }
 0x73a   : > { %v2545_v49 = vpack.c.bf16 %v2527_v16, %v2526_v10  ;;  %v4553_v10 = vld [vmem:[#allocation11_spill] sm:$0xff] }
 0x73c   : > { %3002 = vmatmul.mubr.msk.bf16.gmra.mrb[108].mxu1 %vm1097_vm1, %v2545_v49 }
 0x73d   : > { %v2452_v41 = vpop.f32.mrb[92].mxu0  ;;  %3005 = vmatprep.mubr.msk.bf16.mxu1 %vm3347_vm3, %v4543_v60 }
 0x73e   : > { %v2528_v48 = vadd.f32 %v2511_v61, %v2452_v41  ;;  %v2967_v45 = vpop.f32.mrb[93].mxu0 }
 0x73f   : > { %v2455_v3 = vpop.f32.mrb[94].mxu0 }
 0x740   : > { %v2529_v23 = vadd.f32 %v2512_v12, %v2455_v3  ;;  %v2968_v25 = vpop.f32.mrb[95].mxu0 }
 0x742   : > { %v2546_v18 = vpack.c.bf16 %v2529_v23, %v2528_v48 }
 0x744   : > { %3006 = vmatmul.mubr.msk.bf16.gmra.mrb[112].mxu1 %vm1097_vm1, %v2546_v18 }
 0x745   : > { %v2460_v7 = vpop.f32.mrb[96].mxu0  ;;  %3009 = vmatprep.mubr.msk.bf16.mxu1 %vm3347_vm3, %v4543_v60 }
 0x746   : > { %v2530_v29 = vadd.f32 %v2513_v20, %v2460_v7  ;;  %v2971_v17 = vpop.f32.mrb[97].mxu0 }
 0x747   : > { %v2463_v13 = vpop.f32.mrb[98].mxu0 }
 0x748   : > { %v2531_v28 = vadd.f32 %v2514_v21, %v2463_v13  ;;  %v2972_v47 = vpop.f32.mrb[99].mxu0 }
 0x74a   : > { %v2547_v19 = vpack.c.bf16 %v2531_v28, %v2530_v29 }
 0x74c   : > { %3010 = vmatmul.mubr.msk.bf16.gmra.mrb[116].mxu1 %vm1097_vm1, %v2547_v19 }
 0x74d   : > { %v2468_v9 = vpop.f32.mrb[100].mxu0  ;;  %3013 = vmatprep.mubr.msk.bf16.mxu1 %vm3347_vm3, %v4543_v60 }
 0x74e   : > { %v2532_v40 = vadd.f32 %v2515_v44, %v2468_v9  ;;  %v2975_v22 = vpop.f32.mrb[101].mxu0 }
 0x74f   : > { %v2471_v38 = vpop.f32.mrb[102].mxu0 }
 0x750   : > { %v2533_v15 = vadd.f32 %v2516_v43, %v2471_v38  ;;  %v2976_v37 = vpop.f32.mrb[103].mxu0 }
 0x752   : > { %v2548_v34 = vpack.c.bf16 %v2533_v15, %v2532_v40 }
 0x754   : > { %3014 = vmatmul.mubr.msk.bf16.gmra.mrb[120].mxu1 %vm1097_vm1, %v2548_v34 }
 0x755   : > { %v2476_v24 = vpop.f32.mrb[104].mxu0  ;;  %3017 = vmatprep.mubr.msk.bf16.mxu1 %vm3347_vm3, %v4543_v60 }
 0x756   : > { %v2534_v0 = vadd.f32 %v2517_v62, %v2476_v24  ;;  %v2979_v36 = vpop.f32.mrb[105].mxu0 }
 0x757   : > { %v2479_v2 = vpop.f32.mrb[106].mxu0 }
 0x758   : > { %v2535_v8 = vadd.f32 %v2518_v11, %v2479_v2  ;;  %v2980_v4 = vpop.f32.mrb[107].mxu0 }
 0x75a   : > { %v2549_v53 = vpack.c.bf16 %v2535_v8, %v2534_v0 }
 0x75c   : > { %3018 = vmatmul.mubr.msk.bf16.gmra.mrb[124].mxu1 %vm1097_vm1, %v2549_v53 }
 0x75d   : > { %v2484_v59 = vpop.f32.mrb[108].mxu0  ;;  %3021 = vmatprep.mubr.msk.bf16.mxu1 %vm3347_vm3, %v4543_v60 }
 0x75e   : > { %v2536_v1 = vadd.f32 %v2519_v52, %v2484_v59  ;;  %v2983_v31 = vpop.f32.mrb[109].mxu0 }
 0x75f   : > { %v2487_v5 = vpop.f32.mrb[110].mxu0 }
 0x760   : > { %v2537_v57 = vadd.f32 %v2520_v39, %v2487_v5  ;;  %v2984_v32 = vpop.f32.mrb[111].mxu0 }
 0x762   : > { %v2550_v33 = vpack.c.bf16 %v2537_v57, %v2536_v1 }
 0x764   : > { %3022 = vmatmul.mubr.msk.bf16.gmra.mrb[128].mxu1 %vm1097_vm1, %v2550_v33 }
 0x765   : > { %v2492_v50 = vpop.f32.mrb[112].mxu0  ;;  %3025 = vmatprep.mubr.msk.bf16.mxu1 %vm3347_vm3, %v4543_v60  ;;  %vm2685_vm3 = vcmask 654336  }
 0x766   : > { %v2538_v42 = vadd.f32 %v4553_v10, %v2492_v50  ;;  %v2987_v30 = vpop.f32.mrb[113].mxu0 }
 0x767   : > { %v2495_v35 = vpop.f32.mrb[114].mxu0 }
 0x768   : > { %v2988_v16 = vpop.f32.mrb[115].mxu0  ;;  %v2551_v54 = vpack.c.bf16 %v2538_v42, %v2538_v42 }
 0x76c   : > { %3026 = vmatmul.mubr.msk.bf16.gmra.mrb[132].mxu1 %vm1097_vm1, %v2551_v54  ;;  %vm2702_vm1 = vcmask 651264  }
 0x7ff   : > { %v2615_v60 = vpop.f32.mrb[100].mxu1 }
 0x800   : > { %2686 = vst.msk [vmem:[%s4466_s21] sm:$0xff] %vm2685_vm3, %v2615_v60  ;;  %v2995_v63 = vpop.f32.mrb[101].mxu1 }
 0x801   : > { %v2618_v49 = vpop.f32.mrb[102].mxu1 }
 0x802   : > { %2687 = vst.msk [vmem:[%s4466_s21 + $0x8] sm:$0xff] %vm2685_vm3, %v2618_v49  ;;  %v2996_v61 = vpop.f32.mrb[103].mxu1 }
 0x807   : > { %v2623_v41 = vpop.f32.mrb[104].mxu1 }
 0x808   : > { %2688 = vst.msk [vmem:[%s4466_s21 + $0x10] sm:$0xff] %vm2685_vm3, %v2623_v41  ;;  %v2999_v48 = vpop.f32.mrb[105].mxu1 }
 0x809   : > { %v2626_v45 = vpop.f32.mrb[106].mxu1 }
 0x80a   : > { %2689 = vst.msk [vmem:[%s4466_s21 + $0x18] sm:$0xff] %vm2685_vm3, %v2626_v45  ;;  %v3000_v46 = vpop.f32.mrb[107].mxu1 }
 0x80f   : > { %v2631_v12 = vpop.f32.mrb[108].mxu1 }
 0x810   : > { %2690 = vst.msk [vmem:[%s4466_s21 + $0x20] sm:$0xff] %vm2685_vm3, %v2631_v12  ;;  %v3003_v3 = vpop.f32.mrb[109].mxu1 }
 0x811   : > { %v2634_v23 = vpop.f32.mrb[110].mxu1 }
 0x812   : > { %2691 = vst.msk [vmem:[%s4466_s21 + $0x28] sm:$0xff] %vm2685_vm3, %v2634_v23  ;;  %v3004_v25 = vpop.f32.mrb[111].mxu1 }
 0x817   : > { %v2639_v18 = vpop.f32.mrb[112].mxu1 }
 0x818   : > { %2692 = vst.msk [vmem:[%s4466_s21 + $0x30] sm:$0xff] %vm2685_vm3, %v2639_v18  ;;  %v3007_v14 = vpop.f32.mrb[113].mxu1 }
 0x819   : > { %v2642_v20 = vpop.f32.mrb[114].mxu1 }
 0x81a   : > { %2693 = vst.msk [vmem:[%s4466_s21 + $0x38] sm:$0xff] %vm2685_vm3, %v2642_v20  ;;  %v3008_v7 = vpop.f32.mrb[115].mxu1 }
 0x81f   : > { %v2647_v29 = vpop.f32.mrb[116].mxu1 }
 0x820   : > { %2694 = vst.msk [vmem:[%s4466_s21 + $0x40] sm:$0xff] %vm2685_vm3, %v2647_v29  ;;  %v3011_v17 = vpop.f32.mrb[117].mxu1 }
 0x821   : > { %v2650_v27 = vpop.f32.mrb[118].mxu1 }
 0x822   : > { %2695 = vst.msk [vmem:[%s4466_s21 + $0x48] sm:$0xff] %vm2685_vm3, %v2650_v27  ;;  %v3012_v21 = vpop.f32.mrb[119].mxu1 }
 0x827   : > { %v2655_v13 = vpop.f32.mrb[120].mxu1 }
 0x828   : > { %2696 = vst.msk [vmem:[%s4466_s21 + $0x50] sm:$0xff] %vm2685_vm3, %v2655_v13  ;;  %v3015_v28 = vpop.f32.mrb[121].mxu1 }
 0x829   : > { %v2658_v47 = vpop.f32.mrb[122].mxu1 }
 0x82a   : > { %2697 = vst.msk [vmem:[%s4466_s21 + $0x58] sm:$0xff] %vm2685_vm3, %v2658_v47  ;;  %v3016_v19 = vpop.f32.mrb[123].mxu1 }
 0x82f   : > { %v2663_v51 = vpop.f32.mrb[124].mxu1 }
 0x830   : > { %2698 = vst.msk [vmem:[%s4466_s21 + $0x60] sm:$0xff] %vm2685_vm3, %v2663_v51  ;;  %v3019_v44 = vpop.f32.mrb[125].mxu1 }
 0x831   : > { %v2666_v9 = vpop.f32.mrb[126].mxu1 }
 0x832   : > { %2699 = vst.msk [vmem:[%s4466_s21 + $0x68] sm:$0xff] %vm2685_vm3, %v2666_v9  ;;  %v3020_v40 = vpop.f32.mrb[127].mxu1 }
 0x837   : > { %v2671_v22 = vpop.f32.mrb[128].mxu1 }
 0x838   : > { %2700 = vst.msk [vmem:[%s4466_s21 + $0x70] sm:$0xff] %vm2685_vm3, %v2671_v22  ;;  %v3023_v26 = vpop.f32.mrb[129].mxu1 }
 0x839   : > { %v2674_v43 = vpop.f32.mrb[130].mxu1 }
 0x83a   : > { %2701 = vst.msk [vmem:[%s4466_s21 + $0x78] sm:$0xff] %vm2685_vm3, %v2674_v43  ;;  %v3024_v38 = vpop.f32.mrb[131].mxu1 }
 0x83f   : > { %v2679_v15 = vpop.f32.mrb[132].mxu1 }
 0x840   : > { %2703 = vst.msk [vmem:[%s4466_s21 + $0x80] sm:$0x1f] %vm2702_vm1, %v2679_v15  ;;  %v3027_v37 = vpop.f32.mrb[133].mxu1 }
 0x841   : > { %v2682_v34 = vpop.f32.mrb[134].mxu1 }
 0x842   : > { %v3028_v6 = vpop.f32.mrb[135].mxu1 }
 0x843 PF: > { %s20_s13 = sadd.s32 1, %s3343_s13  }
 0x844   : > { %p17_p4 = scmp.ge.s32.totalorder %s20_s13, 6  }
 0x846   :  { %19 = sbr.rel (!%p17_p4) target bundleno = 1 (0x1), region = 90 }

</bundles_post_ra>
